<compile_context>
chip_gen: v5e
topology: v5e:2x2
jax: 0.10.0
libtpu: 0.0.40
codegen_flags: <defaults>
</compile_context>

<pallas_src>
import jax
import jax.numpy as jnp
from jax.experimental import pallas as pl
from jax.experimental.pallas import tpu as pltpu


def _round_up(n, m):
    return (n + m - 1) // m * m


def _mlp_kernel(x_ref,
                w1_ref, b1_ref,
                w2_ref, b2_ref,
                w3_ref, b3_ref,
                w4_ref, b4_ref,
                w5_ref, b5_ref,
                o_ref):
    """One batch tile: 5 MXU matmuls (bf16 in, f32 acc) + VPU bias/relu."""
    # x arrives f32 from HBM; cast to bf16 on the VPU (plenty of slack slots)
    # instead of paying a separate wrapper-side cast pass over HBM.
    h = x_ref[...].astype(jnp.bfloat16)  # (TB, 784)

    h = jnp.dot(h, w1_ref[...], preferred_element_type=jnp.float32) + b1_ref[...]
    h = jnp.maximum(h, 0.0)

    h = jnp.dot(h.astype(jnp.bfloat16), w2_ref[...],
                preferred_element_type=jnp.float32) + b2_ref[...]
    h = jnp.maximum(h, 0.0)

    h = jnp.dot(h.astype(jnp.bfloat16), w3_ref[...],
                preferred_element_type=jnp.float32) + b3_ref[...]
    h = jnp.maximum(h, 0.0)

    h = jnp.dot(h.astype(jnp.bfloat16), w4_ref[...],
                preferred_element_type=jnp.float32) + b4_ref[...]
    h = jnp.maximum(h, 0.0)

    # Final layer: logits, output lanes padded to 128 (cols 10..127 are zeros
    # of W/b, sliced away in the wrapper). bf16 writeback halves the output
    # HBM stream; accumulation stayed f32.
    out = jnp.dot(h.astype(jnp.bfloat16), w5_ref[...],
                  preferred_element_type=jnp.float32) + b5_ref[...]
    o_ref[...] = out.astype(o_ref.dtype)


def _choose_tiles(B, tb_target):
    """Pick (TB, padded batch Bp). TB is a multiple of 16 (bf16 sublanes);
    when the batch is big enough we guarantee >=2 grid steps so v7x's two
    TensorCores both get work."""
    b_min = _round_up(max(B, 16), 16)
    if b_min >= 32:
        tb = min(tb_target, _round_up(b_min // 2, 16))
    else:
        tb = b_min
    bp = _round_up(b_min, tb)
    return tb, bp


def _make_specs(TB, single_buffer_weights):
    if single_buffer_weights:
        def const_spec(shape):
            # Block index never changes -> fetched once; 1 buffer saves ~1.2 MiB.
            return pl.BlockSpec(shape, lambda i: (0, 0),
                                pipeline_mode=pl.Buffered(1))
    else:
        def const_spec(shape):
            return pl.BlockSpec(shape, lambda i: (0, 0))

    in_specs = [
        pl.BlockSpec((TB, 784), lambda i: (i, 0)),   # x tile (double-buffered)
        const_spec((784, 512)), const_spec((1, 512)),
        const_spec((512, 256)), const_spec((1, 256)),
        const_spec((256, 128)), const_spec((1, 128)),
        const_spec((128, 64)),  const_spec((1, 64)),
        const_spec((64, 128)),  const_spec((1, 128)),
    ]
    out_specs = pl.BlockSpec((TB, 128), lambda i: (i, 0))
    return in_specs, out_specs


def net_forward(x, params, *, tb_target=512):
    """x: (B, 1, 28, 28) or (B, 784) float32.  params: dict from init_params."""
    B = x.shape[0]
    x2d = x.reshape(B, 784)             # free view; NO bf16 cast pass here
    if x2d.dtype != jnp.float32:
        x2d = x2d.astype(jnp.float32)

    TB, Bp = _choose_tiles(B, tb_target)
    if Bp != B:
        # TODO(synk): a cdiv grid + masked ragged last tile would avoid this
        # padded copy; jnp.pad is cheap relative to the 5 matmuls here.
        x2d = jnp.pad(x2d, ((0, Bp - B), (0, 0)))
    grid = (Bp // TB,)

    flops = 2 * Bp * (784 * 512 + 512 * 256 + 256 * 128 + 128 * 64 + 64 * 128)
    param_bytes = sum(int(p.size) * p.dtype.itemsize for p in params.values())
    bytes_accessed = int(x2d.size) * 4 + param_bytes + Bp * 128 * 2

    def run(single_buffer_weights):
        in_specs, out_specs = _make_specs(TB, single_buffer_weights)
        return pl.pallas_call(
            _mlp_kernel,
            out_shape=jax.ShapeDtypeStruct((Bp, 128), jnp.bfloat16),
            grid=grid,
            in_specs=in_specs,
            out_specs=out_specs,
            compiler_params=pltpu.CompilerParams(
                dimension_semantics=("parallel",),
                vmem_limit_bytes=32 * 1024 * 1024),
            cost_estimate=pl.CostEstimate(
                flops=flops, transcendentals=0,
                bytes_accessed=bytes_accessed),
        )(
            x2d,
            params["w1"], params["b1"],
            params["w2"], params["b2"],
            params["w3"], params["b3"],
            params["w4"], params["b4"],
            params["w5"], params["b5"],
        )

    try:
        out = run(True)
    except Exception:
        # Fallback if this JAX build rejects pl.Buffered(1) on pallas_call
        # input specs: plain double-buffered constant weight blocks.
        out = run(False)

    return out[:B, :10].astype(jnp.float32)


def init_params(key):
    """PyTorch-default-style uniform init.

    Weights stored as (in_features, out_features) bf16 (MXU-native, halves
    the weight DMA); biases f32 shaped (1, out) for clean in-kernel broadcast
    onto the f32 accumulator. Last layer zero-padded 10 -> 128 output lanes.
    """
    dims = [784, 512, 256, 128, 64, 10]
    params = {}
    keys = jax.random.split(key, 2 * (len(dims) - 1))
    for i in range(len(dims) - 1):
        fan_in, fan_out = dims[i], dims[i + 1]
        bound = 1.0 / (fan_in ** 0.5)
        wk, bk = keys[2 * i], keys[2 * i + 1]
        w = jax.random.uniform(wk, (fan_in, fan_out), jnp.float32,
                               minval=-bound, maxval=bound)
        b = jax.random.uniform(bk, (1, fan_out), jnp.float32,
                               minval=-bound, maxval=bound)
        if i == len(dims) - 2:  # pad last layer to 128 output lanes
            w = jnp.pad(w, ((0, 0), (0, 128 - fan_out)))
            b = jnp.pad(b, ((0, 0), (0, 128 - fan_out)))
        params[f"w{i+1}"] = w.astype(jnp.bfloat16)
        params[f"b{i+1}"] = b  # f32 (added to the f32 accumulator)
    return params


def _reference_forward(x, params):
    """Pure-JAX reference with identical bf16-weight / f32-accum arithmetic
    and the same bf16 logit writeback as the kernel."""
    B = x.shape[0]
    h = x.reshape(B, 784).astype(jnp.bfloat16)
    for i in range(1, 5):
        h = jnp.dot(h, params[f"w{i}"],
                    preferred_element_type=jnp.float32) + params[f"b{i}"]
        h = jnp.maximum(h, 0.0).astype(jnp.bfloat16)
    out = jnp.dot(h, params["w5"],
                  preferred_element_type=jnp.float32) + params["b5"]
    out = out.astype(jnp.bfloat16).astype(jnp.float32)
    return out[:, :10]


if __name__ == "__main__":
    key = jax.random.PRNGKey(0)
    pkey, xkey = jax.random.split(key)

    params = init_params(pkey)
    # MNIST-like input: batch=8, NCHW (8, 1, 28, 28)
    x = jax.random.normal(xkey, (8, 1, 28, 28), jnp.float32)

    out = net_forward(x, params)
    out = jax.block_until_ready(out)

    ref = _reference_forward(x, params)
    assert out.shape == (8, 10)
    assert jnp.allclose(out, ref, atol=2e-2, rtol=2e-2), "mismatch vs JAX reference"

    print("KERNEL_OK")
</pallas_src>

<mosaic_0001>
module attributes {stable_mosaic.version = 11 : i64} {
  func.func @_mlp_kernel(%arg0: i32, %arg1: memref<16x784xf32, #tpu.memory_space<vmem>>, %arg2: memref<784x512xbf16, #tpu.memory_space<vmem>>, %arg3: memref<1x512xf32, #tpu.memory_space<vmem>>, %arg4: memref<512x256xbf16, #tpu.memory_space<vmem>>, %arg5: memref<1x256xf32, #tpu.memory_space<vmem>>, %arg6: memref<256x128xbf16, #tpu.memory_space<vmem>>, %arg7: memref<1x128xf32, #tpu.memory_space<vmem>>, %arg8: memref<128x64xbf16, #tpu.memory_space<vmem>>, %arg9: memref<1x64xf32, #tpu.memory_space<vmem>>, %arg10: memref<64x128xbf16, #tpu.memory_space<vmem>>, %arg11: memref<1x128xf32, #tpu.memory_space<vmem>>, %arg12: memref<16x128xbf16, #tpu.memory_space<vmem>>) attributes {dimension_semantics = [#tpu.dimension_semantics<parallel>], iteration_bounds = array<i64: 1>, scalar_prefetch = 0 : i64, scratch_operands = 0 : i64, tpu.core_type = #tpu.core_type<tc>, window_params = [{transform_indices = @transform_0, window_bounds = array<i64: 16, 784>}, {pipeline_mode = #tpu.pipeline_mode<synchronous>, transform_indices = @transform_1, window_bounds = array<i64: 784, 512>}, {pipeline_mode = #tpu.pipeline_mode<synchronous>, transform_indices = @transform_2, window_bounds = array<i64: 1, 512>}, {pipeline_mode = #tpu.pipeline_mode<synchronous>, transform_indices = @transform_3, window_bounds = array<i64: 512, 256>}, {pipeline_mode = #tpu.pipeline_mode<synchronous>, transform_indices = @transform_4, window_bounds = array<i64: 1, 256>}, {pipeline_mode = #tpu.pipeline_mode<synchronous>, transform_indices = @transform_5, window_bounds = array<i64: 256, 128>}, {pipeline_mode = #tpu.pipeline_mode<synchronous>, transform_indices = @transform_6, window_bounds = array<i64: 1, 128>}, {pipeline_mode = #tpu.pipeline_mode<synchronous>, transform_indices = @transform_7, window_bounds = array<i64: 128, 64>}, {pipeline_mode = #tpu.pipeline_mode<synchronous>, transform_indices = @transform_8, window_bounds = array<i64: 1, 64>}, {pipeline_mode = #tpu.pipeline_mode<synchronous>, transform_indices = @transform_9, window_bounds = array<i64: 64, 128>}, {pipeline_mode = #tpu.pipeline_mode<synchronous>, transform_indices = @transform_10, window_bounds = array<i64: 1, 128>}, {transform_indices = @transform_11, window_bounds = array<i64: 16, 128>}]} {
    %c0 = arith.constant 0 : index
    %c0_0 = arith.constant 0 : index
    %0 = vector.load %arg1[%c0, %c0_0] : memref<16x784xf32, #tpu.memory_space<vmem>>, vector<16x784xf32>
    %1 = arith.truncf %0 : vector<16x784xf32> to vector<16x784xbf16>
    %c0_1 = arith.constant 0 : index
    %c0_2 = arith.constant 0 : index
    %2 = vector.load %arg2[%c0_1, %c0_2] : memref<784x512xbf16, #tpu.memory_space<vmem>>, vector<784x512xbf16>
    %cst = arith.constant dense<0.000000e+00> : vector<16x512xf32>
    %3 = tpu.matmul %1, %2, %cst {dimension_numbers = #tpu.dot_dimension_numbers<[1], [0], [0], [1], [0, 0, 1, 1], [], []>} : vector<16x784xbf16>, vector<784x512xbf16>, vector<16x512xf32> -> vector<16x512xf32>
    %c0_3 = arith.constant 0 : index
    %c0_4 = arith.constant 0 : index
    %4 = vector.load %arg3[%c0_3, %c0_4] : memref<1x512xf32, #tpu.memory_space<vmem>>, vector<1x512xf32>
    %5 = vector.broadcast %4 : vector<1x512xf32> to vector<16x512xf32>
    %6 = arith.addf %3, %5 : vector<16x512xf32>
    %cst_5 = arith.constant 0.000000e+00 : f32
    %7 = vector.broadcast %cst_5 : f32 to vector<16x512xf32>
    %8 = arith.maximumf %6, %7 : vector<16x512xf32>
    %9 = arith.truncf %8 : vector<16x512xf32> to vector<16x512xbf16>
    %c0_6 = arith.constant 0 : index
    %c0_7 = arith.constant 0 : index
    %10 = vector.load %arg4[%c0_6, %c0_7] : memref<512x256xbf16, #tpu.memory_space<vmem>>, vector<512x256xbf16>
    %cst_8 = arith.constant dense<0.000000e+00> : vector<16x256xf32>
    %11 = tpu.matmul %9, %10, %cst_8 {dimension_numbers = #tpu.dot_dimension_numbers<[1], [0], [0], [1], [0, 0, 1, 1], [], []>} : vector<16x512xbf16>, vector<512x256xbf16>, vector<16x256xf32> -> vector<16x256xf32>
    %c0_9 = arith.constant 0 : index
    %c0_10 = arith.constant 0 : index
    %12 = vector.load %arg5[%c0_9, %c0_10] : memref<1x256xf32, #tpu.memory_space<vmem>>, vector<1x256xf32>
    %13 = vector.broadcast %12 : vector<1x256xf32> to vector<16x256xf32>
    %14 = arith.addf %11, %13 : vector<16x256xf32>
    %cst_11 = arith.constant 0.000000e+00 : f32
    %15 = vector.broadcast %cst_11 : f32 to vector<16x256xf32>
    %16 = arith.maximumf %14, %15 : vector<16x256xf32>
    %17 = arith.truncf %16 : vector<16x256xf32> to vector<16x256xbf16>
    %c0_12 = arith.constant 0 : index
    %c0_13 = arith.constant 0 : index
    %18 = vector.load %arg6[%c0_12, %c0_13] : memref<256x128xbf16, #tpu.memory_space<vmem>>, vector<256x128xbf16>
    %cst_14 = arith.constant dense<0.000000e+00> : vector<16x128xf32>
    %19 = tpu.matmul %17, %18, %cst_14 {dimension_numbers = #tpu.dot_dimension_numbers<[1], [0], [0], [1], [0, 0, 1, 1], [], []>} : vector<16x256xbf16>, vector<256x128xbf16>, vector<16x128xf32> -> vector<16x128xf32>
    %c0_15 = arith.constant 0 : index
    %c0_16 = arith.constant 0 : index
    %20 = vector.load %arg7[%c0_15, %c0_16] : memref<1x128xf32, #tpu.memory_space<vmem>>, vector<1x128xf32>
    %21 = vector.broadcast %20 : vector<1x128xf32> to vector<16x128xf32>
    %22 = arith.addf %19, %21 : vector<16x128xf32>
    %cst_17 = arith.constant 0.000000e+00 : f32
    %23 = vector.broadcast %cst_17 : f32 to vector<16x128xf32>
    %24 = arith.maximumf %22, %23 : vector<16x128xf32>
    %25 = arith.truncf %24 : vector<16x128xf32> to vector<16x128xbf16>
    %c0_18 = arith.constant 0 : index
    %c0_19 = arith.constant 0 : index
    %26 = vector.load %arg8[%c0_18, %c0_19] : memref<128x64xbf16, #tpu.memory_space<vmem>>, vector<128x64xbf16>
    %cst_20 = arith.constant dense<0.000000e+00> : vector<16x64xf32>
    %27 = tpu.matmul %25, %26, %cst_20 {dimension_numbers = #tpu.dot_dimension_numbers<[1], [0], [0], [1], [0, 0, 1, 1], [], []>} : vector<16x128xbf16>, vector<128x64xbf16>, vector<16x64xf32> -> vector<16x64xf32>
    %c0_21 = arith.constant 0 : index
    %c0_22 = arith.constant 0 : index
    %28 = vector.load %arg9[%c0_21, %c0_22] : memref<1x64xf32, #tpu.memory_space<vmem>>, vector<1x64xf32>
    %29 = vector.broadcast %28 : vector<1x64xf32> to vector<16x64xf32>
    %30 = arith.addf %27, %29 : vector<16x64xf32>
    %cst_23 = arith.constant 0.000000e+00 : f32
    %31 = vector.broadcast %cst_23 : f32 to vector<16x64xf32>
    %32 = arith.maximumf %30, %31 : vector<16x64xf32>
    %33 = arith.truncf %32 : vector<16x64xf32> to vector<16x64xbf16>
    %c0_24 = arith.constant 0 : index
    %c0_25 = arith.constant 0 : index
    %34 = vector.load %arg10[%c0_24, %c0_25] : memref<64x128xbf16, #tpu.memory_space<vmem>>, vector<64x128xbf16>
    %cst_26 = arith.constant dense<0.000000e+00> : vector<16x128xf32>
    %35 = tpu.matmul %33, %34, %cst_26 {dimension_numbers = #tpu.dot_dimension_numbers<[1], [0], [0], [1], [0, 0, 1, 1], [], []>} : vector<16x64xbf16>, vector<64x128xbf16>, vector<16x128xf32> -> vector<16x128xf32>
    %c0_27 = arith.constant 0 : index
    %c0_28 = arith.constant 0 : index
    %36 = vector.load %arg11[%c0_27, %c0_28] : memref<1x128xf32, #tpu.memory_space<vmem>>, vector<1x128xf32>
    %37 = vector.broadcast %36 : vector<1x128xf32> to vector<16x128xf32>
    %38 = arith.addf %35, %37 : vector<16x128xf32>
    %39 = arith.truncf %38 : vector<16x128xf32> to vector<16x128xbf16>
    %c0_29 = arith.constant 0 : index
    %c0_30 = arith.constant 0 : index
    %40 = vector.load %arg12[%c0_29, %c0_30] : memref<16x128xbf16, #tpu.memory_space<vmem>>, vector<16x128xbf16>
    tpu.vector_store %arg12[%c0_29, %c0_30], %39 {strides = array<i32>} : memref<16x128xbf16, #tpu.memory_space<vmem>>, vector<16x128xbf16>,
    return
  }
  func.func @transform_0(%arg0: i32) -> (i32, i32) {
    %c0_i32 = arith.constant 0 : i32
    %c0_i32_0 = arith.constant 0 : i32
    return %arg0, %c0_i32 : i32, i32
  }
  func.func @transform_1(%arg0: i32) -> (i32, i32) {
    %c0_i32 = arith.constant 0 : i32
    %c0_i32_0 = arith.constant 0 : i32
    %c0_i32_1 = arith.constant 0 : i32
    return %c0_i32, %c0_i32_0 : i32, i32
  }
  func.func @transform_2(%arg0: i32) -> (i32, i32) {
    %c0_i32 = arith.constant 0 : i32
    %c0_i32_0 = arith.constant 0 : i32
    %c0_i32_1 = arith.constant 0 : i32
    return %c0_i32, %c0_i32_0 : i32, i32
  }
  func.func @transform_3(%arg0: i32) -> (i32, i32) {
    %c0_i32 = arith.constant 0 : i32
    %c0_i32_0 = arith.constant 0 : i32
    %c0_i32_1 = arith.constant 0 : i32
    return %c0_i32, %c0_i32_0 : i32, i32
  }
  func.func @transform_4(%arg0: i32) -> (i32, i32) {
    %c0_i32 = arith.constant 0 : i32
    %c0_i32_0 = arith.constant 0 : i32
    %c0_i32_1 = arith.constant 0 : i32
    return %c0_i32, %c0_i32_0 : i32, i32
  }
  func.func @transform_5(%arg0: i32) -> (i32, i32) {
    %c0_i32 = arith.constant 0 : i32
    %c0_i32_0 = arith.constant 0 : i32
    %c0_i32_1 = arith.constant 0 : i32
    return %c0_i32, %c0_i32_0 : i32, i32
  }
  func.func @transform_6(%arg0: i32) -> (i32, i32) {
    %c0_i32 = arith.constant 0 : i32
    %c0_i32_0 = arith.constant 0 : i32
    %c0_i32_1 = arith.constant 0 : i32
    return %c0_i32, %c0_i32_0 : i32, i32
  }
  func.func @transform_7(%arg0: i32) -> (i32, i32) {
    %c0_i32 = arith.constant 0 : i32
    %c0_i32_0 = arith.constant 0 : i32
    %c0_i32_1 = arith.constant 0 : i32
    return %c0_i32, %c0_i32_0 : i32, i32
  }
  func.func @transform_8(%arg0: i32) -> (i32, i32) {
    %c0_i32 = arith.constant 0 : i32
    %c0_i32_0 = arith.constant 0 : i32
    %c0_i32_1 = arith.constant 0 : i32
    return %c0_i32, %c0_i32_0 : i32, i32
  }
  func.func @transform_9(%arg0: i32) -> (i32, i32) {
    %c0_i32 = arith.constant 0 : i32
    %c0_i32_0 = arith.constant 0 : i32
    %c0_i32_1 = arith.constant 0 : i32
    return %c0_i32, %c0_i32_0 : i32, i32
  }
  func.func @transform_10(%arg0: i32) -> (i32, i32) {
    %c0_i32 = arith.constant 0 : i32
    %c0_i32_0 = arith.constant 0 : i32
    %c0_i32_1 = arith.constant 0 : i32
    return %c0_i32, %c0_i32_0 : i32, i32
  }
  func.func @transform_11(%arg0: i32) -> (i32, i32) {
    %c0_i32 = arith.constant 0 : i32
    %c0_i32_0 = arith.constant 0 : i32
    return %arg0, %c0_i32 : i32, i32
  }
}

module attributes {stable_mosaic.version = 11 : i64} {
  func.func @_mlp_kernel(%arg0: i32, %arg1: memref<16x784xf32, #tpu.memory_space<vmem>>, %arg2: memref<784x512xbf16, #tpu.memory_space<vmem>>, %arg3: memref<1x512xf32, #tpu.memory_space<vmem>>, %arg4: memref<512x256xbf16, #tpu.memory_space<vmem>>, %arg5: memref<1x256xf32, #tpu.memory_space<vmem>>, %arg6: memref<256x128xbf16, #tpu.memory_space<vmem>>, %arg7: memref<1x128xf32, #tpu.memory_space<vmem>>, %arg8: memref<128x64xbf16, #tpu.memory_space<vmem>>, %arg9: memref<1x64xf32, #tpu.memory_space<vmem>>, %arg10: memref<64x128xbf16, #tpu.memory_space<vmem>>, %arg11: memref<1x128xf32, #tpu.memory_space<vmem>>, %arg12: memref<16x128xbf16, #tpu.memory_space<vmem>>) attributes {dimension_semantics = [#tpu.dimension_semantics<parallel>], iteration_bounds = array<i64: 1>, scalar_prefetch = 0 : i64, scratch_operands = 0 : i64, tpu.core_type = #tpu.core_type<tc>, window_params = [{transform_indices = @transform_0, window_bounds = array<i64: 16, 784>}, {pipeline_mode = #tpu.pipeline_mode<synchronous>, transform_indices = @transform_1, window_bounds = array<i64: 784, 512>}, {pipeline_mode = #tpu.pipeline_mode<synchronous>, transform_indices = @transform_2, window_bounds = array<i64: 1, 512>}, {pipeline_mode = #tpu.pipeline_mode<synchronous>, transform_indices = @transform_3, window_bounds = array<i64: 512, 256>}, {pipeline_mode = #tpu.pipeline_mode<synchronous>, transform_indices = @transform_4, window_bounds = array<i64: 1, 256>}, {pipeline_mode = #tpu.pipeline_mode<synchronous>, transform_indices = @transform_5, window_bounds = array<i64: 256, 128>}, {pipeline_mode = #tpu.pipeline_mode<synchronous>, transform_indices = @transform_6, window_bounds = array<i64: 1, 128>}, {pipeline_mode = #tpu.pipeline_mode<synchronous>, transform_indices = @transform_7, window_bounds = array<i64: 128, 64>}, {pipeline_mode = #tpu.pipeline_mode<synchronous>, transform_indices = @transform_8, window_bounds = array<i64: 1, 64>}, {pipeline_mode = #tpu.pipeline_mode<synchronous>, transform_indices = @transform_9, window_bounds = array<i64: 64, 128>}, {pipeline_mode = #tpu.pipeline_mode<synchronous>, transform_indices = @transform_10, window_bounds = array<i64: 1, 128>}, {transform_indices = @transform_11, window_bounds = array<i64: 16, 128>}]} {
    %c0 = arith.constant 0 : index
    %c0_0 = arith.constant 0 : index
    %0 = vector.load %arg1[%c0, %c0_0] : memref<16x784xf32, #tpu.memory_space<vmem>>, vector<16x784xf32>
    %1 = arith.truncf %0 : vector<16x784xf32> to vector<16x784xbf16>
    %c0_1 = arith.constant 0 : index
    %c0_2 = arith.constant 0 : index
    %2 = vector.load %arg2[%c0_1, %c0_2] : memref<784x512xbf16, #tpu.memory_space<vmem>>, vector<784x512xbf16>
    %cst = arith.constant dense<0.000000e+00> : vector<16x512xf32>
    %3 = tpu.matmul %1, %2, %cst {dimension_numbers = #tpu.dot_dimension_numbers<[1], [0], [0], [1], [0, 0, 1, 1], [], []>} : vector<16x784xbf16>, vector<784x512xbf16>, vector<16x512xf32> -> vector<16x512xf32>
    %c0_3 = arith.constant 0 : index
    %c0_4 = arith.constant 0 : index
    %4 = vector.load %arg3[%c0_3, %c0_4] : memref<1x512xf32, #tpu.memory_space<vmem>>, vector<1x512xf32>
    %5 = vector.broadcast %4 : vector<1x512xf32> to vector<16x512xf32>
    %6 = arith.addf %3, %5 : vector<16x512xf32>
    %cst_5 = arith.constant 0.000000e+00 : f32
    %7 = vector.broadcast %cst_5 : f32 to vector<16x512xf32>
    %8 = arith.maximumf %6, %7 : vector<16x512xf32>
    %9 = arith.truncf %8 : vector<16x512xf32> to vector<16x512xbf16>
    %c0_6 = arith.constant 0 : index
    %c0_7 = arith.constant 0 : index
    %10 = vector.load %arg4[%c0_6, %c0_7] : memref<512x256xbf16, #tpu.memory_space<vmem>>, vector<512x256xbf16>
    %cst_8 = arith.constant dense<0.000000e+00> : vector<16x256xf32>
    %11 = tpu.matmul %9, %10, %cst_8 {dimension_numbers = #tpu.dot_dimension_numbers<[1], [0], [0], [1], [0, 0, 1, 1], [], []>} : vector<16x512xbf16>, vector<512x256xbf16>, vector<16x256xf32> -> vector<16x256xf32>
    %c0_9 = arith.constant 0 : index
    %c0_10 = arith.constant 0 : index
    %12 = vector.load %arg5[%c0_9, %c0_10] : memref<1x256xf32, #tpu.memory_space<vmem>>, vector<1x256xf32>
    %13 = vector.broadcast %12 : vector<1x256xf32> to vector<16x256xf32>
    %14 = arith.addf %11, %13 : vector<16x256xf32>
    %cst_11 = arith.constant 0.000000e+00 : f32
    %15 = vector.broadcast %cst_11 : f32 to vector<16x256xf32>
    %16 = arith.maximumf %14, %15 : vector<16x256xf32>
    %17 = arith.truncf %16 : vector<16x256xf32> to vector<16x256xbf16>
    %c0_12 = arith.constant 0 : index
    %c0_13 = arith.constant 0 : index
    %18 = vector.load %arg6[%c0_12, %c0_13] : memref<256x128xbf16, #tpu.memory_space<vmem>>, vector<256x128xbf16>
    %cst_14 = arith.constant dense<0.000000e+00> : vector<16x128xf32>
    %19 = tpu.matmul %17, %18, %cst_14 {dimension_numbers = #tpu.dot_dimension_numbers<[1], [0], [0], [1], [0, 0, 1, 1], [], []>} : vector<16x256xbf16>, vector<256x128xbf16>, vector<16x128xf32> -> vector<16x128xf32>
    %c0_15 = arith.constant 0 : index
    %c0_16 = arith.constant 0 : index
    %20 = vector.load %arg7[%c0_15, %c0_16] : memref<1x128xf32, #tpu.memory_space<vmem>>, vector<1x128xf32>
    %21 = vector.broadcast %20 : vector<1x128xf32> to vector<16x128xf32>
    %22 = arith.addf %19, %21 : vector<16x128xf32>
    %cst_17 = arith.constant 0.000000e+00 : f32
    %23 = vector.broadcast %cst_17 : f32 to vector<16x128xf32>
    %24 = arith.maximumf %22, %23 : vector<16x128xf32>
    %25 = arith.truncf %24 : vector<16x128xf32> to vector<16x128xbf16>
    %c0_18 = arith.constant 0 : index
    %c0_19 = arith.constant 0 : index
    %26 = vector.load %arg8[%c0_18, %c0_19] : memref<128x64xbf16, #tpu.memory_space<vmem>>, vector<128x64xbf16>
    %cst_20 = arith.constant dense<0.000000e+00> : vector<16x64xf32>
    %27 = tpu.matmul %25, %26, %cst_20 {dimension_numbers = #tpu.dot_dimension_numbers<[1], [0], [0], [1], [0, 0, 1, 1], [], []>} : vector<16x128xbf16>, vector<128x64xbf16>, vector<16x64xf32> -> vector<16x64xf32>
    %c0_21 = arith.constant 0 : index
    %c0_22 = arith.constant 0 : index
    %28 = vector.load %arg9[%c0_21, %c0_22] : memref<1x64xf32, #tpu.memory_space<vmem>>, vector<1x64xf32>
    %29 = vector.broadcast %28 : vector<1x64xf32> to vector<16x64xf32>
    %30 = arith.addf %27, %29 : vector<16x64xf32>
    %cst_23 = arith.constant 0.000000e+00 : f32
    %31 = vector.broadcast %cst_23 : f32 to vector<16x64xf32>
    %32 = arith.maximumf %30, %31 : vector<16x64xf32>
    %33 = arith.truncf %32 : vector<16x64xf32> to vector<16x64xbf16>
    %c0_24 = arith.constant 0 : index
    %c0_25 = arith.constant 0 : index
    %34 = vector.load %arg10[%c0_24, %c0_25] : memref<64x128xbf16, #tpu.memory_space<vmem>>, vector<64x128xbf16>
    %cst_26 = arith.constant dense<0.000000e+00> : vector<16x128xf32>
    %35 = tpu.matmul %33, %34, %cst_26 {dimension_numbers = #tpu.dot_dimension_numbers<[1], [0], [0], [1], [0, 0, 1, 1], [], []>} : vector<16x64xbf16>, vector<64x128xbf16>, vector<16x128xf32> -> vector<16x128xf32>
    %c0_27 = arith.constant 0 : index
    %c0_28 = arith.constant 0 : index
    %36 = vector.load %arg11[%c0_27, %c0_28] : memref<1x128xf32, #tpu.memory_space<vmem>>, vector<1x128xf32>
    %37 = vector.broadcast %36 : vector<1x128xf32> to vector<16x128xf32>
    %38 = arith.addf %35, %37 : vector<16x128xf32>
    %39 = arith.truncf %38 : vector<16x128xf32> to vector<16x128xbf16>
    %c0_29 = arith.constant 0 : index
    %c0_30 = arith.constant 0 : index
    %40 = vector.load %arg12[%c0_29, %c0_30] : memref<16x128xbf16, #tpu.memory_space<vmem>>, vector<16x128xbf16>
    tpu.vector_store %arg12[%c0_29, %c0_30], %39 {strides = array<i32>} : memref<16x128xbf16, #tpu.memory_space<vmem>>, vector<16x128xbf16>,
    return
  }
  func.func @transform_0(%arg0: i32) -> (i32, i32) {
    %c0_i32 = arith.constant 0 : i32
    %c0_i32_0 = arith.constant 0 : i32
    return %arg0, %c0_i32 : i32, i32
  }
  func.func @transform_1(%arg0: i32) -> (i32, i32) {
    %c0_i32 = arith.constant 0 : i32
    %c0_i32_0 = arith.constant 0 : i32
    %c0_i32_1 = arith.constant 0 : i32
    return %c0_i32, %c0_i32_0 : i32, i32
  }
  func.func @transform_2(%arg0: i32) -> (i32, i32) {
    %c0_i32 = arith.constant 0 : i32
    %c0_i32_0 = arith.constant 0 : i32
    %c0_i32_1 = arith.constant 0 : i32
    return %c0_i32, %c0_i32_0 : i32, i32
  }
  func.func @transform_3(%arg0: i32) -> (i32, i32) {
    %c0_i32 = arith.constant 0 : i32
    %c0_i32_0 = arith.constant 0 : i32
    %c0_i32_1 = arith.constant 0 : i32
    return %c0_i32, %c0_i32_0 : i32, i32
  }
  func.func @transform_4(%arg0: i32) -> (i32, i32) {
    %c0_i32 = arith.constant 0 : i32
    %c0_i32_0 = arith.constant 0 : i32
    %c0_i32_1 = arith.constant 0 : i32
    return %c0_i32, %c0_i32_0 : i32, i32
  }
  func.func @transform_5(%arg0: i32) -> (i32, i32) {
    %c0_i32 = arith.constant 0 : i32
    %c0_i32_0 = arith.constant 0 : i32
    %c0_i32_1 = arith.constant 0 : i32
    return %c0_i32, %c0_i32_0 : i32, i32
  }
  func.func @transform_6(%arg0: i32) -> (i32, i32) {
    %c0_i32 = arith.constant 0 : i32
    %c0_i32_0 = arith.constant 0 : i32
    %c0_i32_1 = arith.constant 0 : i32
    return %c0_i32, %c0_i32_0 : i32, i32
  }
  func.func @transform_7(%arg0: i32) -> (i32, i32) {
    %c0_i32 = arith.constant 0 : i32
    %c0_i32_0 = arith.constant 0 : i32
    %c0_i32_1 = arith.constant 0 : i32
    return %c0_i32, %c0_i32_0 : i32, i32
  }
  func.func @transform_8(%arg0: i32) -> (i32, i32) {
    %c0_i32 = arith.constant 0 : i32
    %c0_i32_0 = arith.constant 0 : i32
    %c0_i32_1 = arith.constant 0 : i32
    return %c0_i32, %c0_i32_0 : i32, i32
  }
  func.func @transform_9(%arg0: i32) -> (i32, i32) {
    %c0_i32 = arith.constant 0 : i32
    %c0_i32_0 = arith.constant 0 : i32
    %c0_i32_1 = arith.constant 0 : i32
    return %c0_i32, %c0_i32_0 : i32, i32
  }
  func.func @transform_10(%arg0: i32) -> (i32, i32) {
    %c0_i32 = arith.constant 0 : i32
    %c0_i32_0 = arith.constant 0 : i32
    %c0_i32_1 = arith.constant 0 : i32
    return %c0_i32, %c0_i32_0 : i32, i32
  }
  func.func @transform_11(%arg0: i32) -> (i32, i32) {
    %c0_i32 = arith.constant 0 : i32
    %c0_i32_0 = arith.constant 0 : i32
    return %arg0, %c0_i32 : i32, i32
  }
}

</mosaic_0001>

<bundles_post_ra>
// kernel: tpu_custom_call.1
= control target key start
LH: loop header
LB: loop body
LE: loop exit
PB: predicated region body
PF: predicated region fallthrough
CT: control target
= control target key end

     0   :  { %16 = vsyncpa [#allocation3], 0  ;;  %s4348_s0 = inlined_call_operand.hbm [shape: f32[16,784], index: 0, kind: input, shape index: {}]   ;;  %s4349_s1 = inlined_call_operand.hbm [shape: bf16[784,512], index: 1, kind: input, shape index: {}]   ;;  %s4350_s2 = inlined_call_operand.vmem [shape: f32[1,512], index: 2, kind: input, shape index: {}]   ;;  %s4351_s3 = inlined_call_operand.hbm [shape: bf16[512,256], index: 3, kind: input, shape index: {}]   ;;  %s4352_s4 = inlined_call_operand.vmem [shape: f32[1,256], index: 4, kind: input, shape index: {}]   ;;  %s4353_s5 = inlined_call_operand.hbm [shape: bf16[256,128], index: 5, kind: input, shape index: {}]   ;;  %s4354_s6 = inlined_call_operand.vmem [shape: f32[1,128], index: 6, kind: input, shape index: {}]   ;;  %s4355_s7 = inlined_call_operand.vmem [shape: bf16[128,64], index: 7, kind: input, shape index: {}]   ;;  %s4356_s8 = inlined_call_operand.vmem [shape: f32[1,64], index: 8, kind: input, shape index: {}]   ;;  %s4357_s9 = inlined_call_operand.vmem [shape: bf16[64,128], index: 9, kind: input, shape index: {}]   ;;  %s4358_s10 = inlined_call_operand.vmem [shape: f32[1,128], index: 10, kind: input, shape index: {}]   ;;  %s4359_s11 = inlined_call_operand.hbm [shape: bf16[16,128], index: 11, kind: output, shape index: {}]  }
   0x1   :  { %17 = vsyncpa [#allocation6], 0 }
   0x2   :  { %18 = vsyncpa [#allocation9], 0  ;;  %s37_s19 = sshll.u32 %s4349_s1, 4  ;;  %s38_s19 = int_to_ptr.hbm [resolvable:$true] %s37_s19 }
   0x3   :  { %19 = vsyncpa [#allocation4], 0  ;;  %s4147_s20 = smov [#allocation5]   ;;  %s24_s24 = sshll.u32 %s4348_s0, 4  ;;  %s25_s24 = int_to_ptr.hbm [resolvable:$true] %s24_s24 }
   0x4   :  { %s39_s21 = sshll.u32 %s4147_s20, 4  ;;  %s4148_s25 = smov 256   ;;  %s40_s21 = int_to_ptr.vmem [resolvable:$true] %s39_s21 }
   0x5   :  { %s4149_s26 = smov 16   ;;  %s4150_s27 = smov [#allocation2]  }
   0x6   :  { %45 = dma.hbm_to_vmem [thread:$0]  %s38_s19, 25088, %s40_s21, [#allocation6], %s4148_s25, %s4148_s25, %s4149_s26  }
   0x7   :  { %s26_s28 = sshll.u32 %s4150_s27, 4  ;;  %s4151_s29 = smov 896   ;;  %s27_s28 = int_to_ptr.vmem [resolvable:$true] %s26_s28 }
   0x8   :  { %s4152_s30 = smov 56   ;;  %s52_s13 = sshll.u32 %s4351_s3, 4  ;;  %s53_s13 = int_to_ptr.hbm [resolvable:$true] %s52_s13 }
   0x9   :  { %32 = dma.hbm_to_vmem [thread:$0]  %s25_s24, 1792, %s27_s28, [#allocation3], %s4151_s29, %s4151_s29, %s4152_s30  }
   0xa   :  { %s4153_s14 = smov [#allocation7]   ;;  %s67_s17 = sshll.u32 %s4353_s5, 4  ;;  %s68_s17 = int_to_ptr.hbm [resolvable:$true] %s67_s17 }
   0xb   :  { %s54_s15 = sshll.u32 %s4153_s14, 4  ;;  %s4154_s18 = smov 128   ;;  %s55_s15 = int_to_ptr.vmem [resolvable:$true] %s54_s15 }
   0xc   :  { %s4155_s19 = smov 8   ;;  %s4156_s20 = smov [#allocation8]  }
   0xd   :  { %60 = dma.hbm_to_vmem [thread:$0]  %s53_s13, 8192, %s55_s15, [#allocation6], %s4154_s18, %s4154_s18, %s4155_s19  }
   0xe   :  { %s69_s21 = sshll.u32 %s4156_s20, 4  ;;  %s4157_s22 = smov 64   ;;  %s70_s21 = int_to_ptr.vmem [resolvable:$true] %s69_s21 }
   0xf   :  { %s4158_s23 = smov 4  }
  0x10   :  { %75 = dma.hbm_to_vmem [thread:$0]  %s68_s17, 2048, %s70_s21, [#allocation9], %s4157_s22, %s4157_s22, %s4158_s23  }
  0x11   :  { %4139 = dma.done.wait [#allocation3], 1792  }
  0x12   :  { %4140 = vsyncadd [#allocation3], 4294965504 }
  0x13   :  { %4141 = dma.done.wait [#allocation6], 33280  }
  0x14   :  { %4142 = vsyncadd [#allocation6], 4294934016 }
  0x15   :  { %4143 = dma.done.wait [#allocation9], 2048  }
  0x16   :  { %4144 = vsyncadd [#allocation9], 4294965248  ;;  %v2667_v0 = vld [vmem:[#allocation5 + $0xe0] sm:$0xf]  ;;  %v3740_v1 = vld [vmem:[#allocation5 + $0xec] sm:$0xf0] }
  0x17   :  { %v2795_v2 = vld [vmem:[#allocation5 + $0x1e0] sm:$0xf]  ;;  %v2668_v3 = vor.u32 %v3740_v1, %v2667_v0  ;;  %v3772_v4 = vld [vmem:[#allocation5 + $0x1ec] sm:$0xf0]  ;;  %vm1310_vm0 = vcmask 130048   ;;  %vm2510_vm1 = vcmask 523264  }
  0x18   :  { %v2923_v5 = vld [vmem:[#allocation5 + $0x2e0] sm:$0xf]  ;;  %v3804_v6 = vld [vmem:[#allocation5 + $0x2ec] sm:$0xf0]  ;;  %v2796_v7 = vor.u32 %v3772_v4, %v2795_v2 }
  0x19   :  { %v2924_v8 = vor.u32 %v3804_v6, %v2923_v5  ;;  %v3051_v9 = vld [vmem:[#allocation5 + $0x3e0] sm:$0xf]  ;;  %v3836_v10 = vld [vmem:[#allocation5 + $0x3ec] sm:$0xf0]  ;;  %1314 = vmatpush.bf16.msra.mxu0 %v2668_v3 }
  0x1a   :  { %v2651_v11 = vld [vmem:[#allocation5 + $0xc0] sm:$0xf]  ;;  %v3052_v12 = vor.u32 %v3836_v10, %v3051_v9  ;;  %v3736_v13 = vld [vmem:[#allocation5 + $0xcc] sm:$0xf0]  ;;  %1328 = vmatpush.bf16.msra.mxu1 %v2796_v7 }
  0x1b   :  { %v2779_v14 = vld [vmem:[#allocation5 + $0x1c0] sm:$0xf]  ;;  %v3768_v15 = vld [vmem:[#allocation5 + $0x1cc] sm:$0xf0]  ;;  %1342 = vmatpush.bf16.msra.mxu2 %v2924_v8  ;;  %v2652_v16 = vor.u32 %v3736_v13, %v2651_v11 }
  0x1c   :  { %v2780_v17 = vor.u32 %v3768_v15, %v2779_v14  ;;  %v2907_v18 = vld [vmem:[#allocation5 + $0x2c0] sm:$0xf]  ;;  %v3800_v19 = vld [vmem:[#allocation5 + $0x2cc] sm:$0xf0]  ;;  %1356 = vmatpush.bf16.msra.mxu3 %v3052_v12 }
  0x1d   :  { %v3035_v20 = vld [vmem:[#allocation5 + $0x3c0] sm:$0xf]  ;;  %v2908_v21 = vor.u32 %v3800_v19, %v2907_v18  ;;  %v3832_v22 = vld [vmem:[#allocation5 + $0x3cc] sm:$0xf0]  ;;  %1315 = vmatpush.bf16.msra.mxu0 %v2652_v16 }
  0x1e   :  { %v2635_v23 = vld [vmem:[#allocation5 + $0xa0] sm:$0xf]  ;;  %v3732_v24 = vld [vmem:[#allocation5 + $0xac] sm:$0xf0]  ;;  %v3036_v25 = vor.u32 %v3832_v22, %v3035_v20  ;;  %1329 = vmatpush.bf16.msra.mxu1 %v2780_v17 }
  0x1f   :  { %v2763_v26 = vld [vmem:[#allocation5 + $0x1a0] sm:$0xf]  ;;  %v3764_v27 = vld [vmem:[#allocation5 + $0x1ac] sm:$0xf0]  ;;  %v2636_v29 = vor.u32 %v3732_v24, %v2635_v23  ;;  %1343 = vmatpush.bf16.msra.mxu2 %v2908_v21 }
  0x20   :  { %v2891_v28 = vld [vmem:[#allocation5 + $0x2a0] sm:$0xf]  ;;  %v3796_v30 = vld [vmem:[#allocation5 + $0x2ac] sm:$0xf0]  ;;  %v2764_v33 = vor.u32 %v3764_v27, %v2763_v26  ;;  %1357 = vmatpush.bf16.msra.mxu3 %v3036_v25 }
  0x21   :  { %v3019_v31 = vld [vmem:[#allocation5 + $0x3a0] sm:$0xf]  ;;  %v3828_v32 = vld [vmem:[#allocation5 + $0x3ac] sm:$0xf0]  ;;  %v2892_v34 = vor.u32 %v3796_v30, %v2891_v28  ;;  %1316 = vmatpush.bf16.msra.mxu0 %v2636_v29 }
  0x22   :  { %v2619_v35 = vld [vmem:[#allocation5 + $0x80] sm:$0xf]  ;;  %v3728_v36 = vld [vmem:[#allocation5 + $0x8c] sm:$0xf0]  ;;  %v3020_v38 = vor.u32 %v3828_v32, %v3019_v31  ;;  %1330 = vmatpush.bf16.msra.mxu1 %v2764_v33  ;;  %v3738_v32 = vld [vmem:[#allocation5 + $0xe4] sm:$0xf] }
  0x23   :  { %v2747_v37 = vld [vmem:[#allocation5 + $0x180] sm:$0xf]  ;;  %v3760_v39 = vld [vmem:[#allocation5 + $0x18c] sm:$0xf0]  ;;  %v2620_v44 = vor.u32 %v3728_v36, %v2619_v35  ;;  %1344 = vmatpush.bf16.msra.mxu2 %v2892_v34  ;;  %v2669_v33 = vld [vmem:[#allocation5 + $0xf0] sm:$0xf0] }
  0x24   :  { %v2875_v40 = vld [vmem:[#allocation5 + $0x280] sm:$0xf]  ;;  %v3792_v41 = vld [vmem:[#allocation5 + $0x28c] sm:$0xf0]  ;;  %v2748_v45 = vor.u32 %v3760_v39, %v2747_v37  ;;  %1358 = vmatpush.bf16.msra.mxu3 %v3020_v38  ;;  %v112_v36 = vld [vmem:[#allocation2 + $0x48] sm:$0xff] }
  0x25   :  { %v3003_v42 = vld [vmem:[#allocation5 + $0x380] sm:$0xf]  ;;  %v3824_v43 = vld [vmem:[#allocation5 + $0x38c] sm:$0xf0]  ;;  %v2876_v46 = vor.u32 %v3792_v41, %v2875_v40  ;;  %1317 = vmatpush.bf16.msra.mxu0 %v2620_v44  ;;  %v3770_v41 = vld [vmem:[#allocation5 + $0x1e4] sm:$0xf] }
  0x26   :  { %v2603_v47 = vld [vmem:[#allocation5 + $0x60] sm:$0xf]  ;;  %v3724_v48 = vld [vmem:[#allocation5 + $0x6c] sm:$0xf0]  ;;  %v3004_v50 = vor.u32 %v3824_v43, %v3003_v42  ;;  %1331 = vmatpush.bf16.msra.mxu1 %v2748_v45  ;;  %v110_v43 = vld [vmem:[#allocation2 + $0x38] sm:$0xff] }
  0x27   :  { %v2731_v49 = vld [vmem:[#allocation5 + $0x160] sm:$0xf]  ;;  %v3756_v51 = vld [vmem:[#allocation5 + $0x16c] sm:$0xf0]  ;;  %v2604_v56 = vor.u32 %v3724_v48, %v2603_v47  ;;  %1345 = vmatpush.bf16.msra.mxu2 %v2876_v46  ;;  %v2797_v46 = vld [vmem:[#allocation5 + $0x1f0] sm:$0xf0] }
  0x28   :  { %v2859_v52 = vld [vmem:[#allocation5 + $0x260] sm:$0xf]  ;;  %v3788_v53 = vld [vmem:[#allocation5 + $0x26c] sm:$0xf0]  ;;  %v2732_v57 = vor.u32 %v3756_v51, %v2731_v49  ;;  %1359 = vmatpush.bf16.msra.mxu3 %v3004_v50  ;;  %v106_v47 = vld [vmem:[#allocation2 + $0x18] sm:$0xff]  ;;  %v2672_v50 = vor.u32 %v3738_v32, %v2669_v33 }
  0x29   :  { %v2987_v54 = vld [vmem:[#allocation5 + $0x360] sm:$0xf]  ;;  %v3820_v55 = vld [vmem:[#allocation5 + $0x36c] sm:$0xf0]  ;;  %v2860_v58 = vor.u32 %v3788_v53, %v2859_v52  ;;  %1318 = vmatpush.bf16.msra.mxu0 %v2604_v56 }
  0x2a   :  { %v2587_v59 = vld [vmem:[#allocation5 + $0x40] sm:$0xf]  ;;  %v3720_v60 = vld [vmem:[#allocation5 + $0x4c] sm:$0xf0]  ;;  %v2988_v62 = vor.u32 %v3820_v55, %v2987_v54  ;;  %1332 = vmatpush.bf16.msra.mxu1 %v2732_v57  ;;  %v3734_v57 = vld [vmem:[#allocation5 + $0xc4] sm:$0xf] }
  0x2b   :  { %v2715_v61 = vld [vmem:[#allocation5 + $0x140] sm:$0xf]  ;;  %v3752_v63 = vld [vmem:[#allocation5 + $0x14c] sm:$0xf0]  ;;  %v2588_v4 = vor.u32 %v3720_v60, %v2587_v59  ;;  %1346 = vmatpush.bf16.msra.mxu2 %v2860_v58  ;;  %v2653_v58 = vld [vmem:[#allocation5 + $0xd0] sm:$0xf0] }
  0x2c   :  { %v2843_v0 = vld [vmem:[#allocation5 + $0x240] sm:$0xf]  ;;  %v3784_v1 = vld [vmem:[#allocation5 + $0x24c] sm:$0xf0]  ;;  %v2716_v6 = vor.u32 %v3752_v63, %v2715_v61  ;;  %1360 = vmatpush.bf16.msra.mxu3 %v2988_v62  ;;  %v104_v61 = vld [vmem:[#allocation2 + $0x8] sm:$0xff]  ;;  %v2800_v63 = vor.u32 %v3770_v41, %v2797_v46 }
  0x2d   :  { %v2971_v2 = vld [vmem:[#allocation5 + $0x340] sm:$0xf]  ;;  %v3816_v3 = vld [vmem:[#allocation5 + $0x34c] sm:$0xf0]  ;;  %v2844_v7 = vor.u32 %v3784_v1, %v2843_v0  ;;  %1319 = vmatpush.bf16.msra.mxu0 %v2588_v4  ;;  %v3766_v1 = vld [vmem:[#allocation5 + $0x1c4] sm:$0xf]  ;;  %v2656_v4 = vor.u32 %v3734_v57, %v2653_v58 }
  0x2e   :  { %v2571_v5 = vld [vmem:[#allocation5 + $0x20] sm:$0xf]  ;;  %v3716_v8 = vld [vmem:[#allocation5 + $0x2c] sm:$0xf0]  ;;  %v2972_v11 = vor.u32 %v3816_v3, %v2971_v2  ;;  %1333 = vmatpush.bf16.msra.mxu1 %v2716_v6  ;;  %v2781_v2 = vld [vmem:[#allocation5 + $0x1d0] sm:$0xf0] }
  0x2f   :  { %v2699_v9 = vld [vmem:[#allocation5 + $0x120] sm:$0xf]  ;;  %v3748_v10 = vld [vmem:[#allocation5 + $0x12c] sm:$0xf0]  ;;  %v2572_v18 = vor.u32 %v3716_v8, %v2571_v5  ;;  %1347 = vmatpush.bf16.msra.mxu2 %v2844_v7  ;;  %v2733_v41 = vld [vmem:[#allocation5 + $0x170] sm:$0xf0] }
  0x30   :  { %v2827_v12 = vld [vmem:[#allocation5 + $0x220] sm:$0xf]  ;;  %v3780_v13 = vld [vmem:[#allocation5 + $0x22c] sm:$0xf0]  ;;  %v2700_v23 = vor.u32 %v3748_v10, %v2699_v9  ;;  %1361 = vmatpush.bf16.msra.mxu3 %v2972_v11  ;;  %v3730_v10 = vld [vmem:[#allocation5 + $0xa4] sm:$0xf] }
  0x31   :  { %v2955_v14 = vld [vmem:[#allocation5 + $0x320] sm:$0xf]  ;;  %v3812_v15 = vld [vmem:[#allocation5 + $0x32c] sm:$0xf0]  ;;  %v2828_v24 = vor.u32 %v3780_v13, %v2827_v12  ;;  %1320 = vmatpush.bf16.msra.mxu0 %v2572_v18  ;;  %v2637_v11 = vld [vmem:[#allocation5 + $0xb0] sm:$0xf0]  ;;  %v2784_v12 = vor.u32 %v3766_v1, %v2781_v2 }
  0x32   :  { %v2555_v16 = vld [vmem:[#allocation5] sm:$0xf]  ;;  %v3712_v17 = vld [vmem:[#allocation5 + $0xc] sm:$0xf0]  ;;  %v2956_v28 = vor.u32 %v3812_v15, %v2955_v14  ;;  %1334 = vmatpush.bf16.msra.mxu1 %v2700_v23  ;;  %v3762_v14 = vld [vmem:[#allocation5 + $0x1a4] sm:$0xf] }
  0x33   :  { %v2683_v19 = vld [vmem:[#allocation5 + $0x100] sm:$0xf]  ;;  %v3744_v20 = vld [vmem:[#allocation5 + $0x10c] sm:$0xf0]  ;;  %v2556_v35 = vor.u32 %v3712_v17, %v2555_v16  ;;  %1348 = vmatpush.bf16.msra.mxu2 %v2828_v24  ;;  %v2765_v15 = vld [vmem:[#allocation5 + $0x1b0] sm:$0xf0]  ;;  %v2640_v17 = vor.u32 %v3730_v10, %v2637_v11 }
  0x34   :  { %v2811_v21 = vld [vmem:[#allocation5 + $0x200] sm:$0xf]  ;;  %v3776_v22 = vld [vmem:[#allocation5 + $0x20c] sm:$0xf0]  ;;  %v2684_v39 = vor.u32 %v3744_v20, %v2683_v19  ;;  %1362 = vmatpush.bf16.msra.mxu3 %v2956_v28  ;;  %v2621_v23 = vld [vmem:[#allocation5 + $0x90] sm:$0xf0]  ;;  %v2768_v24 = vor.u32 %v3762_v14, %v2765_v15 }
  0x35   :  { %v2939_v25 = vld [vmem:[#allocation5 + $0x300] sm:$0xf]  ;;  %v3808_v26 = vld [vmem:[#allocation5 + $0x30c] sm:$0xf0]  ;;  %v2812_v40 = vor.u32 %v3776_v22, %v2811_v21  ;;  %1321 = vmatpush.bf16.msra.mxu0 %v2556_v35  ;;  %v3726_v22 = vld [vmem:[#allocation5 + $0x84] sm:$0xf] }
  0x36   :  { %v3179_v27 = vld [vmem:[#allocation5 + $0x4e0] sm:$0xf]  ;;  %v3868_v29 = vld [vmem:[#allocation5 + $0x4ec] sm:$0xf0]  ;;  %v2940_v44 = vor.u32 %v3808_v26, %v2939_v25  ;;  %1335 = vmatpush.bf16.msra.mxu1 %v2684_v39  ;;  %v3758_v26 = vld [vmem:[#allocation5 + $0x184] sm:$0xf] }
  0x37   :  { %v3307_v30 = vld [vmem:[#allocation5 + $0x5e0] sm:$0xf]  ;;  %v3900_v31 = vld [vmem:[#allocation5 + $0x5ec] sm:$0xf0]  ;;  %v3180_v45 = vor.u32 %v3868_v29, %v3179_v27  ;;  %1349 = vmatpush.bf16.msra.mxu2 %v2812_v40  ;;  %v2749_v27 = vld [vmem:[#allocation5 + $0x190] sm:$0xf0]  ;;  %v2624_v29 = vor.u32 %v3726_v22, %v2621_v23 }
  0x38   :  { %v105_v34 = vld [vmem:[#allocation2 + $0x10] sm:$0xff]  ;;  %v3904_v38 = vld [vmem:[#allocation5 + $0x60c] sm:$0xf0]  ;;  %v3308_v49 = vor.u32 %v3900_v31, %v3307_v30  ;;  %1363 = vmatpush.bf16.msra.mxu3 %v2940_v44  ;;  %v2605_v35 = vld [vmem:[#allocation5 + $0x70] sm:$0xf0] }
  0x39   :  { %v3323_v37 = vld [vmem:[#allocation5 + $0x600] sm:$0xf]  ;;  %v103_v42 = vld [vmem:[#allocation2] sm:$0xff]  ;;  %v4235_v54 = vpack.c.bf16 %v112_v36, %v105_v34  ;;  %1370 = vmatpush.bf16.msrb.mxu0 %v3180_v45  ;;  %v3722_v34 = vld [vmem:[#allocation5 + $0x64] sm:$0xf] }
  0x3a   :  { %v113_v48 = vld [vmem:[#allocation2 + $0x50] sm:$0xff]  ;;  %v3864_v52 = vld [vmem:[#allocation5 + $0x4cc] sm:$0xf0]  ;;  %v4237_v55 = vpack.c.bf16 %v110_v43, %v103_v42  ;;  %v3324_v59 = vor.u32 %v3904_v38, %v3323_v37  ;;  %1384 = vmatpush.bf16.msrb.mxu1 %v3308_v49  ;;  %v116_v37 = vld [vmem:[#allocation2 + $0x68] sm:$0xff]  ;;  %v2752_v38 = vor.u32 %v3758_v26, %v2749_v27  ;;  %v2608_v43 = vor.u32 %v3722_v34, %v2605_v35 }
  0x3b   :  { %v3163_v51 = vld [vmem:[#allocation5 + $0x4c0] sm:$0xf]  ;;  %v3896_v56 = vld [vmem:[#allocation5 + $0x5cc] sm:$0xf0]  ;;  %v4239_v60 = vpack.c.bf16 %v113_v48, %v106_v47  ;;  %1350 = vmatmul.bf16.vlgmr.msra.gmra.mxu2 %v4235_v54  ;;  %v3754_v40 = vld [vmem:[#allocation5 + $0x164] sm:$0xf] }
  0x3c   :  { %v3291_v53 = vld [vmem:[#allocation5 + $0x5c0] sm:$0xf]  ;;  %v111_v62 = vld [vmem:[#allocation2 + $0x40] sm:$0xff]  ;;  %v3164_v0 = vor.u32 %v3864_v52, %v3163_v51  ;;  %1412 = vmatpush.bf16.msrb.mxu3 %v2672_v50  ;;  %1322 = vmatmul.bf16.vlgmr.msra.gmra.mxu0 %v4237_v55  ;;  %v3718_v48 = vld [vmem:[#allocation5 + $0x44] sm:$0xf]  ;;  %v2736_v51 = vor.u32 %v3754_v40, %v2733_v41 }
  0x3d   :  { %v3292_v3 = vor.u32 %v3896_v56, %v3291_v53  ;;  %v3147_v5 = vld [vmem:[#allocation5 + $0x4a0] sm:$0xf]  ;;  %v3860_v6 = vld [vmem:[#allocation5 + $0x4ac] sm:$0xf0]  ;;  %v4243_v8 = vpack.c.bf16 %v111_v62, %v104_v61  ;;  %1405 = vmatpush.bf16.msrb.mxu2 %v3324_v59  ;;  %1364 = vmatmul.bf16.vlgmr.msra.gmra.mxu3 %v4239_v60  ;;  %v2589_v49 = vld [vmem:[#allocation5 + $0x50] sm:$0xf0] }
  0x3e   :  { %v3275_v7 = vld [vmem:[#allocation5 + $0x5a0] sm:$0xf]  ;;  %v3892_v9 = vld [vmem:[#allocation5 + $0x5ac] sm:$0xf0]  ;;  %1371 = vmatpush.bf16.msrb.mxu0 %v3164_v0  ;;  %v3148_v13 = vor.u32 %v3860_v6, %v3147_v5  ;;  %v3750_v53 = vld [vmem:[#allocation5 + $0x144] sm:$0xf]  ;;  %v2592_v58 = vor.u32 %v3718_v48, %v2589_v49 }
  0x3f   :  { %1385 = vmatpush.bf16.msrb.mxu1 %v3292_v3  ;;  %v3276_v16 = vor.u32 %v3892_v9, %v3275_v7  ;;  %v3131_v18 = vld [vmem:[#allocation5 + $0x480] sm:$0xf]  ;;  %v3856_v19 = vld [vmem:[#allocation5 + $0x48c] sm:$0xf0]  ;;  %v2717_v56 = vld [vmem:[#allocation5 + $0x150] sm:$0xf0] }
  0x40   :  { %1413 = vmatpush.bf16.msrb.mxu3 %v2656_v4  ;;  %v3259_v20 = vld [vmem:[#allocation5 + $0x580] sm:$0xf]  ;;  %1336 = vmatmul.bf16.vlgmr.msra.gmra.mxu1 %v4243_v8  ;;  %v3888_v21 = vld [vmem:[#allocation5 + $0x58c] sm:$0xf0]  ;;  %v3132_v25 = vor.u32 %v3856_v19, %v3131_v18  ;;  %v3714_v0 = vld [vmem:[#allocation5 + $0x24] sm:$0xf]  ;;  %v2720_v4 = vor.u32 %v3750_v53, %v2717_v56 }
  0x41   :  { %1426 = vmatpush.bf16.msra.mxu2 %v2800_v63  ;;  %v3260_v28 = vor.u32 %v3888_v21, %v3259_v20  ;;  %v3115_v30 = vld [vmem:[#allocation5 + $0x460] sm:$0xf]  ;;  %v3852_v31 = vld [vmem:[#allocation5 + $0x46c] sm:$0xf0]  ;;  %v2573_v1 = vld [vmem:[#allocation5 + $0x30] sm:$0xf0] }
  0x42   :  { %1372 = vmatpush.bf16.msrb.mxu0 %v3148_v13  ;;  %v3243_v32 = vld [vmem:[#allocation5 + $0x560] sm:$0xf]  ;;  %v3884_v33 = vld [vmem:[#allocation5 + $0x56c] sm:$0xf0]  ;;  %v3116_v39 = vor.u32 %v3852_v31, %v3115_v30  ;;  %v3746_v2 = vld [vmem:[#allocation5 + $0x124] sm:$0xf]  ;;  %v2576_v11 = vor.u32 %v3714_v0, %v2573_v1 }
  0x43   :  { %1386 = vmatpush.bf16.msrb.mxu1 %v3276_v16  ;;  %v109_v36 = vld [vmem:[#allocation2 + $0x30] sm:$0xff]  ;;  %v3244_v42 = vor.u32 %v3884_v33, %v3243_v32  ;;  %v3848_v45 = vld [vmem:[#allocation5 + $0x44c] sm:$0xf0]  ;;  %v2701_v3 = vld [vmem:[#allocation5 + $0x130] sm:$0xf0] }
  0x44   :  { %1414 = vmatpush.bf16.msrb.mxu3 %v2640_v17  ;;  %v3099_v44 = vld [vmem:[#allocation5 + $0x440] sm:$0xf]  ;;  %v3880_v47 = vld [vmem:[#allocation5 + $0x54c] sm:$0xf0]  ;;  %v4247_v50 = vpack.c.bf16 %v116_v37, %v109_v36  ;;  %v3710_v13 = vld [vmem:[#allocation5 + $0x4] sm:$0xf]  ;;  %v2704_v21 = vor.u32 %v3746_v2, %v2701_v3 }
  0x45   :  { %1427 = vmatpush.bf16.msra.mxu2 %v2784_v12  ;;  %v3227_v46 = vld [vmem:[#allocation5 + $0x540] sm:$0xf]  ;;  %v3100_v52 = vor.u32 %v3848_v45, %v3099_v44  ;;  %v3844_v61 = vld [vmem:[#allocation5 + $0x42c] sm:$0xf0]  ;;  %v2557_v14 = vld [vmem:[#allocation5 + $0x10] sm:$0xf0] }
  0x46   :  { %1373 = vmatpush.bf16.msrb.mxu0 %v3132_v25  ;;  %v3228_v57 = vor.u32 %v3880_v47, %v3227_v46  ;;  %v3083_v59 = vld [vmem:[#allocation5 + $0x420] sm:$0xf]  ;;  %v3876_v63 = vld [vmem:[#allocation5 + $0x52c] sm:$0xf0]  ;;  %v3802_v15 = vld [vmem:[#allocation5 + $0x2e4] sm:$0xf]  ;;  %v2560_v27 = vor.u32 %v3710_v13, %v2557_v14 }
  0x47   :  { %1387 = vmatpush.bf16.msrb.mxu1 %v3260_v28  ;;  %v3211_v62 = vld [vmem:[#allocation5 + $0x520] sm:$0xf]  ;;  %v3084_v5 = vor.u32 %v3844_v61, %v3083_v59  ;;  %v3840_v7 = vld [vmem:[#allocation5 + $0x40c] sm:$0xf0]  ;;  %v2925_v16 = vld [vmem:[#allocation5 + $0x2f0] sm:$0xf0] }
  0x48   :  { %1415 = vmatpush.bf16.msrb.mxu3 %v2624_v29  ;;  %v3067_v6 = vld [vmem:[#allocation5 + $0x400] sm:$0xf]  ;;  %v3212_v10 = vor.u32 %v3876_v63, %v3211_v62  ;;  %v3872_v12 = vld [vmem:[#allocation5 + $0x50c] sm:$0xf0]  ;;  %v3834_v17 = vld [vmem:[#allocation5 + $0x3e4] sm:$0xf]  ;;  %v2928_v31 = vor.u32 %v3802_v15, %v2925_v16 }
  0x49   :  { %1428 = vmatpush.bf16.msra.mxu2 %v2768_v24  ;;  %v3195_v9 = vld [vmem:[#allocation5 + $0x500] sm:$0xf]  ;;  %v3053_v18 = vld [vmem:[#allocation5 + $0x3f0] sm:$0xf0]  ;;  %v3866_v19 = vld [vmem:[#allocation5 + $0x4e4] sm:$0xf]  ;;  %v3068_v22 = vor.u32 %v3840_v7, %v3067_v6 }
  0x4a   :  { %1374 = vmatpush.bf16.msrb.mxu0 %v3116_v39  ;;  %v3181_v20 = vld [vmem:[#allocation5 + $0x4f0] sm:$0xf0]  ;;  %v114_v24 = vld [vmem:[#allocation2 + $0x58] sm:$0xff]  ;;  %v3742_v25 = vld [vmem:[#allocation5 + $0x104] sm:$0xf]  ;;  %v3196_v26 = vor.u32 %v3872_v12, %v3195_v9  ;;  %v3056_v32 = vor.u32 %v3834_v17, %v3053_v18 }
  0x4b   :  { %1388 = vmatpush.bf16.msrb.mxu1 %v3244_v42  ;;  %3337 = vmatmul.msk.bf16.vlgmr.msrb.gmra.mxu2 %vm1310_vm0, %v4247_v50  ;;  %v107_v23 = vld [vmem:[#allocation2 + $0x20] sm:$0xff]  ;;  %v108_v29 = vld [vmem:[#allocation2 + $0x28] sm:$0xff]  ;;  %v3898_v33 = vld [vmem:[#allocation5 + $0x5e4] sm:$0xf]  ;;  %v3184_v36 = vor.u32 %v3866_v19, %v3181_v20 }
  0x4c   :  { %1416 = vmatpush.bf16.msrb.mxu3 %v2608_v43  ;;  %v2685_v28 = vld [vmem:[#allocation5 + $0x110] sm:$0xf0]  ;;  %v3798_v35 = vld [vmem:[#allocation5 + $0x2c4] sm:$0xf]  ;;  %v4251_v37 = vpack.c.bf16 %v114_v24, %v107_v23 }
  0x4d   :  { %1429 = vmatpush.bf16.msra.mxu2 %v2752_v38  ;;  %v115_v30 = vld [vmem:[#allocation2 + $0x60] sm:$0xff]  ;;  %v3830_v39 = vld [vmem:[#allocation5 + $0x3c4] sm:$0xf]  ;;  %v2688_v41 = vor.u32 %v3742_v25, %v2685_v28 }
  0x4e   :  { %1375 = vmatpush.bf16.msrb.mxu0 %v3100_v52  ;;  %v3309_v34 = vld [vmem:[#allocation5 + $0x5f0] sm:$0xf0]  ;;  %v4253_v42 = vpack.c.bf16 %v115_v30, %v108_v29  ;;  %v3862_v43 = vld [vmem:[#allocation5 + $0x4c4] sm:$0xf] }
  0x4f   :  { %1389 = vmatpush.bf16.msrb.mxu1 %v3228_v57  ;;  %v2909_v38 = vld [vmem:[#allocation5 + $0x2d0] sm:$0xf0]  ;;  %v3312_v45 = vor.u32 %v3898_v33, %v3309_v34  ;;  %v3894_v48 = vld [vmem:[#allocation5 + $0x5c4] sm:$0xf] }
  0x50   :  { %1417 = vmatpush.bf16.msrb.mxu3 %v2592_v58  ;;  %v3037_v40 = vld [vmem:[#allocation5 + $0x3d0] sm:$0xf0]  ;;  %v2912_v46 = vor.u32 %v3798_v35, %v2909_v38  ;;  %v3826_v56 = vld [vmem:[#allocation5 + $0x3a4] sm:$0xf] }
  0x51   :  { %1430 = vmatpush.bf16.msra.mxu2 %v2736_v51  ;;  %v3165_v44 = vld [vmem:[#allocation5 + $0x4d0] sm:$0xf0]  ;;  %v3040_v47 = vor.u32 %v3830_v39, %v3037_v40  ;;  %v3794_v51 = vld [vmem:[#allocation5 + $0x2a4] sm:$0xf] }
  0x52   :  { %1376 = vmatpush.bf16.msrb.mxu0 %v3084_v5  ;;  %v3293_v49 = vld [vmem:[#allocation5 + $0x5d0] sm:$0xf0]  ;;  %v3168_v52 = vor.u32 %v3862_v43, %v3165_v44  ;;  %v3858_v58 = vld [vmem:[#allocation5 + $0x4a4] sm:$0xf] }
  0x53   :  { %1390 = vmatpush.bf16.msrb.mxu1 %v3212_v10  ;;  %v2893_v53 = vld [vmem:[#allocation5 + $0x2b0] sm:$0xf0]  ;;  %v3296_v61 = vor.u32 %v3894_v48, %v3293_v49  ;;  %v3890_v0 = vld [vmem:[#allocation5 + $0x5a4] sm:$0xf] }
  0x54   :  { %1418 = vmatpush.bf16.msrb.mxu3 %v2576_v11  ;;  %v3021_v57 = vld [vmem:[#allocation5 + $0x3b0] sm:$0xf0]  ;;  %v2896_v62 = vor.u32 %v3794_v51, %v2893_v53  ;;  %v3790_v2 = vld [vmem:[#allocation5 + $0x284] sm:$0xf] }
  0x55   :  { %1431 = vmatpush.bf16.msra.mxu2 %v2720_v4  ;;  %v3149_v59 = vld [vmem:[#allocation5 + $0x4b0] sm:$0xf0]  ;;  %v3024_v63 = vor.u32 %v3826_v56, %v3021_v57  ;;  %v3822_v5 = vld [vmem:[#allocation5 + $0x384] sm:$0xf] }
  0x56   :  { %1377 = vmatpush.bf16.msrb.mxu0 %v3068_v22  ;;  %v3277_v1 = vld [vmem:[#allocation5 + $0x5b0] sm:$0xf0]  ;;  %v3152_v3 = vor.u32 %v3858_v58, %v3149_v59  ;;  %v3854_v7 = vld [vmem:[#allocation5 + $0x484] sm:$0xf] }
  0x57   :  { %1391 = vmatpush.bf16.msrb.mxu1 %v3196_v26  ;;  %v2877_v4 = vld [vmem:[#allocation5 + $0x290] sm:$0xf0]  ;;  %v3280_v10 = vor.u32 %v3890_v0, %v3277_v1  ;;  %v3886_v13 = vld [vmem:[#allocation5 + $0x584] sm:$0xf]  ;;  %v2675_v0 = vld [vmem:[#allocation5 + $0xe8] sm:$0xf] }
  0x58   :  { %1419 = vmatpush.bf16.msrb.mxu3 %v2560_v27  ;;  %v3005_v6 = vld [vmem:[#allocation5 + $0x390] sm:$0xf0]  ;;  %v2880_v11 = vor.u32 %v3790_v2, %v2877_v4  ;;  %v3786_v15 = vld [vmem:[#allocation5 + $0x264] sm:$0xf]  ;;  %v3741_v1 = vld [vmem:[#allocation5 + $0xf4] sm:$0xf0] }
  0x59   :  { %1432 = vmatpush.bf16.msra.mxu2 %v2704_v21  ;;  %1378 = vmatmul.bf16.vlgmr.msrb.gmra.mxu0 %v4251_v37  ;;  %v3133_v9 = vld [vmem:[#allocation5 + $0x490] sm:$0xf0]  ;;  %v3008_v12 = vor.u32 %v3822_v5, %v3005_v6  ;;  %v3818_v18 = vld [vmem:[#allocation5 + $0x364] sm:$0xf]  ;;  %v2803_v2 = vld [vmem:[#allocation5 + $0x1e8] sm:$0xf] }
  0x5a   :  { %1440 = vmatpush.bf16.msra.mxu0 %v2928_v31  ;;  %1392 = vmatmul.bf16.vlgmr.msrb.gmra.mxu1 %v4253_v42  ;;  %v3261_v14 = vld [vmem:[#allocation5 + $0x590] sm:$0xf0]  ;;  %v3136_v16 = vor.u32 %v3854_v7, %v3133_v9  ;;  %v3850_v20 = vld [vmem:[#allocation5 + $0x464] sm:$0xf]  ;;  %v3773_v4 = vld [vmem:[#allocation5 + $0x1f4] sm:$0xf0] }
  0x5b   :  { %1454 = vmatpush.bf16.msra.mxu1 %v3056_v32  ;;  %1420 = vmatmul.bf16.vlgmr.msrb.gmra.mxu3 %v4237_v55  ;;  %v2861_v17 = vld [vmem:[#allocation5 + $0x270] sm:$0xf0]  ;;  %v3264_v22 = vor.u32 %v3886_v13, %v3261_v14  ;;  %v3882_v25 = vld [vmem:[#allocation5 + $0x564] sm:$0xf]  ;;  %v2676_v13 = vor.u32 %v3741_v1, %v2675_v0  ;;  %v2931_v14 = vld [vmem:[#allocation5 + $0x2e8] sm:$0xf] }
  0x5c   :  { %1468 = vmatpush.bf16.msra.mxu3 %v3184_v36  ;;  %v2989_v19 = vld [vmem:[#allocation5 + $0x370] sm:$0xf0]  ;;  %v2864_v23 = vor.u32 %v3786_v15, %v2861_v17  ;;  %v3782_v27 = vld [vmem:[#allocation5 + $0x244] sm:$0xf]  ;;  %v3805_v15 = vld [vmem:[#allocation5 + $0x2f4] sm:$0xf0]  ;;  %v2804_v17 = vor.u32 %v3773_v4, %v2803_v2 }
  0x5d   :  { %1433 = vmatpush.bf16.msra.mxu2 %v2688_v41  ;;  %v3117_v21 = vld [vmem:[#allocation5 + $0x470] sm:$0xf0]  ;;  %v2992_v24 = vor.u32 %v3818_v18, %v2989_v19  ;;  %v3814_v30 = vld [vmem:[#allocation5 + $0x344] sm:$0xf]  ;;  %v3837_v19 = vld [vmem:[#allocation5 + $0x3f4] sm:$0xf0] }
  0x5e   :  { %1441 = vmatpush.bf16.msra.mxu0 %v2912_v46  ;;  %v3245_v26 = vld [vmem:[#allocation5 + $0x570] sm:$0xf0]  ;;  %v3120_v28 = vor.u32 %v3850_v20, %v3117_v21  ;;  %v3846_v32 = vld [vmem:[#allocation5 + $0x444] sm:$0xf]  ;;  %v2659_v20 = vld [vmem:[#allocation5 + $0xc8] sm:$0xf] }
  0x5f   :  { %1455 = vmatpush.bf16.msra.mxu1 %v3040_v47  ;;  %v2845_v29 = vld [vmem:[#allocation5 + $0x250] sm:$0xf0]  ;;  %v3248_v34 = vor.u32 %v3882_v25, %v3245_v26  ;;  %v3878_v38 = vld [vmem:[#allocation5 + $0x544] sm:$0xf]  ;;  %v3737_v21 = vld [vmem:[#allocation5 + $0xd4] sm:$0xf0]  ;;  %v2932_v25 = vor.u32 %v3805_v15, %v2931_v14 }
  0x60   :  { %1469 = vmatpush.bf16.msra.mxu3 %v3168_v52  ;;  %1434 = vmatmul.bf16.vlgmr.msra.gmra.mxu2 %v4243_v8  ;;  %v2973_v31 = vld [vmem:[#allocation5 + $0x350] sm:$0xf0]  ;;  %v2848_v35 = vor.u32 %v3782_v27, %v2845_v29  ;;  %v3778_v40 = vld [vmem:[#allocation5 + $0x224] sm:$0xf]  ;;  %v2660_v27 = vor.u32 %v3737_v21, %v2659_v20  ;;  %v3801_v29 = vld [vmem:[#allocation5 + $0x2d4] sm:$0xf0] }
  0x61   :  { %1482 = vmatpush.bf16.msrb.mxu2 %v3312_v45  ;;  %v3101_v33 = vld [vmem:[#allocation5 + $0x450] sm:$0xf0]  ;;  %v2976_v36 = vor.u32 %v3814_v30, %v2973_v31  ;;  %v3810_v44 = vld [vmem:[#allocation5 + $0x324] sm:$0xf]  ;;  %v3043_v30 = vld [vmem:[#allocation5 + $0x3c8] sm:$0xf] }
  0x62   :  { %1442 = vmatpush.bf16.msra.mxu0 %v2896_v62  ;;  %v3229_v39 = vld [vmem:[#allocation5 + $0x550] sm:$0xf0]  ;;  %v3104_v41 = vor.u32 %v3846_v32, %v3101_v33  ;;  %v3842_v46 = vld [vmem:[#allocation5 + $0x424] sm:$0xf]  ;;  %v3833_v32 = vld [vmem:[#allocation5 + $0x3d4] sm:$0xf0] }
  0x63   :  { %1456 = vmatpush.bf16.msra.mxu1 %v3024_v63  ;;  %v2829_v43 = vld [vmem:[#allocation5 + $0x230] sm:$0xf0]  ;;  %v3232_v48 = vor.u32 %v3878_v38, %v3229_v39  ;;  %v3874_v49 = vld [vmem:[#allocation5 + $0x524] sm:$0xf]  ;;  %v2643_v33 = vld [vmem:[#allocation5 + $0xa8] sm:$0xf]  ;;  %v3044_v39 = vor.u32 %v3833_v32, %v3043_v30 }
  0x64   :  { %1470 = vmatpush.bf16.msra.mxu3 %v3152_v3  ;;  %v2957_v45 = vld [vmem:[#allocation5 + $0x330] sm:$0xf0]  ;;  %v2832_v52 = vor.u32 %v3778_v40, %v2829_v43  ;;  %v3774_v56 = vld [vmem:[#allocation5 + $0x204] sm:$0xf]  ;;  %v3797_v43 = vld [vmem:[#allocation5 + $0x2b4] sm:$0xf0] }
  0x65   :  { %1483 = vmatpush.bf16.msrb.mxu2 %v3296_v61  ;;  %v3085_v47 = vld [vmem:[#allocation5 + $0x430] sm:$0xf0]  ;;  %v2960_v53 = vor.u32 %v3810_v44, %v2957_v45  ;;  %v3806_v58 = vld [vmem:[#allocation5 + $0x304] sm:$0xf]  ;;  %v3027_v44 = vld [vmem:[#allocation5 + $0x3a8] sm:$0xf] }
  0x66   :  { %1443 = vmatpush.bf16.msra.mxu0 %v2880_v11  ;;  %v3213_v51 = vld [vmem:[#allocation5 + $0x530] sm:$0xf0]  ;;  %v3088_v59 = vor.u32 %v3842_v46, %v3085_v47  ;;  %v3838_v62 = vld [vmem:[#allocation5 + $0x404] sm:$0xf]  ;;  %v3829_v46 = vld [vmem:[#allocation5 + $0x3b4] sm:$0xf0] }
  0x67   :  { %1457 = vmatpush.bf16.msra.mxu1 %v3008_v12  ;;  %v2813_v57 = vld [vmem:[#allocation5 + $0x210] sm:$0xf0]  ;;  %v3216_v3 = vor.u32 %v3874_v49, %v3213_v51  ;;  %v3902_v5 = vld [vmem:[#allocation5 + $0x604] sm:$0xf]  ;;  %v2627_v47 = vld [vmem:[#allocation5 + $0x88] sm:$0xf] }
  0x68   :  { %1471 = vmatpush.bf16.msra.mxu3 %v3136_v16  ;;  %v2941_v61 = vld [vmem:[#allocation5 + $0x310] sm:$0xf0]  ;;  %v2816_v7 = vor.u32 %v3774_v56, %v2813_v57  ;;  %v3059_v16 = vld [vmem:[#allocation5 + $0x3e8] sm:$0xf]  ;;  %v3761_v51 = vld [vmem:[#allocation5 + $0x194] sm:$0xf0]  ;;  %v3028_v57 = vor.u32 %v3829_v46, %v3027_v44 }
  0x69   :  { %1484 = vmatpush.bf16.msrb.mxu2 %v3280_v10  ;;  %v3069_v63 = vld [vmem:[#allocation5 + $0x410] sm:$0xf0]  ;;  %v2944_v9 = vor.u32 %v3806_v58, %v2941_v61  ;;  %v3870_v10 = vld [vmem:[#allocation5 + $0x504] sm:$0xf]  ;;  %v3060_v26 = vor.u32 %v3837_v19, %v3059_v16  ;;  %v2755_v49 = vld [vmem:[#allocation5 + $0x188] sm:$0xf] }
  0x6a   :  { %1444 = vmatpush.bf16.msra.mxu0 %v2864_v23  ;;  %v3325_v6 = vld [vmem:[#allocation5 + $0x610] sm:$0xf0]  ;;  %v3072_v12 = vor.u32 %v3838_v62, %v3069_v63  ;;  %v2787_v23 = vld [vmem:[#allocation5 + $0x1c8] sm:$0xf]  ;;  %v3793_v56 = vld [vmem:[#allocation5 + $0x294] sm:$0xf0]  ;;  %v2756_v62 = vor.u32 %v3761_v51, %v2755_v49 }
  0x6b   :  { %1458 = vmatpush.bf16.msra.mxu1 %v2992_v24  ;;  %v3197_v11 = vld [vmem:[#allocation5 + $0x510] sm:$0xf0]  ;;  %v3328_v18 = vor.u32 %v3902_v5, %v3325_v6  ;;  %v3769_v24 = vld [vmem:[#allocation5 + $0x1d4] sm:$0xf0]  ;;  %v2611_v63 = vld [vmem:[#allocation5 + $0x68] sm:$0xf] }
  0x6c   :  { %1472 = vmatpush.bf16.msra.mxu3 %v3120_v28  ;;  %v2915_v28 = vld [vmem:[#allocation5 + $0x2c8] sm:$0xf]  ;;  %v2788_v31 = vor.u32 %v3769_v24, %v2787_v23  ;;  %v3825_v61 = vld [vmem:[#allocation5 + $0x394] sm:$0xf0] }
  0x6d   :  { %1485 = vmatpush.bf16.msrb.mxu2 %v3264_v22  ;;  %v3200_v22 = vor.u32 %v3870_v10, %v3197_v11  ;;  %v2916_v38 = vor.u32 %v3801_v29, %v2915_v28  ;;  %v3725_v0 = vld [vmem:[#allocation5 + $0x74] sm:$0xf0]  ;;  %v2739_v1 = vld [vmem:[#allocation5 + $0x168] sm:$0xf] }
  0x6e   :  { %1445 = vmatpush.bf16.msra.mxu0 %v2848_v35  ;;  %v2771_v35 = vld [vmem:[#allocation5 + $0x1a8] sm:$0xf]  ;;  %v3757_v2 = vld [vmem:[#allocation5 + $0x174] sm:$0xf0]  ;;  %v2612_v5 = vor.u32 %v3725_v0, %v2611_v63 }
  0x6f   :  { %1459 = vmatpush.bf16.msra.mxu1 %v2976_v36  ;;  %v3765_v36 = vld [vmem:[#allocation5 + $0x1b4] sm:$0xf0]  ;;  %v2867_v6 = vld [vmem:[#allocation5 + $0x268] sm:$0xf]  ;;  %v2740_v10 = vor.u32 %v3757_v2, %v2739_v1 }
  0x70   :  { %1473 = vmatpush.bf16.msra.mxu3 %v3104_v41  ;;  %v2899_v41 = vld [vmem:[#allocation5 + $0x2a8] sm:$0xf]  ;;  %v2772_v45 = vor.u32 %v3765_v36, %v2771_v35  ;;  %v3821_v11 = vld [vmem:[#allocation5 + $0x374] sm:$0xf0] }
  0x71   :  { %1486 = vmatpush.bf16.msrb.mxu2 %v3248_v34  ;;  %v3733_v34 = vld [vmem:[#allocation5 + $0xb4] sm:$0xf0]  ;;  %v2723_v14 = vld [vmem:[#allocation5 + $0x148] sm:$0xf] }
  0x72   :  { %1446 = vmatpush.bf16.msra.mxu0 %v2832_v52  ;;  %v2644_v40 = vor.u32 %v3733_v34, %v2643_v33  ;;  %v2900_v52 = vor.u32 %v3797_v43, %v2899_v41  ;;  %v3753_v15 = vld [vmem:[#allocation5 + $0x154] sm:$0xf0]  ;;  %v2851_v19 = vld [vmem:[#allocation5 + $0x248] sm:$0xf] }
  0x73   :  { %1460 = vmatpush.bf16.msra.mxu1 %v2960_v53  ;;  %v2883_v53 = vld [vmem:[#allocation5 + $0x288] sm:$0xf]  ;;  %v3785_v20 = vld [vmem:[#allocation5 + $0x254] sm:$0xf0] }
  0x74   :  { %1474 = vmatpush.bf16.msra.mxu3 %v3088_v59  ;;  %v3011_v59 = vld [vmem:[#allocation5 + $0x388] sm:$0xf]  ;;  %v3817_v23 = vld [vmem:[#allocation5 + $0x354] sm:$0xf0]  ;;  %v2852_v28 = vor.u32 %v3785_v20, %v2851_v19 }
  0x75   :  { %1487 = vmatpush.bf16.msrb.mxu2 %v3232_v48  ;;  %v3729_v48 = vld [vmem:[#allocation5 + $0x94] sm:$0xf0]  ;;  %v3012_v4 = vor.u32 %v3825_v61, %v3011_v59  ;;  %v2979_v21 = vld [vmem:[#allocation5 + $0x348] sm:$0xf]  ;;  %v2677_v59 = vld [vmem:[#allocation5 + $0xf8] sm:$0xf0] }
  0x76   :  { %1447 = vmatpush.bf16.msra.mxu0 %v2816_v7  ;;  %v2628_v58 = vor.u32 %v3729_v48, %v2627_v47  ;;  %v3789_v7 = vld [vmem:[#allocation5 + $0x274] sm:$0xf0]  ;;  %v2579_v24 = vld [vmem:[#allocation5 + $0x28] sm:$0xf]  ;;  %v2980_v30 = vor.u32 %v3817_v23, %v2979_v21  ;;  %v2789_v23 = vld [vmem:[#allocation5 + $0x1d8] sm:$0xf0] }
  0x77   :  { %1461 = vmatpush.bf16.msra.mxu1 %v2944_v9  ;;  %v2995_v9 = vld [vmem:[#allocation5 + $0x368] sm:$0xf]  ;;  %v2868_v16 = vor.u32 %v3789_v7, %v2867_v6  ;;  %v3781_v32 = vld [vmem:[#allocation5 + $0x234] sm:$0xf0] }
  0x78   :  { %1475 = vmatpush.bf16.msra.mxu3 %v3072_v12  ;;  %v2595_v12 = vld [vmem:[#allocation5 + $0x48] sm:$0xf]  ;;  %v3813_v34 = vld [vmem:[#allocation5 + $0x334] sm:$0xf0] }
  0x79   :  { %1488 = vmatpush.bf16.msrb.mxu2 %v3216_v3  ;;  %1448 = vmatmul.bf16.vlgmr.msra.gmra.mxu0 %v4235_v54  ;;  %v2884_v3 = vor.u32 %v3793_v56, %v2883_v53  ;;  %v2835_v29 = vld [vmem:[#allocation5 + $0x228] sm:$0xf]  ;;  %v3869_v43 = vld [vmem:[#allocation5 + $0x4f4] sm:$0xf0] }
  0x7a   :  { %1503 = vmatpush.bf16.msrb.mxu0 %v3328_v18  ;;  %1462 = vmatmul.bf16.vlgmr.msra.gmra.mxu1 %v4239_v60  ;;  %v2963_v33 = vld [vmem:[#allocation5 + $0x328] sm:$0xf]  ;;  %v2836_v44 = vor.u32 %v3781_v32, %v2835_v29  ;;  %v3901_v46 = vld [vmem:[#allocation5 + $0x5f4] sm:$0xf0] }
  0x7b   :  { %1510 = vmatpush.bf16.msrb.mxu1 %v2676_v13  ;;  %1476 = vmatmul.bf16.vlgmr.msra.gmra.mxu3 %v4251_v37  ;;  %v3721_v13 = vld [vmem:[#allocation5 + $0x54] sm:$0xf0]  ;;  %v2563_v36 = vld [vmem:[#allocation5 + $0x8] sm:$0xf]  ;;  %v2964_v47 = vor.u32 %v3813_v34, %v2963_v33  ;;  %v3763_v34 = vld [vmem:[#allocation5 + $0x1ac] sm:$0xf] }
  0x7c   :  { %1524 = vmatpush.bf16.msrb.mxu3 %v2804_v17  ;;  %v2996_v17 = vor.u32 %v3821_v11, %v2995_v9  ;;  %v2596_v18 = vor.u32 %v3721_v13, %v2595_v12  ;;  %v3187_v41 = vld [vmem:[#allocation5 + $0x4e8] sm:$0xf]  ;;  %v3777_v51 = vld [vmem:[#allocation5 + $0x214] sm:$0xf0]  ;;  %v3771_v9 = vld [vmem:[#allocation5 + $0x1ec] sm:$0xf] }
  0x7d   :  { %1489 = vmatpush.bf16.msrb.mxu2 %v3200_v22  ;;  %v2724_v22 = vor.u32 %v3753_v15, %v2723_v14  ;;  %v2819_v49 = vld [vmem:[#allocation5 + $0x208] sm:$0xf]  ;;  %v3188_v56 = vor.u32 %v3869_v43, %v3187_v41  ;;  %v3865_v63 = vld [vmem:[#allocation5 + $0x4d4] sm:$0xf0]  ;;  %v3735_v11 = vld [vmem:[#allocation5 + $0xcc] sm:$0xf] }
  0x7e   :  { %1538 = vmatpush.bf16.msra.mxu0 %v2932_v25  ;;  %v3717_v25 = vld [vmem:[#allocation5 + $0x34] sm:$0xf0]  ;;  %v3299_v0 = vld [vmem:[#allocation5 + $0x5c8] sm:$0xf]  ;;  %v2820_v1 = vor.u32 %v3777_v51, %v2819_v49  ;;  %v2661_v14 = vld [vmem:[#allocation5 + $0xd8] sm:$0xf0] }
  0x7f   :  { %1511 = vmatpush.bf16.msrb.mxu1 %v2660_v27  ;;  %v3749_v27 = vld [vmem:[#allocation5 + $0x134] sm:$0xf0]  ;;  %v3155_v15 = vld [vmem:[#allocation5 + $0x4a8] sm:$0xf]  ;;  %v2664_v20 = vor.u32 %v3735_v11, %v2661_v14  ;;  %v2757_v49 = vld [vmem:[#allocation5 + $0x198] sm:$0xf0] }
  0x80   :  { %1525 = vmatpush.bf16.msrb.mxu3 %v2788_v31  ;;  %1490 = vmatmul.bf16.vlgmr.msrb.gmra.mxu2 %v4253_v42  ;;  %v2580_v31 = vor.u32 %v3717_v25, %v2579_v24  ;;  %v3897_v2 = vld [vmem:[#allocation5 + $0x5d4] sm:$0xf0]  ;;  %v3731_v24 = vld [vmem:[#allocation5 + $0xac] sm:$0xf]  ;;  %v3267_v29 = vld [vmem:[#allocation5 + $0x588] sm:$0xf] }
  0x81   :  { %1552 = vmatpush.bf16.msra.mxu2 %v3060_v26  ;;  %v2707_v26 = vld [vmem:[#allocation5 + $0x128] sm:$0xf]  ;;  %v3300_v12 = vor.u32 %v3897_v2, %v3299_v0  ;;  %v3853_v41 = vld [vmem:[#allocation5 + $0x474] sm:$0xf0]  ;;  %v3723_v51 = vld [vmem:[#allocation5 + $0x6c] sm:$0xf] }
  0x82   :  { %1539 = vmatpush.bf16.msra.mxu0 %v2916_v38  ;;  %v2708_v35 = vor.u32 %v3749_v27, %v2707_v26  ;;  %v3713_v38 = vld [vmem:[#allocation5 + $0x14] sm:$0xf0]  ;;  %v2645_v26 = vld [vmem:[#allocation5 + $0xb8] sm:$0xf0]  ;;  %v3139_v27 = vld [vmem:[#allocation5 + $0x488] sm:$0xf] }
  0x83   :  { %1512 = vmatpush.bf16.msrb.mxu1 %v2644_v40  ;;  %v3745_v40 = vld [vmem:[#allocation5 + $0x114] sm:$0xf0]  ;;  %v2564_v48 = vor.u32 %v3713_v38, %v2563_v36  ;;  %v2648_v32 = vor.u32 %v3731_v24, %v2645_v26  ;;  %v3727_v36 = vld [vmem:[#allocation5 + $0x8c] sm:$0xf]  ;;  %v3251_v43 = vld [vmem:[#allocation5 + $0x568] sm:$0xf] }
  0x84   :  { %1526 = vmatpush.bf16.msrb.mxu3 %v2772_v45  ;;  %v3315_v45 = vld [vmem:[#allocation5 + $0x5e8] sm:$0xf]  ;;  %v3755_v0 = vld [vmem:[#allocation5 + $0x16c] sm:$0xf]  ;;  %v2725_v14 = vld [vmem:[#allocation5 + $0x158] sm:$0xf0] }
  0x85   :  { %1553 = vmatpush.bf16.msra.mxu2 %v3044_v39  ;;  %v2691_v39 = vld [vmem:[#allocation5 + $0x108] sm:$0xf]  ;;  %v3316_v61 = vor.u32 %v3901_v46, %v3315_v45  ;;  %v3719_v2 = vld [vmem:[#allocation5 + $0x4c] sm:$0xf]  ;;  %v3061_v26 = vld [vmem:[#allocation5 + $0x3f8] sm:$0xf0] }
  0x86   :  { %1540 = vmatpush.bf16.msra.mxu0 %v2900_v52  ;;  %v2947_v52 = vld [vmem:[#allocation5 + $0x308] sm:$0xf]  ;;  %v2692_v53 = vor.u32 %v3745_v40, %v2691_v39  ;;  %v2629_v39 = vld [vmem:[#allocation5 + $0x98] sm:$0xf0]  ;;  %v3751_v11 = vld [vmem:[#allocation5 + $0x14c] sm:$0xf] }
  0x87   :  { %1513 = vmatpush.bf16.msrb.mxu1 %v2628_v58  ;;  %v3739_v58 = vld [vmem:[#allocation5 + $0xec] sm:$0xf]  ;;  %v3123_v40 = vld [vmem:[#allocation5 + $0x468] sm:$0xf]  ;;  %v2632_v46 = vor.u32 %v3727_v36, %v2629_v39  ;;  %v2728_v24 = vor.u32 %v3751_v11, %v2725_v14 }
  0x88   :  { %1527 = vmatpush.bf16.msrb.mxu3 %v2756_v62  ;;  %v3171_v62 = vld [vmem:[#allocation5 + $0x4c8] sm:$0xf]  ;;  %v2680_v6 = vor.u32 %v3739_v58, %v2677_v59  ;;  %v3881_v59 = vld [vmem:[#allocation5 + $0x554] sm:$0xf0]  ;;  %v3799_v39 = vld [vmem:[#allocation5 + $0x2cc] sm:$0xf] }
  0x89   :  { %1554 = vmatpush.bf16.msra.mxu2 %v3028_v57  ;;  %3338 = vmatmul.msk.bf16.vlgmr.msrb.gmra.mxu0 %vm1310_vm0, %v4247_v50  ;;  %v3809_v57 = vld [vmem:[#allocation5 + $0x314] sm:$0xf0]  ;;  %v3172_v7 = vor.u32 %v3865_v63, %v3171_v62  ;;  %v3235_v58 = vld [vmem:[#allocation5 + $0x548] sm:$0xf]  ;;  %v3823_v11 = vld [vmem:[#allocation5 + $0x38c] sm:$0xf] }
  0x8a   :  { %1541 = vmatpush.bf16.msra.mxu0 %v2884_v3  ;;  %v3331_v3 = vld [vmem:[#allocation5 + $0x608] sm:$0xf] }
  0x8b   :  { %1514 = vmatpush.bf16.msrb.mxu1 %v2612_v5  ;;  %v2948_v5 = vor.u32 %v3809_v57, %v2947_v52  ;;  %v3849_v57 = vld [vmem:[#allocation5 + $0x454] sm:$0xf0] }
  0x8c   :  { %1528 = vmatpush.bf16.msrb.mxu3 %v2740_v10  ;;  %v2805_v10 = vld [vmem:[#allocation5 + $0x1f8] sm:$0xf0] }
  0x8d   :  { %1555 = vmatpush.bf16.msra.mxu2 %v3012_v4  ;;  %v3905_v4 = vld [vmem:[#allocation5 + $0x614] sm:$0xf0]  ;;  %v2808_v19 = vor.u32 %v3771_v9, %v2805_v10 }
  0x8e   :  { %1542 = vmatpush.bf16.msra.mxu0 %v2868_v16  ;;  %v3332_v13 = vor.u32 %v3905_v4, %v3331_v3  ;;  %v3861_v16 = vld [vmem:[#allocation5 + $0x4b4] sm:$0xf0]  ;;  %v3236_v3 = vor.u32 %v3881_v59, %v3235_v58  ;;  %v2597_v4 = vld [vmem:[#allocation5 + $0x58] sm:$0xf0]  ;;  %v3795_v58 = vld [vmem:[#allocation5 + $0x2ac] sm:$0xf] }
  0x8f   :  { %1515 = vmatpush.bf16.msrb.mxu1 %v2596_v18  ;;  %v3893_v18 = vld [vmem:[#allocation5 + $0x5b4] sm:$0xf0]  ;;  %v3156_v21 = vor.u32 %v3861_v16, %v3155_v15  ;;  %v3715_v15 = vld [vmem:[#allocation5 + $0x2c] sm:$0xf]  ;;  %v2581_v16 = vld [vmem:[#allocation5 + $0x38] sm:$0xf0] }
  0x90   :  { %1529 = vmatpush.bf16.msrb.mxu3 %v2724_v22  ;;  %v3767_v22 = vld [vmem:[#allocation5 + $0x1cc] sm:$0xf]  ;;  %v3877_v9 = vld [vmem:[#allocation5 + $0x534] sm:$0xf0]  ;;  %v2901_v59 = vld [vmem:[#allocation5 + $0x2b8] sm:$0xf0] }
  0x91   :  { %1556 = vmatpush.bf16.msra.mxu2 %v2996_v17  ;;  %v3283_v17 = vld [vmem:[#allocation5 + $0x5a8] sm:$0xf] }
  0x92   :  { %1543 = vmatpush.bf16.msra.mxu0 %v2852_v28  ;;  %v3284_v25 = vor.u32 %v3893_v18, %v3283_v17  ;;  %v3857_v28 = vld [vmem:[#allocation5 + $0x494] sm:$0xf0]  ;;  %v3075_v18 = vld [vmem:[#allocation5 + $0x408] sm:$0xf] }
  0x93   :  { %1516 = vmatpush.bf16.msrb.mxu1 %v2580_v31  ;;  %v2792_v31 = vor.u32 %v3767_v22, %v2789_v23  ;;  %v3140_v33 = vor.u32 %v3857_v28, %v3139_v27  ;;  %v3803_v22 = vld [vmem:[#allocation5 + $0x2ec] sm:$0xf]  ;;  %v2933_v23 = vld [vmem:[#allocation5 + $0x2f8] sm:$0xf0]  ;;  %v2584_v27 = vor.u32 %v3715_v15, %v2581_v16 }
  0x94   :  { %1530 = vmatpush.bf16.msrb.mxu3 %v2708_v35  ;;  %v2773_v35 = vld [vmem:[#allocation5 + $0x1b8] sm:$0xf0]  ;;  %v3891_v16 = vld [vmem:[#allocation5 + $0x5ac] sm:$0xf] }
  0x95   :  { %1557 = vmatpush.bf16.msra.mxu2 %v2980_v30  ;;  %v3889_v30 = vld [vmem:[#allocation5 + $0x594] sm:$0xf0]  ;;  %v2776_v45 = vor.u32 %v3763_v34, %v2773_v35  ;;  %v2565_v34 = vld [vmem:[#allocation5 + $0x18] sm:$0xf0]  ;;  %v3867_v35 = vld [vmem:[#allocation5 + $0x4ec] sm:$0xf] }
  0x96   :  { %1544 = vmatpush.bf16.msra.mxu0 %v2836_v44  ;;  %v3268_v38 = vor.u32 %v3889_v30, %v3267_v29  ;;  %v3885_v44 = vld [vmem:[#allocation5 + $0x574] sm:$0xf0]  ;;  %v3747_v29 = vld [vmem:[#allocation5 + $0x12c] sm:$0xf]  ;;  %v2709_v30 = vld [vmem:[#allocation5 + $0x138] sm:$0xf0] }
  0x97   :  { %1517 = vmatpush.bf16.msrb.mxu1 %v2564_v48  ;;  %v3759_v48 = vld [vmem:[#allocation5 + $0x18c] sm:$0xf]  ;;  %v3252_v52 = vor.u32 %v3885_v44, %v3251_v43  ;;  %v3045_v44 = vld [vmem:[#allocation5 + $0x3d8] sm:$0xf0] }
  0x98   :  { %1531 = vmatpush.bf16.msrb.mxu3 %v2692_v53  ;;  %v2613_v53 = vld [vmem:[#allocation5 + $0x78] sm:$0xf0]  ;;  %v3831_v43 = vld [vmem:[#allocation5 + $0x3cc] sm:$0xf] }
  0x99   :  { %1558 = vmatpush.bf16.msra.mxu2 %v2964_v47  ;;  %v3124_v47 = vor.u32 %v3853_v41, %v3123_v40  ;;  %v2616_v62 = vor.u32 %v3723_v51, %v2613_v53  ;;  %v2917_v40 = vld [vmem:[#allocation5 + $0x2d8] sm:$0xf0]  ;;  %v2712_v41 = vor.u32 %v3747_v29, %v2709_v30  ;;  %v3899_v51 = vld [vmem:[#allocation5 + $0x5ec] sm:$0xf] }
  0x9a   :  { %1545 = vmatpush.bf16.msra.mxu0 %v2820_v1  ;;  %1518 = vmatmul.bf16.vlgmr.msrb.gmra.mxu1 %v4237_v55  ;;  %v2741_v1 = vld [vmem:[#allocation5 + $0x178] sm:$0xf0]  ;;  %v3863_v53 = vld [vmem:[#allocation5 + $0x4cc] sm:$0xf] }
  0x9b   :  { %1566 = vmatpush.bf16.msra.mxu1 %v3188_v56  ;;  %1532 = vmatmul.bf16.vlgmr.msrb.gmra.mxu3 %v4243_v8  ;;  %v3107_v56 = vld [vmem:[#allocation5 + $0x448] sm:$0xf]  ;;  %v2744_v10 = vor.u32 %v3755_v0, %v2741_v1  ;;  %v3851_v29 = vld [vmem:[#allocation5 + $0x46c] sm:$0xf] }
  0x9c   :  { %1580 = vmatpush.bf16.msra.mxu3 %v3316_v61  ;;  %v2760_v61 = vor.u32 %v3759_v48, %v2757_v49  ;;  %v3108_v63 = vor.u32 %v3849_v57, %v3107_v56  ;;  %v2920_v49 = vor.u32 %v3799_v39, %v2917_v40  ;;  %v3048_v56 = vor.u32 %v3831_v43, %v3045_v44  ;;  %v3173_v57 = vld [vmem:[#allocation5 + $0x4d8] sm:$0xf0]  ;;  %v3883_v39 = vld [vmem:[#allocation5 + $0x56c] sm:$0xf] }
  0x9d   :  { %1559 = vmatpush.bf16.msra.mxu2 %v2948_v5  ;;  %1546 = vmatmul.bf16.vlgmr.msra.gmra.mxu0 %v4235_v54  ;;  %v3091_v5 = vld [vmem:[#allocation5 + $0x428] sm:$0xf]  ;;  %v3176_v1 = vor.u32 %v3863_v53, %v3173_v57  ;;  %v3253_v40 = vld [vmem:[#allocation5 + $0x578] sm:$0xf0] }
  0x9e   :  { %1601 = vmatpush.bf16.msrb.mxu0 %v3332_v13  ;;  %v3109_v44 = vld [vmem:[#allocation5 + $0x458] sm:$0xf0] }
  0x9f   :  { %1567 = vmatpush.bf16.msra.mxu1 %v3172_v7  ;;  %v3219_v7 = vld [vmem:[#allocation5 + $0x528] sm:$0xf]  ;;  %v3237_v57 = vld [vmem:[#allocation5 + $0x558] sm:$0xf0] }
  0xa0   :  { %1581 = vmatpush.bf16.msra.mxu3 %v3300_v12  ;;  %1560 = vmatmul.bf16.vlgmr.msra.gmra.mxu2 %v4239_v60  ;;  %v2600_v12 = vor.u32 %v3719_v2, %v2597_v4  ;;  %v3220_v17 = vor.u32 %v3877_v9, %v3219_v7  ;;  %v2904_v2 = vor.u32 %v3795_v58, %v2901_v59  ;;  %v3301_v4 = vld [vmem:[#allocation5 + $0x5d8] sm:$0xf0]  ;;  %v3791_v9 = vld [vmem:[#allocation5 + $0x28c] sm:$0xf] }
  0xa1   :  { %1608 = vmatpush.bf16.msrb.mxu2 %v2680_v6  ;;  %v3845_v6 = vld [vmem:[#allocation5 + $0x434] sm:$0xf0]  ;;  %v3157_v7 = vld [vmem:[#allocation5 + $0x4b8] sm:$0xf0]  ;;  %v3843_v58 = vld [vmem:[#allocation5 + $0x42c] sm:$0xf] }
  0xa2   :  { %1622 = vmatpush.bf16.msra.mxu0 %v2808_v19  ;;  %v3092_v13 = vor.u32 %v3845_v6, %v3091_v5  ;;  %v3841_v19 = vld [vmem:[#allocation5 + $0x414] sm:$0xf0]  ;;  %v3859_v5 = vld [vmem:[#allocation5 + $0x4ac] sm:$0xf]  ;;  %v3093_v59 = vld [vmem:[#allocation5 + $0x438] sm:$0xf0] }
  0xa3   :  { %1568 = vmatpush.bf16.msra.mxu1 %v3156_v21  ;;  %v3873_v21 = vld [vmem:[#allocation5 + $0x514] sm:$0xf0]  ;;  %v3076_v28 = vor.u32 %v3841_v19, %v3075_v18  ;;  %v3160_v14 = vor.u32 %v3859_v5, %v3157_v7  ;;  %v3855_v18 = vld [vmem:[#allocation5 + $0x48c] sm:$0xf]  ;;  %v3333_v5 = vld [vmem:[#allocation5 + $0x618] sm:$0xf0] }
  0xa4   :  { %1582 = vmatpush.bf16.msra.mxu3 %v3284_v25  ;;  %v3835_v25 = vld [vmem:[#allocation5 + $0x3ec] sm:$0xf] }
  0xa5   :  { %1609 = vmatpush.bf16.msrb.mxu2 %v2664_v20  ;;  %v3203_v20 = vld [vmem:[#allocation5 + $0x508] sm:$0xf]  ;;  %v3064_v36 = vor.u32 %v3835_v25, %v3061_v26 }
  0xa6   :  { %1623 = vmatpush.bf16.msra.mxu0 %v2792_v31  ;;  %v3204_v31 = vor.u32 %v3873_v21, %v3203_v20  ;;  %v3141_v20 = vld [vmem:[#allocation5 + $0x498] sm:$0xf0]  ;;  %v3787_v21 = vld [vmem:[#allocation5 + $0x26c] sm:$0xf] }
  0xa7   :  { %1569 = vmatpush.bf16.msra.mxu1 %v3140_v33  ;;  %v3711_v33 = vld [vmem:[#allocation5 + $0xc] sm:$0xf]  ;;  %v3144_v25 = vor.u32 %v3855_v18, %v3141_v20  ;;  %v3077_v18 = vld [vmem:[#allocation5 + $0x418] sm:$0xf0] }
  0xa8   :  { %1583 = vmatpush.bf16.msra.mxu3 %v3268_v38  ;;  %v3189_v38 = vld [vmem:[#allocation5 + $0x4f8] sm:$0xf0] }
  0xa9   :  { %1610 = vmatpush.bf16.msrb.mxu2 %v2648_v32  ;;  %v2936_v32 = vor.u32 %v3803_v22, %v2933_v23  ;;  %v3192_v48 = vor.u32 %v3867_v35, %v3189_v38  ;;  %v2869_v22 = vld [vmem:[#allocation5 + $0x278] sm:$0xf0]  ;;  %v3819_v23 = vld [vmem:[#allocation5 + $0x36c] sm:$0xf] }
  0xaa   :  { %1624 = vmatpush.bf16.msra.mxu0 %v2776_v45  ;;  %v2568_v45 = vor.u32 %v3711_v33, %v2565_v34  ;;  %v2872_v26 = vor.u32 %v3787_v21, %v2869_v22  ;;  %v2853_v33 = vld [vmem:[#allocation5 + $0x258] sm:$0xf0]  ;;  %v3815_v34 = vld [vmem:[#allocation5 + $0x34c] sm:$0xf]  ;;  %v3463_v21 = vld [vmem:[#allocation7 + $0xf0] sm:$0xf] }
  0xab   :  { %1570 = vmatpush.bf16.msra.mxu1 %v3124_v47  ;;  %v2693_v47 = vld [vmem:[#allocation5 + $0x118] sm:$0xf0]  ;;  %v3937_v22 = vld [vmem:[#allocation7 + $0xf4] sm:$0xf0] }
  0xac   :  { %1584 = vmatpush.bf16.msra.mxu3 %v3252_v52  ;;  %v3317_v52 = vld [vmem:[#allocation5 + $0x5f8] sm:$0xf0] }
  0xad   :  { %1611 = vmatpush.bf16.msrb.mxu2 %v2632_v46  ;;  %3339 = vmatmul.msk.bf16.vlgmr.msrb.gmra.mxu0 %vm1310_vm0, %v4247_v50  ;;  %v3743_v46 = vld [vmem:[#allocation5 + $0x10c] sm:$0xf]  ;;  %v3320_v0 = vor.u32 %v3899_v51, %v3317_v52  ;;  %v2981_v35 = vld [vmem:[#allocation5 + $0x358] sm:$0xf0]  ;;  %v4278_v52 = vld [vmem:[%s4350_s2] sm:$0xf] }
  0xae   :  { %1625 = vmatpush.bf16.msra.mxu0 %v2760_v61  ;;  %v2696_v61 = vor.u32 %v3743_v46, %v2693_v47  ;;  %v2984_v43 = vor.u32 %v3815_v34, %v2981_v35  ;;  %v2837_v46 = vld [vmem:[#allocation5 + $0x238] sm:$0xf0]  ;;  %v3811_v47 = vld [vmem:[#allocation5 + $0x32c] sm:$0xf]  ;;  %v3383_v35 = vld [vmem:[#allocation7 + $0x50] sm:$0xf] }
  0xaf   :  { %1571 = vmatpush.bf16.msra.mxu1 %v3108_v63  ;;  %v3029_v63 = vld [vmem:[#allocation5 + $0x3b8] sm:$0xf0]  ;;  %v3879_v51 = vld [vmem:[#allocation5 + $0x54c] sm:$0xf] }
  0xb0   :  { %1585 = vmatpush.bf16.msra.mxu3 %v3236_v3  ;;  %v3895_v3 = vld [vmem:[#allocation5 + $0x5cc] sm:$0xf]  ;;  %v3240_v7 = vor.u32 %v3879_v51, %v3237_v57 }
  0xb1   :  { %1612 = vmatpush.bf16.msrb.mxu2 %v2616_v62  ;;  %v3827_v62 = vld [vmem:[#allocation5 + $0x3ac] sm:$0xf] }
  0xb2   :  { %1626 = vmatpush.bf16.msra.mxu0 %v2744_v10  ;;  %v3032_v6 = vor.u32 %v3827_v62, %v3029_v63  ;;  %v2885_v10 = vld [vmem:[#allocation5 + $0x298] sm:$0xf0]  ;;  %v3775_v63 = vld [vmem:[#allocation5 + $0x20c] sm:$0xf] }
  0xb3   :  { %1572 = vmatpush.bf16.msra.mxu1 %v3092_v13  ;;  %v3304_v13 = vor.u32 %v3895_v3, %v3301_v4  ;;  %v2888_v15 = vor.u32 %v3791_v9, %v2885_v10  ;;  %v2949_v3 = vld [vmem:[#allocation5 + $0x318] sm:$0xf0]  ;;  %v3903_v4 = vld [vmem:[#allocation5 + $0x60c] sm:$0xf]  ;;  %v3399_v9 = vld [vmem:[#allocation7 + $0x70] sm:$0xf] }
  0xb4   :  { %1586 = vmatpush.bf16.msra.mxu3 %v3220_v17  ;;  %v3285_v17 = vld [vmem:[#allocation5 + $0x5b8] sm:$0xf0]  ;;  %v3921_v10 = vld [vmem:[#allocation7 + $0x74] sm:$0xf0] }
  0xb5   :  { %1613 = vmatpush.bf16.msrb.mxu2 %v2600_v12  ;;  %v3013_v12 = vld [vmem:[#allocation5 + $0x398] sm:$0xf0]  ;;  %v3400_v20 = vor.u32 %v3921_v10, %v3399_v9 }
  0xb6   :  { %1627 = vmatpush.bf16.msra.mxu0 %v2728_v24  ;;  %v3016_v19 = vor.u32 %v3823_v11, %v3013_v12  ;;  %v2997_v24 = vld [vmem:[#allocation5 + $0x378] sm:$0xf0]  ;;  %v3096_v11 = vor.u32 %v3843_v58, %v3093_v59  ;;  %v3367_v58 = vld [vmem:[#allocation7 + $0x30] sm:$0xf]  ;;  %v3913_v59 = vld [vmem:[#allocation7 + $0x34] sm:$0xf0] }
  0xb7   :  { %1573 = vmatpush.bf16.msra.mxu1 %v3076_v28  ;;  %v3269_v28 = vld [vmem:[#allocation5 + $0x598] sm:$0xf0]  ;;  %v3000_v30 = vor.u32 %v3819_v23, %v2997_v24  ;;  %v3391_v24 = vld [vmem:[#allocation7 + $0x60] sm:$0xf] }
  0xb8   :  { %1587 = vmatpush.bf16.msra.mxu3 %v3204_v31  ;;  %v3125_v31 = vld [vmem:[#allocation5 + $0x478] sm:$0xf0] }
  0xb9   :  { %1614 = vmatpush.bf16.msrb.mxu2 %v2584_v27  ;;  %v3887_v27 = vld [vmem:[#allocation5 + $0x58c] sm:$0xf] }
  0xba   :  { %1628 = vmatpush.bf16.msra.mxu0 %v2712_v41  ;;  %1574 = vmatmul.bf16.vlgmr.msra.gmra.mxu1 %v4251_v37  ;;  %v3847_v41 = vld [vmem:[#allocation5 + $0x44c] sm:$0xf] }
  0xbb   :  { %1636 = vmatpush.bf16.msrb.mxu1 %v2936_v32  ;;  %1588 = vmatmul.bf16.vlgmr.msra.gmra.mxu3 %v4253_v42  ;;  %v3783_v32 = vld [vmem:[#allocation5 + $0x24c] sm:$0xf]  ;;  %v3112_v53 = vor.u32 %v3847_v41, %v3109_v44 }
  0xbc   :  { %1650 = vmatpush.bf16.msrb.mxu3 %v3064_v36  ;;  %v3128_v36 = vor.u32 %v3851_v29, %v3125_v31  ;;  %v2856_v38 = vor.u32 %v3783_v32, %v2853_v33  ;;  %v3464_v29 = vor.u32 %v3937_v22, %v3463_v21  ;;  %v3455_v31 = vld [vmem:[#allocation7 + $0xe0] sm:$0xf]  ;;  %v3935_v32 = vld [vmem:[#allocation7 + $0xe4] sm:$0xf0]  ;;  %v3415_v22 = vld [vmem:[#allocation7 + $0x90] sm:$0xf] }
  0xbd   :  { %1615 = vmatpush.bf16.msrb.mxu2 %v2568_v45  ;;  %v3779_v45 = vld [vmem:[#allocation5 + $0x22c] sm:$0xf]  ;;  %v3456_v41 = vor.u32 %v3935_v32, %v3455_v31  ;;  %v3407_v32 = vld [vmem:[#allocation7 + $0x80] sm:$0xf] }
  0xbe   :  { %1629 = vmatpush.bf16.msra.mxu0 %v2696_v61  ;;  %v1323_v61 = vpop.f32.mrf.mxu0 }
  0xbf   :  { %1637 = vmatpush.bf16.msrb.mxu1 %v2920_v49  ;;  %v3256_v49 = vor.u32 %v3883_v39, %v3253_v40 }
  0xc0   :  { %1651 = vmatpush.bf16.msrb.mxu3 %v3048_v56  ;;  %1616 = vmatmul.bf16.vlgmr.msrb.gmra.mxu2 %v4237_v55  ;;  %v3288_v55 = vor.u32 %v3891_v16, %v3285_v17  ;;  %v2840_v56 = vor.u32 %v3779_v45, %v2837_v46  ;;  %v3839_v17 = vld [vmem:[#allocation5 + $0x40c] sm:$0xf]  ;;  %v1365_v39 = vpop.f32.mrf.mxu3  ;;  %v3447_v45 = vld [vmem:[#allocation7 + $0xd0] sm:$0xf]  ;;  %v3933_v46 = vld [vmem:[#allocation7 + $0xd4] sm:$0xf0] }
  0xc1   :  { %1664 = vmatpush.bf16.msra.mxu2 %v3192_v48  ;;  %1630 = vmatmul.bf16.vlgmr.msra.gmra.mxu0 %v4243_v8  ;;  %v3272_v8 = vor.u32 %v3887_v27, %v3269_v28  ;;  %v2965_v48 = vld [vmem:[#allocation5 + $0x338] sm:$0xf0] }
  0xc2   :  { %1678 = vmatpush.bf16.msrb.mxu0 %v3320_v0  ;;  %v2968_v62 = vor.u32 %v3811_v47, %v2965_v48  ;;  %v2821_v0 = vld [vmem:[#allocation5 + $0x218] sm:$0xf0]  ;;  %v3915_v47 = vld [vmem:[#allocation7 + $0x44] sm:$0xf0] }
  0xc3   :  { %1638 = vmatpush.bf16.msrb.mxu1 %v2904_v2  ;;  %v1337_v2 = vpop.f32.mrf.mxu1  ;;  %v2824_v12 = vor.u32 %v3775_v63, %v2821_v0  ;;  %v3205_v27 = vld [vmem:[#allocation5 + $0x518] sm:$0xf0] }
  0xc4   :  { %1652 = vmatpush.bf16.msrb.mxu3 %v3032_v6  ;;  %v1351_v6 = vpop.f32.mrf.mxu2 }
  0xc5   :  { %1665 = vmatpush.bf16.msra.mxu2 %v3176_v1  ;;  %v3807_v1 = vld [vmem:[#allocation5 + $0x30c] sm:$0xf] }
  0xc6   :  { %1679 = vmatpush.bf16.msrb.mxu0 %v3304_v13  ;;  %v3875_v13 = vld [vmem:[#allocation5 + $0x52c] sm:$0xf]  ;;  %v2952_v16 = vor.u32 %v3807_v1, %v2949_v3  ;;  %v1325_v33 = vpop.f32.mrf.mxu0  ;;  %v3368_v1 = vor.u32 %v3913_v59, %v3367_v58  ;;  %v3929_v3 = vld [vmem:[#allocation7 + $0xb4] sm:$0xf0]  ;;  %v3914_v58 = vld [vmem:[#allocation7 + $0x44] sm:$0xf] }
  0xc7   :  { %1639 = vmatpush.bf16.msrb.mxu1 %v2888_v15  ;;  %v322_v15 = vperm.slane %v4278_v52, 0  ;;  %v3377_v59 = vld [vmem:[#allocation7 + $0x48] sm:$0xf0] }
  0xc8   :  { %1653 = vmatpush.bf16.msrb.mxu3 %v3016_v19  ;;  %v3336_v19 = vor.u32 %v3903_v4, %v3333_v5  ;;  %v1367_v4 = vpop.f32.mrf.mxu3 }
  0xc9   :  { %1666 = vmatpush.bf16.msra.mxu2 %v3160_v14  ;;  %v3221_v14 = vld [vmem:[#allocation5 + $0x538] sm:$0xf0]  ;;  %v1324_v28 = vadd.f32 %v1323_v61, %v322_v15 }
  0xca   :  { %1680 = vmatpush.bf16.msrb.mxu0 %v3288_v55  ;;  %v3224_v23 = vor.u32 %v3875_v13, %v3221_v14  ;;  %v3919_v55 = vld [vmem:[#allocation7 + $0x64] sm:$0xf0] }
  0xcb   :  { %1640 = vmatpush.bf16.msrb.mxu1 %v2872_v26  ;;  %v3871_v26 = vld [vmem:[#allocation5 + $0x50c] sm:$0xf] }
  0xcc   :  { %1654 = vmatpush.bf16.msrb.mxu3 %v3000_v30  ;;  %v3392_v30 = vor.u32 %v3919_v55, %v3391_v24  ;;  %v3208_v34 = vor.u32 %v3871_v26, %v3205_v27  ;;  %v1353_v40 = vpop.f32.mrf.mxu2  ;;  %v3907_v26 = vld [vmem:[#allocation7 + $0x4] sm:$0xf0] }
  0xcd   :  { %1667 = vmatpush.bf16.msra.mxu2 %v3144_v25  ;;  %v3080_v25 = vor.u32 %v3839_v17, %v3077_v18 }
  0xce   :  { %1681 = vmatpush.bf16.msrb.mxu0 %v3272_v8  ;;  %v3917_v8 = vld [vmem:[#allocation7 + $0x54] sm:$0xf0] }
  0xcf   :  { %1641 = vmatpush.bf16.msrb.mxu1 %v2856_v38  ;;  %v1338_v38 = vadd.f32 %v1337_v2, %v1324_v28  ;;  %v3384_v44 = vor.u32 %v3917_v8, %v3383_v35  ;;  %v3431_v2 = vld [vmem:[#allocation7 + $0xb0] sm:$0xf]  ;;  %v3920_v28 = vld [vmem:[#allocation7 + $0x74] sm:$0xf] }
  0xd0   :  { %1655 = vmatpush.bf16.msrb.mxu3 %v2984_v43  ;;  %v1326_v43 = vadd.f32 %v1325_v33, %v322_v15  ;;  %v3351_v15 = vld [vmem:[#allocation7 + $0x10] sm:$0xf]  ;;  %v3923_v33 = vld [vmem:[#allocation7 + $0x84] sm:$0xf0]  ;;  %v3936_v8 = vld [vmem:[#allocation7 + $0xf4] sm:$0xf] }
  0xd1   :  { %1668 = vmatpush.bf16.msra.mxu2 %v3128_v36  ;;  %v1339_v36 = vpop.f32.mrf.mxu1  ;;  %v1352_v48 = vadd.f32 %v1351_v6, %v1338_v38  ;;  %v3911_v6 = vld [vmem:[#allocation7 + $0x24] sm:$0xf0] }
  0xd2   :  { %1682 = vmatpush.bf16.msrb.mxu0 %v3256_v49  ;;  %v3448_v49 = vor.u32 %v3933_v46, %v3447_v45 }
  0xd3   :  { %1642 = vmatpush.bf16.msrb.mxu1 %v2840_v56  ;;  %v3931_v56 = vld [vmem:[#allocation7 + $0xc4] sm:$0xf0] }
  0xd4   :  { %1656 = vmatpush.bf16.msrb.mxu3 %v2968_v62  ;;  %v1366_v62 = vadd.f32 %v1365_v39, %v1352_v48  ;;  %v1407_v63 = vpop.f32.mrf.mxu2  ;;  %v3918_v39 = vld [vmem:[#allocation7 + $0x64] sm:$0xf]  ;;  %v3916_v48 = vld [vmem:[#allocation7 + $0x54] sm:$0xf] }
  0xd5   :  { %1669 = vmatpush.bf16.msra.mxu2 %v3112_v53  ;;  %v3439_v53 = vld [vmem:[#allocation7 + $0xc0] sm:$0xf] }
  0xd6   :  { %1683 = vmatpush.bf16.msrb.mxu0 %v3240_v7  ;;  %v1379_v57 = vpop.f32.mrf.mxu0  ;;  %v3432_v7 = vor.u32 %v3929_v3, %v3431_v2  ;;  %v3912_v2 = vld [vmem:[#allocation7 + $0x34] sm:$0xf]  ;;  %v3369_v3 = vld [vmem:[#allocation7 + $0x38] sm:$0xf0] }
  0xd7   :  { %1643 = vmatpush.bf16.msrb.mxu1 %v2824_v12  ;;  %v1380_v5 = vadd.f32 %v1379_v57, %v1366_v62  ;;  %v3927_v12 = vld [vmem:[#allocation7 + $0xa4] sm:$0xf0]  ;;  %v323_v57 = vperm.slane %v4278_v52, 1 }
  0xd8   :  { %1657 = vmatpush.bf16.msrb.mxu3 %v2952_v16  ;;  %v3909_v16 = vld [vmem:[#allocation7 + $0x14] sm:$0xf0] }
  0xd9   :  { %1670 = vmatpush.bf16.msra.mxu2 %v3096_v11  ;;  %v1393_v61 = vpop.f32.mrf.mxu1  ;;  %v3423_v11 = vld [vmem:[#allocation7 + $0xa0] sm:$0xf]  ;;  %v3352_v21 = vor.u32 %v3909_v16, %v3351_v15  ;;  %v3527_v15 = vld [vmem:[#allocation7 + $0x170] sm:$0xf]  ;;  %v3953_v16 = vld [vmem:[#allocation7 + $0x174] sm:$0xf0] }
  0xda   :  { %1684 = vmatpush.bf16.msrb.mxu0 %v3224_v23  ;;  %1644 = vmatmul.bf16.vlgmr.msrb.gmra.mxu1 %v4235_v54  ;;  %v3375_v54 = vld [vmem:[#allocation7 + $0x40] sm:$0xf]  ;;  %v1394_v13 = vadd.f32 %v1393_v61, %v1380_v5  ;;  %v3925_v23 = vld [vmem:[#allocation7 + $0x94] sm:$0xf0] }
  0xdb   :  { %1699 = vmatpush.bf16.msra.mxu1 %v3336_v19  ;;  %1658 = vmatmul.bf16.vlgmr.msrb.gmra.mxu3 %v4239_v60  ;;  %v1340_v60 = vadd.f32 %v1339_v36, %v1326_v43  ;;  %v3376_v51 = vor.u32 %v3915_v47, %v3375_v54  ;;  %v3424_v19 = vor.u32 %v3927_v12, %v3423_v11  ;;  %v3465_v36 = vld [vmem:[#allocation7 + $0xf8] sm:$0xf0]  ;;  %v3934_v54 = vld [vmem:[#allocation7 + $0xe4] sm:$0xf]  ;;  %v3457_v47 = vld [vmem:[#allocation7 + $0xe8] sm:$0xf0] }
  0xdc   :  { %2108 = vmatpush.bf16.msra.mxu3 %v3400_v20  ;;  %v1408_v24 = vadd.f32 %v1407_v63, %v1394_v13  ;;  %v1409_v55 = vpop.f32.mrf.mxu2  ;;  %v3408_v43 = vor.u32 %v3923_v33, %v3407_v32  ;;  %v3380_v63 = vor.u32 %v3914_v58, %v3377_v59  ;;  %v3906_v32 = vld [vmem:[#allocation7 + $0x4] sm:$0xf]  ;;  %v3924_v33 = vld [vmem:[#allocation7 + $0x94] sm:$0xf]  ;;  %v3495_v58 = vld [vmem:[#allocation7 + $0x130] sm:$0xf] }
  0xdd   :  { %1671 = vmatpush.bf16.msra.mxu2 %v3080_v25  ;;  %v1354_v0 = vadd.f32 %v1353_v40, %v1340_v60  ;;  %v3343_v25 = vld [vmem:[#allocation7] sm:$0xf]  ;;  %v3393_v40 = vld [vmem:[#allocation7 + $0x68] sm:$0xf0]  ;;  %v3460_v60 = vor.u32 %v3934_v54, %v3457_v47  ;;  %v3945_v59 = vld [vmem:[#allocation7 + $0x134] sm:$0xf0] }
  0xde   :  { %1685 = vmatpush.bf16.msrb.mxu0 %v3208_v34  ;;  %v1381_v14 = vpop.f32.mrf.mxu0  ;;  %v3344_v31 = vor.u32 %v3907_v26, %v3343_v25  ;;  %v1706_v34 = vmax.f32 %v1408_v24, 0.0  ;;  %v1421_v38 = vpop.f32.mrf.mxu3  ;;  %v3396_v46 = vor.u32 %v3918_v39, %v3393_v40  ;;  %v3353_v25 = vld [vmem:[#allocation7 + $0x18] sm:$0xf0]  ;;  %v3519_v26 = vld [vmem:[#allocation7 + $0x160] sm:$0xf] }
  0xdf   :  { %2122 = vmatpush.bf16.msrb.mxu1 %v3464_v29  ;;  %v1368_v9 = vadd.f32 %v1367_v4, %v1354_v0  ;;  %v3401_v29 = vld [vmem:[#allocation7 + $0x78] sm:$0xf0]  ;;  %v3441_v0 = vld [vmem:[#allocation7 + $0xc8] sm:$0xf0]  ;;  %v3949_v39 = vld [vmem:[#allocation7 + $0x154] sm:$0xf0] }
  0xe0   :  { %2109 = vmatpush.bf16.msra.mxu3 %v3392_v30  ;;  %1672 = vmatmul.bf16.vlgmr.msra.gmra.mxu2 %v4251_v37  ;;  %v3440_v37 = vor.u32 %v3931_v56, %v3439_v53  ;;  %v3404_v35 = vor.u32 %v3920_v28, %v3401_v29  ;;  %v3932_v53 = vld [vmem:[#allocation7 + $0xd4] sm:$0xf]  ;;  %v3449_v56 = vld [vmem:[#allocation7 + $0xd8] sm:$0xf0]  ;;  %v3409_v54 = vld [vmem:[#allocation7 + $0x88] sm:$0xf0] }
  0xe1   :  { %1686 = vmatmul.bf16.vlgmr.msrb.gmra.mxu0 %v4253_v42  ;;  %v3359_v42 = vld [vmem:[#allocation7 + $0x20] sm:$0xf]  ;;  %v1382_v17 = vadd.f32 %v1381_v14, %v1368_v9  ;;  %v1395_v18 = vpop.f32.mrf.mxu1  ;;  %v3452_v62 = vor.u32 %v3932_v53, %v3449_v56  ;;  %v3928_v9 = vld [vmem:[#allocation7 + $0xb4] sm:$0xf]  ;;  %v3361_v14 = vld [vmem:[#allocation7 + $0x28] sm:$0xf0] }
  0xe2   :  { %v3360_v10 = vor.u32 %v3911_v6, %v3359_v42  ;;  %v3372_v6 = vor.u32 %v3912_v2, %v3369_v3 }
  0xe3   :  { %2123 = vmatpush.bf16.msrb.mxu1 %v3456_v41  ;;  %v1396_v20 = vadd.f32 %v1395_v18, %v1382_v17  ;;  %v3528_v17 = vor.u32 %v3953_v16, %v3527_v15  ;;  %v3529_v16 = vld [vmem:[#allocation7 + $0x178] sm:$0xf0] }
  0xe4   :  { %2110 = vmatpush.bf16.msra.mxu3 %v3384_v44  ;;  %v3468_v44 = vor.u32 %v3936_v8, %v3465_v36  ;;  %v1435_v45 = vpop.f32.mrf.mxu2  ;;  %v3345_v36 = vld [vmem:[#allocation7 + $0x8] sm:$0xf0] }
  0xe5   :  { %v1410_v27 = vadd.f32 %v1409_v55, %v1396_v20  ;;  %v3908_v20 = vld [vmem:[#allocation7 + $0x14] sm:$0xf]  ;;  %2136 = vmatpush.bf16.msrb.mxu2 %v3528_v17 }
  0xe6   :  { %v1423_v61 = vpop.f32.mrf.mxu3 }
  0xe7   :  { %2124 = vmatpush.bf16.msrb.mxu1 %v3448_v49  ;;  %v1710_v30 = vmax.f32 %v1410_v27, 0.0  ;;  %v3385_v49 = vld [vmem:[#allocation7 + $0x58] sm:$0xf0]  ;;  %v1424_v12 = vadd.f32 %v1423_v61, %v323_v57  ;;  %v3951_v27 = vld [vmem:[#allocation7 + $0x164] sm:$0xf0]  ;;  %v3496_v61 = vor.u32 %v3945_v59, %v3495_v58 }
  0xe8   :  { %2111 = vmatpush.bf16.msra.mxu3 %v3376_v51  ;;  %v3388_v51 = vor.u32 %v3916_v48, %v3385_v49  ;;  %v3520_v29 = vor.u32 %v3951_v27, %v3519_v26  ;;  %v3503_v49 = vld [vmem:[#allocation7 + $0x140] sm:$0xf]  ;;  %v3513_v26 = vld [vmem:[#allocation7 + $0x158] sm:$0xf0] }
  0xe9   :  { %v4287_v41 = vpack.c.bf16 %v1710_v30, %v1706_v34  ;;  %v3417_v34 = vld [vmem:[#allocation7 + $0x98] sm:$0xf0] }
  0xea   :  { %3340 = vmatmul.msk.bf16.vlgmr.msra.gmra.mxu1 %vm1310_vm0, %v4247_v50  ;;  %v3416_v50 = vor.u32 %v3925_v23, %v3415_v22  ;;  %v3425_v22 = vld [vmem:[#allocation7 + $0xa8] sm:$0xf0]  ;;  %2137 = vmatpush.bf16.msrb.mxu2 %v3520_v29  ;;  %v3967_v29 = vld [vmem:[#allocation7 + $0x1e4] sm:$0xf0] }
  0xeb   :  { %2125 = vmatpush.bf16.msrb.mxu1 %v3440_v37  ;;  %v3930_v37 = vld [vmem:[#allocation7 + $0xc4] sm:$0xf] }
  0xec   :  { %2112 = vmatpush.bf16.msra.mxu3 %v3368_v1  ;;  %v1422_v1 = vadd.f32 %v1421_v38, %v323_v57  ;;  %v1437_v5 = vpop.f32.mrf.mxu2  ;;  %v3444_v42 = vor.u32 %v3930_v37, %v3441_v0  ;;  %v3511_v38 = vld [vmem:[#allocation7 + $0x150] sm:$0xf]  ;;  %v3487_v37 = vld [vmem:[#allocation7 + $0x120] sm:$0xf]  ;;  %v3943_v0 = vld [vmem:[#allocation7 + $0x124] sm:$0xf0] }
  0xed   :  { %v1438_v24 = vadd.f32 %v1437_v5, %v1424_v12  ;;  %v3488_v2 = vor.u32 %v3943_v0, %v3487_v37 }
  0xee   :  { %v1436_v11 = vadd.f32 %v1435_v45, %v1422_v1  ;;  %v3348_v45 = vor.u32 %v3906_v32, %v3345_v36 }
  0xef   :  { %2126 = vmatpush.bf16.msrb.mxu1 %v3432_v7  ;;  %v3910_v7 = vld [vmem:[#allocation7 + $0x24] sm:$0xf] }
  0xf0   :  { %2113 = vmatpush.bf16.msra.mxu3 %v3360_v10  ;;  %v3433_v10 = vld [vmem:[#allocation7 + $0xb8] sm:$0xf0] }
  0xf1   :  { %v3436_v18 = vor.u32 %v3928_v9, %v3433_v10  ;;  %v3479_v9 = vld [vmem:[#allocation7 + $0x110] sm:$0xf]  ;;  %v3941_v10 = vld [vmem:[#allocation7 + $0x114] sm:$0xf0] }
  0xf3   :  { %2127 = vmatpush.bf16.msrb.mxu1 %v3424_v19  ;;  %v3364_v19 = vor.u32 %v3910_v7, %v3361_v14  ;;  %v3939_v14 = vld [vmem:[#allocation7 + $0x104] sm:$0xf0] }
  0xf4   :  { %2114 = vmatpush.bf16.msra.mxu3 %v3352_v21  ;;  %v3926_v21 = vld [vmem:[#allocation7 + $0xa4] sm:$0xf] }
  0xf6   :  { %v1449_v4 = vpop.f32.mrf.mxu0 }
  0xf7   :  { %2128 = vmatpush.bf16.msrb.mxu1 %v3416_v50  ;;  %v1463_v13 = vpop.f32.mrf.mxu1  ;;  %v1450_v23 = vadd.f32 %v1449_v4, %v1436_v11  ;;  %v3428_v50 = vor.u32 %v3926_v21, %v3425_v22  ;;  %v3480_v11 = vor.u32 %v3941_v10, %v3479_v9  ;;  %v3591_v21 = vld [vmem:[#allocation7 + $0x1f0] sm:$0xf]  ;;  %v3969_v22 = vld [vmem:[#allocation7 + $0x1f4] sm:$0xf0] }
  0xf8   :  { %2115 = vmatpush.bf16.msra.mxu3 %v3344_v31  ;;  %v3356_v31 = vor.u32 %v3908_v20, %v3353_v25  ;;  %v3592_v25 = vor.u32 %v3969_v22, %v3591_v21  ;;  %v3543_v10 = vld [vmem:[#allocation7 + $0x190] sm:$0xf]  ;;  %v3968_v22 = vld [vmem:[#allocation7 + $0x1f4] sm:$0xf] }
  0xfa   :  { %2150 = vmatpush.bf16.msra.mxu0 %v3592_v25 }
  0xfb   :  { %2116 = vmatmul.bf16.vlgmr.msra.gmra.mxu3 %v4287_v41  ;;  %2129 = vmatpush.bf16.msrb.mxu1 %v3408_v43  ;;  %v3512_v43 = vor.u32 %v3949_v39, %v3511_v38  ;;  %v3944_v38 = vld [vmem:[#allocation7 + $0x134] sm:$0xf]  ;;  %v3497_v39 = vld [vmem:[#allocation7 + $0x138] sm:$0xf0] }
  0xfc   :  { %2164 = vmatpush.bf16.msrb.mxu3 %v3404_v35  ;;  %v1464_v35 = vadd.f32 %v1463_v13, %v1450_v23  ;;  %v3471_v13 = vld [vmem:[#allocation7 + $0x100] sm:$0xf]  ;;  %v3948_v23 = vld [vmem:[#allocation7 + $0x154] sm:$0xf] }
  0xfd   :  { %2138 = vmatpush.bf16.msrb.mxu2 %v3512_v43  ;;  %v3472_v15 = vor.u32 %v3939_v14, %v3471_v13  ;;  %v3516_v27 = vor.u32 %v3948_v23, %v3513_v26  ;;  %v3567_v43 = vld [vmem:[#allocation7 + $0x1c0] sm:$0xf]  ;;  %v3593_v23 = vld [vmem:[#allocation7 + $0x1f8] sm:$0xf0] }
  0xfe   :  { %v1477_v55 = vpop.f32.mrf.mxu3  ;;  %v1451_v28 = vpop.f32.mrf.mxu0  ;;  %v3596_v25 = vor.u32 %v3968_v22, %v3593_v23 }
  0xff   :  { %2178 = vmatpush.bf16.msra.mxu1 %v3468_v44  ;;  %v1452_v8 = vadd.f32 %v1451_v28, %v1438_v24  ;;  %v1465_v40 = vpop.f32.mrf.mxu1  ;;  %v3420_v44 = vor.u32 %v3924_v33, %v3417_v34  ;;  %v1478_v47 = vadd.f32 %v1477_v55, %v1464_v35  ;;  %v3583_v28 = vld [vmem:[#allocation7 + $0x1e0] sm:$0xf]  ;;  %v3575_v34 = vld [vmem:[#allocation7 + $0x1d0] sm:$0xf]  ;;  %v3965_v35 = vld [vmem:[#allocation7 + $0x1d4] sm:$0xf0] }
 0x100   :  { %2165 = vmatpush.bf16.msrb.mxu3 %v3396_v46  ;;  %v3922_v46 = vld [vmem:[#allocation7 + $0x84] sm:$0xf]  ;;  %v3576_v36 = vor.u32 %v3965_v35, %v3575_v34  ;;  %v3577_v34 = vld [vmem:[#allocation7 + $0x1d8] sm:$0xf0] }
 0x101   :  { %v1466_v48 = vadd.f32 %v1465_v40, %v1452_v8  ;;  %v3412_v57 = vor.u32 %v3922_v46, %v3409_v54  ;;  %v324_v8 = vperm.slane %v4278_v52, 2  ;;  %v3500_v40 = vor.u32 %v3944_v38, %v3497_v39 }
 0x103   :  { %2179 = vmatpush.bf16.msra.mxu1 %v3460_v60  ;;  %v1491_v30 = vpop.f32.mrf.mxu2  ;;  %v3947_v60 = vld [vmem:[#allocation7 + $0x144] sm:$0xf0] }
 0x104   :  { %2166 = vmatpush.bf16.msrb.mxu3 %v3388_v51  ;;  %v3504_v56 = vor.u32 %v3947_v60, %v3503_v49 }
 0x106   :  { %v1479_v51 = vpop.f32.mrf.mxu3  ;;  %v1505_v53 = vpop.f32.mrf.mxu0  ;;  %2139 = vmatpush.bf16.msrb.mxu2 %v3504_v56  ;;  %v3940_v56 = vld [vmem:[#allocation7 + $0x114] sm:$0xf] }
 0x107   :  { %2180 = vmatpush.bf16.msra.mxu1 %v3452_v62  ;;  %v1492_v62 = vadd.f32 %v1491_v30, %v1478_v47  ;;  %v3584_v30 = vor.u32 %v3967_v29, %v3583_v28  ;;  %v3966_v28 = vld [vmem:[#allocation7 + $0x1e4] sm:$0xf]  ;;  %v3585_v29 = vld [vmem:[#allocation7 + $0x1e8] sm:$0xf0] }
 0x108   :  { %2167 = vmatpush.bf16.msrb.mxu3 %v3380_v63  ;;  %v1480_v63 = vadd.f32 %v1479_v51, %v1466_v48  ;;  %v3489_v48 = vld [vmem:[#allocation7 + $0x128] sm:$0xf0]  ;;  %v3559_v51 = vld [vmem:[#allocation7 + $0x1b0] sm:$0xf] }
 0x109   :  { %v1506_v3 = vadd.f32 %v1505_v53, %v1492_v62  ;;  %2151 = vmatpush.bf16.msra.mxu0 %v3584_v30  ;;  %v3961_v53 = vld [vmem:[#allocation7 + $0x1b4] sm:$0xf0] }
 0x10a   :  { %2140 = vmatpush.bf16.msrb.mxu2 %v3496_v61  ;;  %v3560_v59 = vor.u32 %v3961_v53, %v3559_v51  ;;  %v3481_v61 = vld [vmem:[#allocation7 + $0x118] sm:$0xf0]  ;;  %v3958_v53 = vld [vmem:[#allocation7 + $0x1a4] sm:$0xf] }
 0x10b   :  { %2181 = vmatpush.bf16.msra.mxu1 %v3444_v42  ;;  %v1493_v1 = vpop.f32.mrf.mxu2  ;;  %v3484_v37 = vor.u32 %v3940_v56, %v3481_v61  ;;  %v3553_v56 = vld [vmem:[#allocation7 + $0x1a8] sm:$0xf0]  ;;  %v3545_v61 = vld [vmem:[#allocation7 + $0x198] sm:$0xf0] }
 0x10c   :  { %2168 = vmatpush.bf16.msrb.mxu3 %v3372_v6  ;;  %v1494_v4 = vadd.f32 %v1493_v1, %v1480_v63  ;;  %v1707_v6 = vmax.f32 %v1506_v3, 0.0  ;;  %v3959_v3 = vld [vmem:[#allocation7 + $0x1a4] sm:$0xf0] }
 0x10d   :  { %2152 = vmatpush.bf16.msra.mxu0 %v3576_v36 }
 0x10e   :  { %v1507_v5 = vpop.f32.mrf.mxu0  ;;  %2141 = vmatpush.bf16.msrb.mxu2 %v3488_v2  ;;  %v3551_v2 = vld [vmem:[#allocation7 + $0x1a0] sm:$0xf] }
 0x10f   :  { %2182 = vmatpush.bf16.msra.mxu1 %v3436_v18  ;;  %v1508_v42 = vadd.f32 %v1507_v5, %v1494_v4  ;;  %v3950_v18 = vld [vmem:[#allocation7 + $0x164] sm:$0xf]  ;;  %v3552_v5 = vor.u32 %v3959_v3, %v3551_v2  ;;  %v3537_v3 = vld [vmem:[#allocation7 + $0x188] sm:$0xf0] }
 0x110   :  { %2169 = vmatpush.bf16.msrb.mxu3 %v3364_v19  ;;  %v3521_v19 = vld [vmem:[#allocation7 + $0x168] sm:$0xf0]  ;;  %v3938_v4 = vld [vmem:[#allocation7 + $0x104] sm:$0xf] }
 0x111   :  { %v1711_v7 = vmax.f32 %v1508_v42, 0.0  ;;  %v3524_v20 = vor.u32 %v3950_v18, %v3521_v19  ;;  %v3473_v42 = vld [vmem:[#allocation7 + $0x108] sm:$0xf0]  ;;  %v3955_v18 = vld [vmem:[#allocation7 + $0x184] sm:$0xf0] }
 0x112   :  { %2142 = vmatpush.bf16.msrb.mxu2 %v3480_v11  ;;  %v3476_v9 = vor.u32 %v3938_v4, %v3473_v42  ;;  %v3957_v11 = vld [vmem:[#allocation7 + $0x194] sm:$0xf0] }
 0x113   :  { %2183 = vmatpush.bf16.msra.mxu1 %v3428_v50  ;;  %v1715_v12 = vpack.c.bf16 %v1711_v7, %v1707_v6  ;;  %v3946_v50 = vld [vmem:[#allocation7 + $0x144] sm:$0xf]  ;;  %v3544_v13 = vor.u32 %v3957_v11, %v3543_v10 }
 0x114   :  { %2170 = vmatpush.bf16.msrb.mxu3 %v3356_v31  ;;  %v3505_v31 = vld [vmem:[#allocation7 + $0x148] sm:$0xf0] }
 0x115   :  { %2130 = vmatmul.bf16.vlgmr.msrb.gmra.mxu1 %v1715_v12  ;;  %v3508_v32 = vor.u32 %v3946_v50, %v3505_v31  ;;  %v3588_v31 = vor.u32 %v3966_v28, %v3585_v29  ;;  %v3985_v28 = vld [vmem:[#allocation8 + $0x78] sm:$0xff]  ;;  %v3972_v29 = vld [vmem:[#allocation8 + $0x10] sm:$0xff] }
 0x116   :  { %2143 = vmatpush.bf16.msrb.mxu2 %v3472_v15 }
 0x117   :  { %2184 = vmatpush.bf16.msra.mxu1 %v3420_v44  ;;  %v1519_v24 = vpop.f32.mrf.mxu1  ;;  %v3963_v44 = vld [vmem:[#allocation7 + $0x1c4] sm:$0xf0] }
 0x118   :  { %2171 = vmatpush.bf16.msrb.mxu3 %v3348_v45  ;;  %v3942_v45 = vld [vmem:[#allocation7 + $0x124] sm:$0xf]  ;;  %v3568_v47 = vor.u32 %v3963_v44, %v3567_v43  ;;  %v1520_v60 = vadd.f32 %v1519_v24, %v324_v8  ;;  %v3569_v44 = vld [vmem:[#allocation7 + $0x1c8] sm:$0xf0] }
 0x119   :  { %v3492_v49 = vor.u32 %v3942_v45, %v3489_v48  ;;  %v3962_v43 = vld [vmem:[#allocation7 + $0x1c4] sm:$0xf] }
 0x11a   :  { %v1547_v55 = vpop.f32.mrf.mxu0  ;;  %2153 = vmatpush.bf16.msra.mxu0 %v3568_v47  ;;  %v3572_v45 = vor.u32 %v3962_v43, %v3569_v44  ;;  %v325_v47 = vperm.slane %v4278_v52, 3  ;;  %v3954_v52 = vld [vmem:[#allocation7 + $0x184] sm:$0xf] }
 0x11b   :  { %2172 = vmatmul.bf16.vlgmr.msrb.gmra.mxu3 %v4287_v41  ;;  %2185 = vmatpush.bf16.msra.mxu1 %v3412_v57  ;;  %v3952_v41 = vld [vmem:[#allocation7 + $0x174] sm:$0xf]  ;;  %v3978_v43 = vld [vmem:[#allocation8 + $0x40] sm:$0xff] }
 0x11c   :  { %v3532_v17 = vor.u32 %v3952_v41, %v3529_v16 }
 0x11e   :  { %2192 = vmatpush.bf16.msra.mxu2 %v3532_v17  ;;  %v1533_v33 = vpop.f32.mrf.mxu3  ;;  %2154 = vmatpush.bf16.msra.mxu0 %v3560_v59  ;;  %v3535_v17 = vld [vmem:[#allocation7 + $0x180] sm:$0xf]  ;;  %v3956_v59 = vld [vmem:[#allocation7 + $0x194] sm:$0xf] }
 0x11f   :  { %v1521_v46 = vpop.f32.mrf.mxu1  ;;  %v1534_v62 = vadd.f32 %v1533_v33, %v1520_v60  ;;  %v3536_v21 = vor.u32 %v3955_v18, %v3535_v17  ;;  %v3964_v33 = vld [vmem:[#allocation7 + $0x1d4] sm:$0xf]  ;;  %2372 = vmatpush.bf16.msrb.mxu1 %v3985_v28 }
 0x120   :  { %v1522_v63 = vadd.f32 %v1521_v46, %v324_v8  ;;  %v3580_v36 = vor.u32 %v3964_v33, %v3577_v34  ;;  %v3960_v46 = vld [vmem:[#allocation7 + $0x1b4] sm:$0xf]  ;;  %v3982_v33 = vld [vmem:[#allocation8 + $0x60] sm:$0xff]  ;;  %v3981_v34 = vld [vmem:[#allocation8 + $0x58] sm:$0xff] }
 0x121   :  { %v1548_v6 = vadd.f32 %v1547_v55, %v1534_v62  ;;  %v3548_v62 = vor.u32 %v3956_v59, %v3545_v61 }
 0x122   :  { %2193 = vmatpush.bf16.msra.mxu2 %v3524_v20  ;;  %v1549_v54 = vpop.f32.mrf.mxu0  ;;  %2155 = vmatpush.bf16.msra.mxu0 %v3552_v5  ;;  %v3540_v5 = vor.u32 %v3954_v52, %v3537_v3 }
 0x123   :  { %v1561_v57 = vpop.f32.mrf.mxu2 }
 0x124   :  { %v1562_v14 = vadd.f32 %v1561_v57, %v1548_v6 }
 0x125   :  { %2186 = vmatmul.bf16.vlgmr.msra.gmra.mxu1 %v1715_v12 }
 0x126   :  { %2194 = vmatpush.bf16.msra.mxu2 %v3516_v27  ;;  %v1535_v58 = vpop.f32.mrf.mxu3  ;;  %2156 = vmatpush.bf16.msra.mxu0 %v3544_v13 }
 0x127   :  { %v1536_v7 = vadd.f32 %v1535_v58, %v1522_v63  ;;  %v3556_v58 = vor.u32 %v3958_v53, %v3553_v56 }
 0x129   :  { %v1550_v15 = vadd.f32 %v1549_v54, %v1536_v7  ;;  %v3561_v54 = vld [vmem:[#allocation7 + $0x1b8] sm:$0xf0] }
 0x12a   :  { %2195 = vmatpush.bf16.msra.mxu2 %v3508_v32  ;;  %v1603_v1 = vpop.f32.mrf.mxu0  ;;  %2157 = vmatpush.bf16.msra.mxu0 %v3536_v21  ;;  %v3564_v48 = vor.u32 %v3960_v46, %v3561_v54  ;;  %v3993_v54 = vld [vmem:[%s4355_s7 + $0x38] sm:$0xff] }
 0x12b   :  { %v1563_v41 = vpop.f32.mrf.mxu2 }
 0x12c   :  { %v1564_v24 = vadd.f32 %v1563_v41, %v1550_v15 }
 0x12e   :  { %2196 = vmatpush.bf16.msra.mxu2 %v3500_v40  ;;  %2206 = vmatpush.bf16.msrb.mxu0 %v3596_v25  ;;  %v3975_v25 = vld [vmem:[#allocation8 + $0x28] sm:$0xff] }
 0x132   :  { %2197 = vmatpush.bf16.msra.mxu2 %v3492_v49  ;;  %v1605_v20 = vpop.f32.mrf.mxu0  ;;  %2207 = vmatpush.bf16.msrb.mxu0 %v3588_v31  ;;  %v3983_v31 = vld [vmem:[#allocation8 + $0x68] sm:$0xff] }
 0x136   :  { %2198 = vmatpush.bf16.msra.mxu2 %v3484_v37  ;;  %2208 = vmatpush.bf16.msrb.mxu0 %v3580_v36 }
 0x137   :  { %v1575_v0 = vpop.f32.mrf.mxu1 }
 0x138   :  { %v1576_v16 = vadd.f32 %v1575_v0, %v1562_v14 }
 0x13a   :  { %2199 = vmatpush.bf16.msra.mxu2 %v3476_v9  ;;  %2209 = vmatpush.bf16.msrb.mxu0 %v3572_v45 }
 0x13e   :  { %v1589_v12 = vpop.f32.mrf.mxu3  ;;  %v1631_v39 = vpop.f32.mrf.mxu0  ;;  %2210 = vmatpush.bf16.msrb.mxu0 %v3564_v48 }
 0x13f   :  { %v1577_v19 = vpop.f32.mrf.mxu1  ;;  %v1590_v55 = vadd.f32 %v1589_v12, %v1576_v16 }
 0x140   :  { %v1578_v26 = vadd.f32 %v1577_v19, %v1564_v24  ;;  %v3977_v24 = vld [vmem:[#allocation8 + $0x38] sm:$0xff] }
 0x141   :  { %v1604_v50 = vadd.f32 %v1603_v1, %v1590_v55  ;;  %2358 = vmatpush.bf16.msra.mxu3 %v3977_v24  ;;  %v3976_v55 = vld [vmem:[#allocation8 + $0x30] sm:$0xff] }
 0x142   :  { %2211 = vmatpush.bf16.msrb.mxu0 %v3556_v58  ;;  %v3986_v24 = vld [vmem:[%s4355_s7] sm:$0xff] }
 0x143   :  { %v1708_v35 = vmax.f32 %v1604_v50, 0.0  ;;  %v1617_v38 = vpop.f32.mrf.mxu2  ;;  %v3984_v50 = vld [vmem:[#allocation8 + $0x70] sm:$0xff] }
 0x144   :  { %v1618_v57 = vadd.f32 %v1617_v38, %v325_v47  ;;  %2373 = vmatpush.bf16.msrb.mxu1 %v3984_v50 }
 0x145   :  { %2359 = vmatpush.bf16.msra.mxu3 %v3976_v55  ;;  %v3997_v55 = vld [vmem:[%s4357_s9 + $0x18] sm:$0xff] }
 0x146   :  { %v1591_v27 = vpop.f32.mrf.mxu3  ;;  %v1633_v51 = vpop.f32.mrf.mxu0  ;;  %v1632_v63 = vadd.f32 %v1631_v39, %v1618_v57  ;;  %2212 = vmatpush.bf16.msrb.mxu0 %v3548_v62  ;;  %v3979_v39 = vld [vmem:[#allocation8 + $0x48] sm:$0xff] }
 0x147   :  { %v1592_v30 = vadd.f32 %v1591_v27, %v1578_v26  ;;  %v3974_v26 = vld [vmem:[#allocation8 + $0x20] sm:$0xff]  ;;  %v3973_v27 = vld [vmem:[#allocation8 + $0x18] sm:$0xff] }
 0x148   :  { %2374 = vmatpush.bf16.msrb.mxu1 %v3983_v31 }
 0x149   :  { %v1606_v32 = vadd.f32 %v1605_v20, %v1592_v30  ;;  %2360 = vmatpush.bf16.msra.mxu3 %v3975_v25  ;;  %v3971_v30 = vld [vmem:[#allocation8 + $0x8] sm:$0xff] }
 0x14a   :  { %2213 = vmatpush.bf16.msrb.mxu0 %v3540_v5 }
 0x14b   :  { %v1712_v8 = vmax.f32 %v1606_v32, 0.0  ;;  %v1619_v60 = vpop.f32.mrf.mxu2  ;;  %v3970_v32 = vld [vmem:[#allocation8] sm:$0xff] }
 0x14c   :  { %v1620_v0 = vadd.f32 %v1619_v60, %v325_v47  ;;  %2375 = vmatpush.bf16.msrb.mxu1 %v3982_v33  ;;  %v3992_v60 = vld [vmem:[%s4355_s7 + $0x30] sm:$0xff] }
 0x14d   :  { %v1716_v40 = vpack.c.bf16 %v1712_v8, %v1708_v35  ;;  %2361 = vmatpush.bf16.msra.mxu3 %v3974_v26  ;;  %v3980_v35 = vld [vmem:[#allocation8 + $0x50] sm:$0xff] }
 0x14e   :  { %v1634_v42 = vadd.f32 %v1633_v51, %v1620_v0 }
 0x14f   :  { %2144 = vmatmul.bf16.vlgmr.msrb.gmra.mxu2 %v1716_v40 }
 0x150   :  { %2376 = vmatpush.bf16.msrb.mxu1 %v3981_v34  ;;  %2457 = vmatpush.bf16.msrb.mxu2 %v3993_v54 }
 0x151   :  { %2362 = vmatpush.bf16.msra.mxu3 %v3973_v27  ;;  %v4016_v27 = vld [vmem:[%s4354_s6] ss:$0 sm:$0xff] }
 0x154   :  { %2377 = vmatpush.bf16.msrb.mxu1 %v3980_v35  ;;  %2458 = vmatpush.bf16.msrb.mxu2 %v3992_v60 }
 0x155   :  { %2363 = vmatpush.bf16.msra.mxu3 %v3972_v29 }
 0x157   :  { %v1645_v49 = vpop.f32.mrf.mxu1 }
 0x158   :  { %v1646_v4 = vadd.f32 %v1645_v49, %v1632_v63  ;;  %2378 = vmatpush.bf16.msrb.mxu1 %v3979_v39 }
 0x159   :  { %2364 = vmatpush.bf16.msra.mxu3 %v3971_v30 }
 0x15c   :  { %2379 = vmatpush.bf16.msrb.mxu1 %v3978_v43 }
 0x15d   :  { %2365 = vmatpush.bf16.msra.mxu3 %v3970_v32 }
 0x15e   :  { %v1659_v37 = vpop.f32.mrf.mxu3  ;;  %v1687_v6 = vpop.f32.mrf.mxu0 }
 0x15f   :  { %v1647_v1 = vpop.f32.mrf.mxu1  ;;  %2200 = vmatmul.bf16.vlgmr.msra.gmra.mxu2 %v1716_v40  ;;  %v1660_v7 = vadd.f32 %v1659_v37, %v1646_v4  ;;  %v1782_v40 = vld [vmem:[%s4352_s4] sm:$0x3] }
 0x160   :  { %v1648_v9 = vadd.f32 %v1647_v1, %v1634_v42  ;;  %v1784_v44 = vperm.slane %v1782_v40, 0  ;;  %v1785_v52 = vperm.slane %v1782_v40, 1  ;;  %v4017_v40 = vld [vmem:[%s4356_s8] ss:$0 sm:$0xff]  ;;  %s2538_s8 = sshll.u32 %s4359_s11, 4  ;;  %s2539_s8 = int_to_ptr.hbm [resolvable:$true] %s2538_s8 }
 0x163   :  { %v1673_v2 = vpop.f32.mrf.mxu2 }
 0x164   :  { %v1674_v13 = vadd.f32 %v1673_v2, %v1660_v7 }
 0x166   :  { %v1661_v10 = vpop.f32.mrf.mxu3  ;;  %v1688_v41 = vadd.f32 %v1687_v6, %v1674_v13  ;;  %v1689_v16 = vpop.f32.mrf.mxu0 }
 0x167   :  { %v1662_v11 = vadd.f32 %v1661_v10, %v1648_v9  ;;  %v1701_v12 = vpop.f32.mrf.mxu1 }
 0x168   :  { %v1702_v17 = vadd.f32 %v1701_v12, %v1688_v41 }
 0x16a   :  { %v1709_v21 = vmax.f32 %v1702_v17, 0.0 }
 0x16b   :  { %v1675_v14 = vpop.f32.mrf.mxu2 }
 0x16c   :  { %v1676_v15 = vadd.f32 %v1675_v14, %v1662_v11 }
 0x16e   :  { %v1690_v18 = vadd.f32 %v1689_v16, %v1676_v15 }
 0x16f   :  { %v1703_v19 = vpop.f32.mrf.mxu1 }
 0x170   :  { %v1704_v20 = vadd.f32 %v1703_v19, %v1690_v18  ;;  %v3991_v19 = vld [vmem:[%s4355_s7 + $0x28] sm:$0xff] }
 0x171   :  { %2459 = vmatpush.bf16.msrb.mxu2 %v3991_v19 }
 0x172   :  { %v1713_v22 = vmax.f32 %v1704_v20, 0.0  ;;  %v3990_v20 = vld [vmem:[%s4355_s7 + $0x20] sm:$0xff] }
 0x174   :  { %v1717_v23 = vpack.c.bf16 %v1713_v22, %v1709_v21  ;;  %v3989_v21 = vld [vmem:[%s4355_s7 + $0x18] sm:$0xff]  ;;  %v3988_v22 = vld [vmem:[%s4355_s7 + $0x10] sm:$0xff] }
 0x175   :  { %2460 = vmatpush.bf16.msrb.mxu2 %v3990_v20 }
 0x176   :  { %2158 = vmatmul.bf16.vlgmr.msra.gmra.mxu0 %v1717_v23 }
 0x177   :  { %2518 = vmatpush.bf16.msra.mxu0 %v3997_v55 }
 0x179   :  { %2461 = vmatpush.bf16.msrb.mxu2 %v3989_v21 }
 0x17d   :  { %2462 = vmatpush.bf16.msrb.mxu2 %v3988_v22 }
 0x17e   :  { %v2117_v8 = vpop.f32.mrf.mxu3 }
 0x17f   :  { %v2118_v49 = vadd.f32 %v2117_v8, %v1784_v44  ;;  %v3996_v8 = vld [vmem:[%s4357_s9 + $0x10] sm:$0xff] }
 0x180   :  { %2519 = vmatpush.bf16.msra.mxu0 %v3996_v8 }
 0x186   :  { %2214 = vmatmul.bf16.vlgmr.msrb.gmra.mxu0 %v1717_v23  ;;  %v2119_v45 = vpop.f32.mrf.mxu3  ;;  %v3987_v23 = vld [vmem:[%s4355_s7 + $0x8] sm:$0xff] }
 0x187   :  { %v2120_v51 = vadd.f32 %v2119_v45, %v1784_v44  ;;  %2463 = vmatpush.bf16.msrb.mxu2 %v3987_v23 }
 0x18b   :  { %2464 = vmatpush.bf16.msrb.mxu2 %v3986_v24 }
 0x192   :  { %v2131_v36 = vpop.f32.mrf.mxu1 }
 0x193   :  { %v2132_v53 = vadd.f32 %v2131_v36, %v2118_v49  ;;  %v3995_v36 = vld [vmem:[%s4357_s9 + $0x8] sm:$0xff]  ;;  %v4018_v49 = vld [vmem:[%s4358_s10] ss:$0 sm:$0xff] }
 0x194   :  { %2520 = vmatpush.bf16.msra.mxu0 %v3995_v36 }
 0x19a   :  { %v2133_v46 = vpop.f32.mrf.mxu1 }
 0x19b   :  { %v2134_v56 = vadd.f32 %v2133_v46, %v2120_v51 }
 0x19e   :  { %v2173_v58 = vpop.f32.mrf.mxu3 }
 0x19f   :  { %v2174_v42 = vadd.f32 %v2173_v58, %v1785_v52 }
 0x1a2   :  { %v2187_v62 = vpop.f32.mrf.mxu1 }
 0x1a3   :  { %v2188_v9 = vadd.f32 %v2187_v62, %v2174_v42 }
 0x1a6   :  { %v2175_v4 = vpop.f32.mrf.mxu3 }
 0x1a7   :  { %v2176_v7 = vadd.f32 %v2175_v4, %v1785_v52 }
 0x1aa   :  { %v2189_v6 = vpop.f32.mrf.mxu1 }
 0x1ab   :  { %v2190_v11 = vadd.f32 %v2189_v6, %v2176_v7 }
 0x1d2   :  { %v2145_v38 = vpop.f32.mrf.mxu2 }
 0x1d3   :  { %v2146_v57 = vadd.f32 %v2145_v38, %v2132_v53  ;;  %v3994_v38 = vld [vmem:[%s4357_s9] sm:$0xff]  ;;  %s4159_s9 = smov [#allocation10]  }
 0x1d4   :  { %2521 = vmatpush.bf16.msra.mxu0 %v3994_v38  ;;  %s2536_s29 = sshll.u32 %s4159_s9, 4  ;;  %s2537_s29 = int_to_ptr.vmem [resolvable:$true] %s2536_s29 }
 0x1da   :  { %v2147_v47 = vpop.f32.mrf.mxu2 }
 0x1db   :  { %v2148_v59 = vadd.f32 %v2147_v47, %v2134_v56 }
 0x1e2   :  { %v2201_v0 = vpop.f32.mrf.mxu2 }
 0x1e3   :  { %v2202_v12 = vadd.f32 %v2201_v0, %v2188_v9 }
 0x1ea   :  { %v2203_v10 = vpop.f32.mrf.mxu2 }
 0x1eb   :  { %v2204_v13 = vadd.f32 %v2203_v10, %v2190_v11 }
 0x1f3   :  { %v2159_v48 = vpop.f32.mrf.mxu0 }
 0x1f4   :  { %v2160_v61 = vadd.f32 %v2159_v48, %v2146_v57 }
 0x1f6   :  { %v2220_v1 = vmax.f32 %v2160_v61, 0.0 }
 0x1fb   :  { %v2161_v63 = vpop.f32.mrf.mxu0 }
 0x1fc   :  { %v2162_v37 = vadd.f32 %v2161_v63, %v2148_v59 }
 0x1fe   :  { %v2222_v2 = vmax.f32 %v2162_v37, 0.0 }
 0x200   :  { %v2224_v3 = vpack.c.bf16 %v2222_v2, %v2220_v1 }
 0x202   :  { %2366 = vmatmul.bf16.vlgmr.msra.gmra.mxu3 %v2224_v3 }
 0x203   :  { %v2215_v5 = vpop.f32.mrf.mxu0 }
 0x204   :  { %v2216_v14 = vadd.f32 %v2215_v5, %v2202_v12 }
 0x206   :  { %v2221_v16 = vmax.f32 %v2216_v14, 0.0 }
 0x20b   :  { %v2217_v15 = vpop.f32.mrf.mxu0 }
 0x20c   :  { %v2218_v41 = vadd.f32 %v2217_v15, %v2204_v13 }
 0x20e   :  { %v2223_v17 = vmax.f32 %v2218_v41, 0.0 }
 0x210   :  { %v2225_v18 = vpack.c.bf16 %v2223_v17, %v2221_v16 }
 0x212   :  { %2380 = vmatmul.bf16.vlgmr.msrb.gmra.mxu1 %v2225_v18 }
 0x285   :  { %v2367_v25 = vpop.f32.mrf.mxu3 }
 0x286   :  { %v2368_v29 = vadd.f32 %v4016_v27, %v2367_v25 }
 0x28d   :  { %v2369_v28 = vpop.f32.mrf.mxu3 }
 0x28e   :  { %v2370_v50 = vadd.f32 %v4016_v27, %v2369_v28 }
 0x28f   :  { %v2381_v26 = vpop.f32.mrf.mxu1 }
 0x290   :  { %v2382_v30 = vadd.f32 %v2381_v26, %v2368_v29 }
 0x292   :  { %v2386_v33 = vmax.f32 %v2382_v30, 0.0 }
 0x297   :  { %v2383_v31 = vpop.f32.mrf.mxu1 }
 0x298   :  { %v2384_v32 = vadd.f32 %v2383_v31, %v2370_v50 }
 0x29a   :  { %v2387_v34 = vmax.f32 %v2384_v32, 0.0 }
 0x29c   :  { %v2388_v35 = vpack.c.bf16 %v2387_v34, %v2386_v33 }
 0x29e   :  { %2465 = vmatmul.bf16.vlgmr.msrb.gmra.mxu2 %v2388_v35 }
 0x321   :  { %v2466_v39 = vpop.f32.mrf.mxu2 }
 0x322   :  { %v2467_v43 = vadd.f32 %v4017_v40, %v2466_v39 }
 0x324   :  { %v2471_v46 = vmax.f32 %v2467_v43, 0.0 }
 0x329   :  { %v2468_v44 = vpop.f32.mrf.mxu2 }
 0x32a   :  { %v2469_v45 = vadd.f32 %v4017_v40, %v2468_v44 }
 0x32c   :  { %v2472_v54 = vmax.f32 %v2469_v45, 0.0 }
 0x32e   :  { %v2473_v47 = vpack.c.bf16 %v2472_v54, %v2471_v46 }
 0x330   :  { %3709 = vmatmul.msk.bf16.vlgmr.msra.gmra.mxu0 %vm2510_vm1, %v2473_v47 }
 0x3ad   :  { %v2523_v48 = vpop.f32.mrf.mxu0 }
 0x3ae   :  { %v2524_v51 = vadd.f32 %v4018_v49, %v2523_v48 }
 0x3b5   :  { %v2525_v60 = vpop.f32.mrf.mxu0 }
 0x3b6   :  { %v2526_v53 = vadd.f32 %v4018_v49, %v2525_v60 }
 0x3b8   :  { %v4001_v56 = vpack.c.bf16 %v2526_v53, %v2524_v51 }
 0x3ba   :  { %4002 = vst [vmem:[#allocation10] sm:$0xff] %v4001_v56  }
 0x3bb   :  { %2544 = dma.vmem_to_hbm [thread:$0]  %s2537_s29, 128, %s2539_s8, [#allocation4], %s4157_s22, %s4157_s22, %s4158_s23  }
 0x3bc   :  { %4145 = dma.done.wait [#allocation4], 128  }
 0x3bd   :  { %4146 = vsyncadd [#allocation4], 4294967168 }
 0x3be   :  { %2549 = vsyncpa [#allocation3], 1 }
 0x3bf   :  { %2550 = vsyncpa [#allocation6], 1 }
 0x3c0   :  { %2551 = vsyncpa [#allocation9], 1 }
 0x3c1   :  { %2552 = vsyncpa [#allocation4], 1 }

// kernel: tpu_custom_call.1
= control target key start
LH: loop header
LB: loop body
LE: loop exit
PB: predicated region body
PF: predicated region fallthrough
CT: control target
= control target key end

     0   :  { %16 = vsyncpa [#allocation3], 0  ;;  %s4348_s0 = inlined_call_operand.hbm [shape: f32[16,784], index: 0, kind: input, shape index: {}]   ;;  %s4349_s1 = inlined_call_operand.hbm [shape: bf16[784,512], index: 1, kind: input, shape index: {}]   ;;  %s4350_s2 = inlined_call_operand.vmem [shape: f32[1,512], index: 2, kind: input, shape index: {}]   ;;  %s4351_s3 = inlined_call_operand.hbm [shape: bf16[512,256], index: 3, kind: input, shape index: {}]   ;;  %s4352_s4 = inlined_call_operand.vmem [shape: f32[1,256], index: 4, kind: input, shape index: {}]   ;;  %s4353_s5 = inlined_call_operand.hbm [shape: bf16[256,128], index: 5, kind: input, shape index: {}]   ;;  %s4354_s6 = inlined_call_operand.vmem [shape: f32[1,128], index: 6, kind: input, shape index: {}]   ;;  %s4355_s7 = inlined_call_operand.vmem [shape: bf16[128,64], index: 7, kind: input, shape index: {}]   ;;  %s4356_s8 = inlined_call_operand.vmem [shape: f32[1,64], index: 8, kind: input, shape index: {}]   ;;  %s4357_s9 = inlined_call_operand.vmem [shape: bf16[64,128], index: 9, kind: input, shape index: {}]   ;;  %s4358_s10 = inlined_call_operand.vmem [shape: f32[1,128], index: 10, kind: input, shape index: {}]   ;;  %s4359_s11 = inlined_call_operand.hbm [shape: bf16[16,128], index: 11, kind: output, shape index: {}]  }
   0x1   :  { %17 = vsyncpa [#allocation6], 0 }
   0x2   :  { %18 = vsyncpa [#allocation9], 0  ;;  %s37_s19 = sshll.u32 %s4349_s1, 4  ;;  %s38_s19 = int_to_ptr.hbm [resolvable:$true] %s37_s19 }
   0x3   :  { %19 = vsyncpa [#allocation4], 0  ;;  %s4147_s20 = smov [#allocation5]   ;;  %s24_s24 = sshll.u32 %s4348_s0, 4  ;;  %s25_s24 = int_to_ptr.hbm [resolvable:$true] %s24_s24 }
   0x4   :  { %s39_s21 = sshll.u32 %s4147_s20, 4  ;;  %s4148_s25 = smov 256   ;;  %s40_s21 = int_to_ptr.vmem [resolvable:$true] %s39_s21 }
   0x5   :  { %s4149_s26 = smov 16   ;;  %s4150_s27 = smov [#allocation2]  }
   0x6   :  { %45 = dma.hbm_to_vmem [thread:$0]  %s38_s19, 25088, %s40_s21, [#allocation6], %s4148_s25, %s4148_s25, %s4149_s26  }
   0x7   :  { %s26_s28 = sshll.u32 %s4150_s27, 4  ;;  %s4151_s29 = smov 896   ;;  %s27_s28 = int_to_ptr.vmem [resolvable:$true] %s26_s28 }
   0x8   :  { %s4152_s30 = smov 56   ;;  %s52_s13 = sshll.u32 %s4351_s3, 4  ;;  %s53_s13 = int_to_ptr.hbm [resolvable:$true] %s52_s13 }
   0x9   :  { %32 = dma.hbm_to_vmem [thread:$0]  %s25_s24, 1792, %s27_s28, [#allocation3], %s4151_s29, %s4151_s29, %s4152_s30  }
   0xa   :  { %s4153_s14 = smov [#allocation7]   ;;  %s67_s17 = sshll.u32 %s4353_s5, 4  ;;  %s68_s17 = int_to_ptr.hbm [resolvable:$true] %s67_s17 }
   0xb   :  { %s54_s15 = sshll.u32 %s4153_s14, 4  ;;  %s4154_s18 = smov 128   ;;  %s55_s15 = int_to_ptr.vmem [resolvable:$true] %s54_s15 }
   0xc   :  { %s4155_s19 = smov 8   ;;  %s4156_s20 = smov [#allocation8]  }
   0xd   :  { %60 = dma.hbm_to_vmem [thread:$0]  %s53_s13, 8192, %s55_s15, [#allocation6], %s4154_s18, %s4154_s18, %s4155_s19  }
   0xe   :  { %s69_s21 = sshll.u32 %s4156_s20, 4  ;;  %s4157_s22 = smov 64   ;;  %s70_s21 = int_to_ptr.vmem [resolvable:$true] %s69_s21 }
   0xf   :  { %s4158_s23 = smov 4  }
  0x10   :  { %75 = dma.hbm_to_vmem [thread:$0]  %s68_s17, 2048, %s70_s21, [#allocation9], %s4157_s22, %s4157_s22, %s4158_s23  }
  0x11   :  { %4139 = dma.done.wait [#allocation3], 1792  }
  0x12   :  { %4140 = vsyncadd [#allocation3], 4294965504 }
  0x13   :  { %4141 = dma.done.wait [#allocation6], 33280  }
  0x14   :  { %4142 = vsyncadd [#allocation6], 4294934016 }
  0x15   :  { %4143 = dma.done.wait [#allocation9], 2048  }
  0x16   :  { %4144 = vsyncadd [#allocation9], 4294965248  ;;  %v2667_v0 = vld [vmem:[#allocation5 + $0xe0] sm:$0xf]  ;;  %v3740_v1 = vld [vmem:[#allocation5 + $0xec] sm:$0xf0] }
  0x17   :  { %v2795_v2 = vld [vmem:[#allocation5 + $0x1e0] sm:$0xf]  ;;  %v2668_v3 = vor.u32 %v3740_v1, %v2667_v0  ;;  %v3772_v4 = vld [vmem:[#allocation5 + $0x1ec] sm:$0xf0]  ;;  %vm1310_vm0 = vcmask 130048   ;;  %vm2510_vm1 = vcmask 523264  }
  0x18   :  { %v2923_v5 = vld [vmem:[#allocation5 + $0x2e0] sm:$0xf]  ;;  %v3804_v6 = vld [vmem:[#allocation5 + $0x2ec] sm:$0xf0]  ;;  %v2796_v7 = vor.u32 %v3772_v4, %v2795_v2 }
  0x19   :  { %v2924_v8 = vor.u32 %v3804_v6, %v2923_v5  ;;  %v3051_v9 = vld [vmem:[#allocation5 + $0x3e0] sm:$0xf]  ;;  %v3836_v10 = vld [vmem:[#allocation5 + $0x3ec] sm:$0xf0]  ;;  %1314 = vmatpush.bf16.msra.mxu0 %v2668_v3 }
  0x1a   :  { %v2651_v11 = vld [vmem:[#allocation5 + $0xc0] sm:$0xf]  ;;  %v3052_v12 = vor.u32 %v3836_v10, %v3051_v9  ;;  %v3736_v13 = vld [vmem:[#allocation5 + $0xcc] sm:$0xf0]  ;;  %1328 = vmatpush.bf16.msra.mxu1 %v2796_v7 }
  0x1b   :  { %v2779_v14 = vld [vmem:[#allocation5 + $0x1c0] sm:$0xf]  ;;  %v3768_v15 = vld [vmem:[#allocation5 + $0x1cc] sm:$0xf0]  ;;  %1342 = vmatpush.bf16.msra.mxu2 %v2924_v8  ;;  %v2652_v16 = vor.u32 %v3736_v13, %v2651_v11 }
  0x1c   :  { %v2780_v17 = vor.u32 %v3768_v15, %v2779_v14  ;;  %v2907_v18 = vld [vmem:[#allocation5 + $0x2c0] sm:$0xf]  ;;  %v3800_v19 = vld [vmem:[#allocation5 + $0x2cc] sm:$0xf0]  ;;  %1356 = vmatpush.bf16.msra.mxu3 %v3052_v12 }
  0x1d   :  { %v3035_v20 = vld [vmem:[#allocation5 + $0x3c0] sm:$0xf]  ;;  %v2908_v21 = vor.u32 %v3800_v19, %v2907_v18  ;;  %v3832_v22 = vld [vmem:[#allocation5 + $0x3cc] sm:$0xf0]  ;;  %1315 = vmatpush.bf16.msra.mxu0 %v2652_v16 }
  0x1e   :  { %v2635_v23 = vld [vmem:[#allocation5 + $0xa0] sm:$0xf]  ;;  %v3732_v24 = vld [vmem:[#allocation5 + $0xac] sm:$0xf0]  ;;  %v3036_v25 = vor.u32 %v3832_v22, %v3035_v20  ;;  %1329 = vmatpush.bf16.msra.mxu1 %v2780_v17 }
  0x1f   :  { %v2763_v26 = vld [vmem:[#allocation5 + $0x1a0] sm:$0xf]  ;;  %v3764_v27 = vld [vmem:[#allocation5 + $0x1ac] sm:$0xf0]  ;;  %v2636_v29 = vor.u32 %v3732_v24, %v2635_v23  ;;  %1343 = vmatpush.bf16.msra.mxu2 %v2908_v21 }
  0x20   :  { %v2891_v28 = vld [vmem:[#allocation5 + $0x2a0] sm:$0xf]  ;;  %v3796_v30 = vld [vmem:[#allocation5 + $0x2ac] sm:$0xf0]  ;;  %v2764_v33 = vor.u32 %v3764_v27, %v2763_v26  ;;  %1357 = vmatpush.bf16.msra.mxu3 %v3036_v25 }
  0x21   :  { %v3019_v31 = vld [vmem:[#allocation5 + $0x3a0] sm:$0xf]  ;;  %v3828_v32 = vld [vmem:[#allocation5 + $0x3ac] sm:$0xf0]  ;;  %v2892_v34 = vor.u32 %v3796_v30, %v2891_v28  ;;  %1316 = vmatpush.bf16.msra.mxu0 %v2636_v29 }
  0x22   :  { %v2619_v35 = vld [vmem:[#allocation5 + $0x80] sm:$0xf]  ;;  %v3728_v36 = vld [vmem:[#allocation5 + $0x8c] sm:$0xf0]  ;;  %v3020_v38 = vor.u32 %v3828_v32, %v3019_v31  ;;  %1330 = vmatpush.bf16.msra.mxu1 %v2764_v33  ;;  %v3738_v32 = vld [vmem:[#allocation5 + $0xe4] sm:$0xf] }
  0x23   :  { %v2747_v37 = vld [vmem:[#allocation5 + $0x180] sm:$0xf]  ;;  %v3760_v39 = vld [vmem:[#allocation5 + $0x18c] sm:$0xf0]  ;;  %v2620_v44 = vor.u32 %v3728_v36, %v2619_v35  ;;  %1344 = vmatpush.bf16.msra.mxu2 %v2892_v34  ;;  %v2669_v33 = vld [vmem:[#allocation5 + $0xf0] sm:$0xf0] }
  0x24   :  { %v2875_v40 = vld [vmem:[#allocation5 + $0x280] sm:$0xf]  ;;  %v3792_v41 = vld [vmem:[#allocation5 + $0x28c] sm:$0xf0]  ;;  %v2748_v45 = vor.u32 %v3760_v39, %v2747_v37  ;;  %1358 = vmatpush.bf16.msra.mxu3 %v3020_v38  ;;  %v112_v36 = vld [vmem:[#allocation2 + $0x48] sm:$0xff] }
  0x25   :  { %v3003_v42 = vld [vmem:[#allocation5 + $0x380] sm:$0xf]  ;;  %v3824_v43 = vld [vmem:[#allocation5 + $0x38c] sm:$0xf0]  ;;  %v2876_v46 = vor.u32 %v3792_v41, %v2875_v40  ;;  %1317 = vmatpush.bf16.msra.mxu0 %v2620_v44  ;;  %v3770_v41 = vld [vmem:[#allocation5 + $0x1e4] sm:$0xf] }
  0x26   :  { %v2603_v47 = vld [vmem:[#allocation5 + $0x60] sm:$0xf]  ;;  %v3724_v48 = vld [vmem:[#allocation5 + $0x6c] sm:$0xf0]  ;;  %v3004_v50 = vor.u32 %v3824_v43, %v3003_v42  ;;  %1331 = vmatpush.bf16.msra.mxu1 %v2748_v45  ;;  %v110_v43 = vld [vmem:[#allocation2 + $0x38] sm:$0xff] }
  0x27   :  { %v2731_v49 = vld [vmem:[#allocation5 + $0x160] sm:$0xf]  ;;  %v3756_v51 = vld [vmem:[#allocation5 + $0x16c] sm:$0xf0]  ;;  %v2604_v56 = vor.u32 %v3724_v48, %v2603_v47  ;;  %1345 = vmatpush.bf16.msra.mxu2 %v2876_v46  ;;  %v2797_v46 = vld [vmem:[#allocation5 + $0x1f0] sm:$0xf0] }
  0x28   :  { %v2859_v52 = vld [vmem:[#allocation5 + $0x260] sm:$0xf]  ;;  %v3788_v53 = vld [vmem:[#allocation5 + $0x26c] sm:$0xf0]  ;;  %v2732_v57 = vor.u32 %v3756_v51, %v2731_v49  ;;  %1359 = vmatpush.bf16.msra.mxu3 %v3004_v50  ;;  %v106_v47 = vld [vmem:[#allocation2 + $0x18] sm:$0xff]  ;;  %v2672_v50 = vor.u32 %v3738_v32, %v2669_v33 }
  0x29   :  { %v2987_v54 = vld [vmem:[#allocation5 + $0x360] sm:$0xf]  ;;  %v3820_v55 = vld [vmem:[#allocation5 + $0x36c] sm:$0xf0]  ;;  %v2860_v58 = vor.u32 %v3788_v53, %v2859_v52  ;;  %1318 = vmatpush.bf16.msra.mxu0 %v2604_v56 }
  0x2a   :  { %v2587_v59 = vld [vmem:[#allocation5 + $0x40] sm:$0xf]  ;;  %v3720_v60 = vld [vmem:[#allocation5 + $0x4c] sm:$0xf0]  ;;  %v2988_v62 = vor.u32 %v3820_v55, %v2987_v54  ;;  %1332 = vmatpush.bf16.msra.mxu1 %v2732_v57  ;;  %v3734_v57 = vld [vmem:[#allocation5 + $0xc4] sm:$0xf] }
  0x2b   :  { %v2715_v61 = vld [vmem:[#allocation5 + $0x140] sm:$0xf]  ;;  %v3752_v63 = vld [vmem:[#allocation5 + $0x14c] sm:$0xf0]  ;;  %v2588_v4 = vor.u32 %v3720_v60, %v2587_v59  ;;  %1346 = vmatpush.bf16.msra.mxu2 %v2860_v58  ;;  %v2653_v58 = vld [vmem:[#allocation5 + $0xd0] sm:$0xf0] }
  0x2c   :  { %v2843_v0 = vld [vmem:[#allocation5 + $0x240] sm:$0xf]  ;;  %v3784_v1 = vld [vmem:[#allocation5 + $0x24c] sm:$0xf0]  ;;  %v2716_v6 = vor.u32 %v3752_v63, %v2715_v61  ;;  %1360 = vmatpush.bf16.msra.mxu3 %v2988_v62  ;;  %v104_v61 = vld [vmem:[#allocation2 + $0x8] sm:$0xff]  ;;  %v2800_v63 = vor.u32 %v3770_v41, %v2797_v46 }
  0x2d   :  { %v2971_v2 = vld [vmem:[#allocation5 + $0x340] sm:$0xf]  ;;  %v3816_v3 = vld [vmem:[#allocation5 + $0x34c] sm:$0xf0]  ;;  %v2844_v7 = vor.u32 %v3784_v1, %v2843_v0  ;;  %1319 = vmatpush.bf16.msra.mxu0 %v2588_v4  ;;  %v3766_v1 = vld [vmem:[#allocation5 + $0x1c4] sm:$0xf]  ;;  %v2656_v4 = vor.u32 %v3734_v57, %v2653_v58 }
  0x2e   :  { %v2571_v5 = vld [vmem:[#allocation5 + $0x20] sm:$0xf]  ;;  %v3716_v8 = vld [vmem:[#allocation5 + $0x2c] sm:$0xf0]  ;;  %v2972_v11 = vor.u32 %v3816_v3, %v2971_v2  ;;  %1333 = vmatpush.bf16.msra.mxu1 %v2716_v6  ;;  %v2781_v2 = vld [vmem:[#allocation5 + $0x1d0] sm:$0xf0] }
  0x2f   :  { %v2699_v9 = vld [vmem:[#allocation5 + $0x120] sm:$0xf]  ;;  %v3748_v10 = vld [vmem:[#allocation5 + $0x12c] sm:$0xf0]  ;;  %v2572_v18 = vor.u32 %v3716_v8, %v2571_v5  ;;  %1347 = vmatpush.bf16.msra.mxu2 %v2844_v7  ;;  %v2733_v41 = vld [vmem:[#allocation5 + $0x170] sm:$0xf0] }
  0x30   :  { %v2827_v12 = vld [vmem:[#allocation5 + $0x220] sm:$0xf]  ;;  %v3780_v13 = vld [vmem:[#allocation5 + $0x22c] sm:$0xf0]  ;;  %v2700_v23 = vor.u32 %v3748_v10, %v2699_v9  ;;  %1361 = vmatpush.bf16.msra.mxu3 %v2972_v11  ;;  %v3730_v10 = vld [vmem:[#allocation5 + $0xa4] sm:$0xf] }
  0x31   :  { %v2955_v14 = vld [vmem:[#allocation5 + $0x320] sm:$0xf]  ;;  %v3812_v15 = vld [vmem:[#allocation5 + $0x32c] sm:$0xf0]  ;;  %v2828_v24 = vor.u32 %v3780_v13, %v2827_v12  ;;  %1320 = vmatpush.bf16.msra.mxu0 %v2572_v18  ;;  %v2637_v11 = vld [vmem:[#allocation5 + $0xb0] sm:$0xf0]  ;;  %v2784_v12 = vor.u32 %v3766_v1, %v2781_v2 }
  0x32   :  { %v2555_v16 = vld [vmem:[#allocation5] sm:$0xf]  ;;  %v3712_v17 = vld [vmem:[#allocation5 + $0xc] sm:$0xf0]  ;;  %v2956_v28 = vor.u32 %v3812_v15, %v2955_v14  ;;  %1334 = vmatpush.bf16.msra.mxu1 %v2700_v23  ;;  %v3762_v14 = vld [vmem:[#allocation5 + $0x1a4] sm:$0xf] }
  0x33   :  { %v2683_v19 = vld [vmem:[#allocation5 + $0x100] sm:$0xf]  ;;  %v3744_v20 = vld [vmem:[#allocation5 + $0x10c] sm:$0xf0]  ;;  %v2556_v35 = vor.u32 %v3712_v17, %v2555_v16  ;;  %1348 = vmatpush.bf16.msra.mxu2 %v2828_v24  ;;  %v2765_v15 = vld [vmem:[#allocation5 + $0x1b0] sm:$0xf0]  ;;  %v2640_v17 = vor.u32 %v3730_v10, %v2637_v11 }
  0x34   :  { %v2811_v21 = vld [vmem:[#allocation5 + $0x200] sm:$0xf]  ;;  %v3776_v22 = vld [vmem:[#allocation5 + $0x20c] sm:$0xf0]  ;;  %v2684_v39 = vor.u32 %v3744_v20, %v2683_v19  ;;  %1362 = vmatpush.bf16.msra.mxu3 %v2956_v28  ;;  %v2621_v23 = vld [vmem:[#allocation5 + $0x90] sm:$0xf0]  ;;  %v2768_v24 = vor.u32 %v3762_v14, %v2765_v15 }
  0x35   :  { %v2939_v25 = vld [vmem:[#allocation5 + $0x300] sm:$0xf]  ;;  %v3808_v26 = vld [vmem:[#allocation5 + $0x30c] sm:$0xf0]  ;;  %v2812_v40 = vor.u32 %v3776_v22, %v2811_v21  ;;  %1321 = vmatpush.bf16.msra.mxu0 %v2556_v35  ;;  %v3726_v22 = vld [vmem:[#allocation5 + $0x84] sm:$0xf] }
  0x36   :  { %v3179_v27 = vld [vmem:[#allocation5 + $0x4e0] sm:$0xf]  ;;  %v3868_v29 = vld [vmem:[#allocation5 + $0x4ec] sm:$0xf0]  ;;  %v2940_v44 = vor.u32 %v3808_v26, %v2939_v25  ;;  %1335 = vmatpush.bf16.msra.mxu1 %v2684_v39  ;;  %v3758_v26 = vld [vmem:[#allocation5 + $0x184] sm:$0xf] }
  0x37   :  { %v3307_v30 = vld [vmem:[#allocation5 + $0x5e0] sm:$0xf]  ;;  %v3900_v31 = vld [vmem:[#allocation5 + $0x5ec] sm:$0xf0]  ;;  %v3180_v45 = vor.u32 %v3868_v29, %v3179_v27  ;;  %1349 = vmatpush.bf16.msra.mxu2 %v2812_v40  ;;  %v2749_v27 = vld [vmem:[#allocation5 + $0x190] sm:$0xf0]  ;;  %v2624_v29 = vor.u32 %v3726_v22, %v2621_v23 }
  0x38   :  { %v105_v34 = vld [vmem:[#allocation2 + $0x10] sm:$0xff]  ;;  %v3904_v38 = vld [vmem:[#allocation5 + $0x60c] sm:$0xf0]  ;;  %v3308_v49 = vor.u32 %v3900_v31, %v3307_v30  ;;  %1363 = vmatpush.bf16.msra.mxu3 %v2940_v44  ;;  %v2605_v35 = vld [vmem:[#allocation5 + $0x70] sm:$0xf0] }
  0x39   :  { %v3323_v37 = vld [vmem:[#allocation5 + $0x600] sm:$0xf]  ;;  %v103_v42 = vld [vmem:[#allocation2] sm:$0xff]  ;;  %v4235_v54 = vpack.c.bf16 %v112_v36, %v105_v34  ;;  %1370 = vmatpush.bf16.msrb.mxu0 %v3180_v45  ;;  %v3722_v34 = vld [vmem:[#allocation5 + $0x64] sm:$0xf] }
  0x3a   :  { %v113_v48 = vld [vmem:[#allocation2 + $0x50] sm:$0xff]  ;;  %v3864_v52 = vld [vmem:[#allocation5 + $0x4cc] sm:$0xf0]  ;;  %v4237_v55 = vpack.c.bf16 %v110_v43, %v103_v42  ;;  %v3324_v59 = vor.u32 %v3904_v38, %v3323_v37  ;;  %1384 = vmatpush.bf16.msrb.mxu1 %v3308_v49  ;;  %v116_v37 = vld [vmem:[#allocation2 + $0x68] sm:$0xff]  ;;  %v2752_v38 = vor.u32 %v3758_v26, %v2749_v27  ;;  %v2608_v43 = vor.u32 %v3722_v34, %v2605_v35 }
  0x3b   :  { %v3163_v51 = vld [vmem:[#allocation5 + $0x4c0] sm:$0xf]  ;;  %v3896_v56 = vld [vmem:[#allocation5 + $0x5cc] sm:$0xf0]  ;;  %v4239_v60 = vpack.c.bf16 %v113_v48, %v106_v47  ;;  %1350 = vmatmul.bf16.vlgmr.msra.gmra.mxu2 %v4235_v54  ;;  %v3754_v40 = vld [vmem:[#allocation5 + $0x164] sm:$0xf] }
  0x3c   :  { %v3291_v53 = vld [vmem:[#allocation5 + $0x5c0] sm:$0xf]  ;;  %v111_v62 = vld [vmem:[#allocation2 + $0x40] sm:$0xff]  ;;  %v3164_v0 = vor.u32 %v3864_v52, %v3163_v51  ;;  %1412 = vmatpush.bf16.msrb.mxu3 %v2672_v50  ;;  %1322 = vmatmul.bf16.vlgmr.msra.gmra.mxu0 %v4237_v55  ;;  %v3718_v48 = vld [vmem:[#allocation5 + $0x44] sm:$0xf]  ;;  %v2736_v51 = vor.u32 %v3754_v40, %v2733_v41 }
  0x3d   :  { %v3292_v3 = vor.u32 %v3896_v56, %v3291_v53  ;;  %v3147_v5 = vld [vmem:[#allocation5 + $0x4a0] sm:$0xf]  ;;  %v3860_v6 = vld [vmem:[#allocation5 + $0x4ac] sm:$0xf0]  ;;  %v4243_v8 = vpack.c.bf16 %v111_v62, %v104_v61  ;;  %1405 = vmatpush.bf16.msrb.mxu2 %v3324_v59  ;;  %1364 = vmatmul.bf16.vlgmr.msra.gmra.mxu3 %v4239_v60  ;;  %v2589_v49 = vld [vmem:[#allocation5 + $0x50] sm:$0xf0] }
  0x3e   :  { %v3275_v7 = vld [vmem:[#allocation5 + $0x5a0] sm:$0xf]  ;;  %v3892_v9 = vld [vmem:[#allocation5 + $0x5ac] sm:$0xf0]  ;;  %1371 = vmatpush.bf16.msrb.mxu0 %v3164_v0  ;;  %v3148_v13 = vor.u32 %v3860_v6, %v3147_v5  ;;  %v3750_v53 = vld [vmem:[#allocation5 + $0x144] sm:$0xf]  ;;  %v2592_v58 = vor.u32 %v3718_v48, %v2589_v49 }
  0x3f   :  { %1385 = vmatpush.bf16.msrb.mxu1 %v3292_v3  ;;  %v3276_v16 = vor.u32 %v3892_v9, %v3275_v7  ;;  %v3131_v18 = vld [vmem:[#allocation5 + $0x480] sm:$0xf]  ;;  %v3856_v19 = vld [vmem:[#allocation5 + $0x48c] sm:$0xf0]  ;;  %v2717_v56 = vld [vmem:[#allocation5 + $0x150] sm:$0xf0] }
  0x40   :  { %1413 = vmatpush.bf16.msrb.mxu3 %v2656_v4  ;;  %v3259_v20 = vld [vmem:[#allocation5 + $0x580] sm:$0xf]  ;;  %1336 = vmatmul.bf16.vlgmr.msra.gmra.mxu1 %v4243_v8  ;;  %v3888_v21 = vld [vmem:[#allocation5 + $0x58c] sm:$0xf0]  ;;  %v3132_v25 = vor.u32 %v3856_v19, %v3131_v18  ;;  %v3714_v0 = vld [vmem:[#allocation5 + $0x24] sm:$0xf]  ;;  %v2720_v4 = vor.u32 %v3750_v53, %v2717_v56 }
  0x41   :  { %1426 = vmatpush.bf16.msra.mxu2 %v2800_v63  ;;  %v3260_v28 = vor.u32 %v3888_v21, %v3259_v20  ;;  %v3115_v30 = vld [vmem:[#allocation5 + $0x460] sm:$0xf]  ;;  %v3852_v31 = vld [vmem:[#allocation5 + $0x46c] sm:$0xf0]  ;;  %v2573_v1 = vld [vmem:[#allocation5 + $0x30] sm:$0xf0] }
  0x42   :  { %1372 = vmatpush.bf16.msrb.mxu0 %v3148_v13  ;;  %v3243_v32 = vld [vmem:[#allocation5 + $0x560] sm:$0xf]  ;;  %v3884_v33 = vld [vmem:[#allocation5 + $0x56c] sm:$0xf0]  ;;  %v3116_v39 = vor.u32 %v3852_v31, %v3115_v30  ;;  %v3746_v2 = vld [vmem:[#allocation5 + $0x124] sm:$0xf]  ;;  %v2576_v11 = vor.u32 %v3714_v0, %v2573_v1 }
  0x43   :  { %1386 = vmatpush.bf16.msrb.mxu1 %v3276_v16  ;;  %v109_v36 = vld [vmem:[#allocation2 + $0x30] sm:$0xff]  ;;  %v3244_v42 = vor.u32 %v3884_v33, %v3243_v32  ;;  %v3848_v45 = vld [vmem:[#allocation5 + $0x44c] sm:$0xf0]  ;;  %v2701_v3 = vld [vmem:[#allocation5 + $0x130] sm:$0xf0] }
  0x44   :  { %1414 = vmatpush.bf16.msrb.mxu3 %v2640_v17  ;;  %v3099_v44 = vld [vmem:[#allocation5 + $0x440] sm:$0xf]  ;;  %v3880_v47 = vld [vmem:[#allocation5 + $0x54c] sm:$0xf0]  ;;  %v4247_v50 = vpack.c.bf16 %v116_v37, %v109_v36  ;;  %v3710_v13 = vld [vmem:[#allocation5 + $0x4] sm:$0xf]  ;;  %v2704_v21 = vor.u32 %v3746_v2, %v2701_v3 }
  0x45   :  { %1427 = vmatpush.bf16.msra.mxu2 %v2784_v12  ;;  %v3227_v46 = vld [vmem:[#allocation5 + $0x540] sm:$0xf]  ;;  %v3100_v52 = vor.u32 %v3848_v45, %v3099_v44  ;;  %v3844_v61 = vld [vmem:[#allocation5 + $0x42c] sm:$0xf0]  ;;  %v2557_v14 = vld [vmem:[#allocation5 + $0x10] sm:$0xf0] }
  0x46   :  { %1373 = vmatpush.bf16.msrb.mxu0 %v3132_v25  ;;  %v3228_v57 = vor.u32 %v3880_v47, %v3227_v46  ;;  %v3083_v59 = vld [vmem:[#allocation5 + $0x420] sm:$0xf]  ;;  %v3876_v63 = vld [vmem:[#allocation5 + $0x52c] sm:$0xf0]  ;;  %v3802_v15 = vld [vmem:[#allocation5 + $0x2e4] sm:$0xf]  ;;  %v2560_v27 = vor.u32 %v3710_v13, %v2557_v14 }
  0x47   :  { %1387 = vmatpush.bf16.msrb.mxu1 %v3260_v28  ;;  %v3211_v62 = vld [vmem:[#allocation5 + $0x520] sm:$0xf]  ;;  %v3084_v5 = vor.u32 %v3844_v61, %v3083_v59  ;;  %v3840_v7 = vld [vmem:[#allocation5 + $0x40c] sm:$0xf0]  ;;  %v2925_v16 = vld [vmem:[#allocation5 + $0x2f0] sm:$0xf0] }
  0x48   :  { %1415 = vmatpush.bf16.msrb.mxu3 %v2624_v29  ;;  %v3067_v6 = vld [vmem:[#allocation5 + $0x400] sm:$0xf]  ;;  %v3212_v10 = vor.u32 %v3876_v63, %v3211_v62  ;;  %v3872_v12 = vld [vmem:[#allocation5 + $0x50c] sm:$0xf0]  ;;  %v3834_v17 = vld [vmem:[#allocation5 + $0x3e4] sm:$0xf]  ;;  %v2928_v31 = vor.u32 %v3802_v15, %v2925_v16 }
  0x49   :  { %1428 = vmatpush.bf16.msra.mxu2 %v2768_v24  ;;  %v3195_v9 = vld [vmem:[#allocation5 + $0x500] sm:$0xf]  ;;  %v3053_v18 = vld [vmem:[#allocation5 + $0x3f0] sm:$0xf0]  ;;  %v3866_v19 = vld [vmem:[#allocation5 + $0x4e4] sm:$0xf]  ;;  %v3068_v22 = vor.u32 %v3840_v7, %v3067_v6 }
  0x4a   :  { %1374 = vmatpush.bf16.msrb.mxu0 %v3116_v39  ;;  %v3181_v20 = vld [vmem:[#allocation5 + $0x4f0] sm:$0xf0]  ;;  %v114_v24 = vld [vmem:[#allocation2 + $0x58] sm:$0xff]  ;;  %v3742_v25 = vld [vmem:[#allocation5 + $0x104] sm:$0xf]  ;;  %v3196_v26 = vor.u32 %v3872_v12, %v3195_v9  ;;  %v3056_v32 = vor.u32 %v3834_v17, %v3053_v18 }
  0x4b   :  { %1388 = vmatpush.bf16.msrb.mxu1 %v3244_v42  ;;  %3337 = vmatmul.msk.bf16.vlgmr.msrb.gmra.mxu2 %vm1310_vm0, %v4247_v50  ;;  %v107_v23 = vld [vmem:[#allocation2 + $0x20] sm:$0xff]  ;;  %v108_v29 = vld [vmem:[#allocation2 + $0x28] sm:$0xff]  ;;  %v3898_v33 = vld [vmem:[#allocation5 + $0x5e4] sm:$0xf]  ;;  %v3184_v36 = vor.u32 %v3866_v19, %v3181_v20 }
  0x4c   :  { %1416 = vmatpush.bf16.msrb.mxu3 %v2608_v43  ;;  %v2685_v28 = vld [vmem:[#allocation5 + $0x110] sm:$0xf0]  ;;  %v3798_v35 = vld [vmem:[#allocation5 + $0x2c4] sm:$0xf]  ;;  %v4251_v37 = vpack.c.bf16 %v114_v24, %v107_v23 }
  0x4d   :  { %1429 = vmatpush.bf16.msra.mxu2 %v2752_v38  ;;  %v115_v30 = vld [vmem:[#allocation2 + $0x60] sm:$0xff]  ;;  %v3830_v39 = vld [vmem:[#allocation5 + $0x3c4] sm:$0xf]  ;;  %v2688_v41 = vor.u32 %v3742_v25, %v2685_v28 }
  0x4e   :  { %1375 = vmatpush.bf16.msrb.mxu0 %v3100_v52  ;;  %v3309_v34 = vld [vmem:[#allocation5 + $0x5f0] sm:$0xf0]  ;;  %v4253_v42 = vpack.c.bf16 %v115_v30, %v108_v29  ;;  %v3862_v43 = vld [vmem:[#allocation5 + $0x4c4] sm:$0xf] }
  0x4f   :  { %1389 = vmatpush.bf16.msrb.mxu1 %v3228_v57  ;;  %v2909_v38 = vld [vmem:[#allocation5 + $0x2d0] sm:$0xf0]  ;;  %v3312_v45 = vor.u32 %v3898_v33, %v3309_v34  ;;  %v3894_v48 = vld [vmem:[#allocation5 + $0x5c4] sm:$0xf] }
  0x50   :  { %1417 = vmatpush.bf16.msrb.mxu3 %v2592_v58  ;;  %v3037_v40 = vld [vmem:[#allocation5 + $0x3d0] sm:$0xf0]  ;;  %v2912_v46 = vor.u32 %v3798_v35, %v2909_v38  ;;  %v3826_v56 = vld [vmem:[#allocation5 + $0x3a4] sm:$0xf] }
  0x51   :  { %1430 = vmatpush.bf16.msra.mxu2 %v2736_v51  ;;  %v3165_v44 = vld [vmem:[#allocation5 + $0x4d0] sm:$0xf0]  ;;  %v3040_v47 = vor.u32 %v3830_v39, %v3037_v40  ;;  %v3794_v51 = vld [vmem:[#allocation5 + $0x2a4] sm:$0xf] }
  0x52   :  { %1376 = vmatpush.bf16.msrb.mxu0 %v3084_v5  ;;  %v3293_v49 = vld [vmem:[#allocation5 + $0x5d0] sm:$0xf0]  ;;  %v3168_v52 = vor.u32 %v3862_v43, %v3165_v44  ;;  %v3858_v58 = vld [vmem:[#allocation5 + $0x4a4] sm:$0xf] }
  0x53   :  { %1390 = vmatpush.bf16.msrb.mxu1 %v3212_v10  ;;  %v2893_v53 = vld [vmem:[#allocation5 + $0x2b0] sm:$0xf0]  ;;  %v3296_v61 = vor.u32 %v3894_v48, %v3293_v49  ;;  %v3890_v0 = vld [vmem:[#allocation5 + $0x5a4] sm:$0xf] }
  0x54   :  { %1418 = vmatpush.bf16.msrb.mxu3 %v2576_v11  ;;  %v3021_v57 = vld [vmem:[#allocation5 + $0x3b0] sm:$0xf0]  ;;  %v2896_v62 = vor.u32 %v3794_v51, %v2893_v53  ;;  %v3790_v2 = vld [vmem:[#allocation5 + $0x284] sm:$0xf] }
  0x55   :  { %1431 = vmatpush.bf16.msra.mxu2 %v2720_v4  ;;  %v3149_v59 = vld [vmem:[#allocation5 + $0x4b0] sm:$0xf0]  ;;  %v3024_v63 = vor.u32 %v3826_v56, %v3021_v57  ;;  %v3822_v5 = vld [vmem:[#allocation5 + $0x384] sm:$0xf] }
  0x56   :  { %1377 = vmatpush.bf16.msrb.mxu0 %v3068_v22  ;;  %v3277_v1 = vld [vmem:[#allocation5 + $0x5b0] sm:$0xf0]  ;;  %v3152_v3 = vor.u32 %v3858_v58, %v3149_v59  ;;  %v3854_v7 = vld [vmem:[#allocation5 + $0x484] sm:$0xf] }
  0x57   :  { %1391 = vmatpush.bf16.msrb.mxu1 %v3196_v26  ;;  %v2877_v4 = vld [vmem:[#allocation5 + $0x290] sm:$0xf0]  ;;  %v3280_v10 = vor.u32 %v3890_v0, %v3277_v1  ;;  %v3886_v13 = vld [vmem:[#allocation5 + $0x584] sm:$0xf]  ;;  %v2675_v0 = vld [vmem:[#allocation5 + $0xe8] sm:$0xf] }
  0x58   :  { %1419 = vmatpush.bf16.msrb.mxu3 %v2560_v27  ;;  %v3005_v6 = vld [vmem:[#allocation5 + $0x390] sm:$0xf0]  ;;  %v2880_v11 = vor.u32 %v3790_v2, %v2877_v4  ;;  %v3786_v15 = vld [vmem:[#allocation5 + $0x264] sm:$0xf]  ;;  %v3741_v1 = vld [vmem:[#allocation5 + $0xf4] sm:$0xf0] }
  0x59   :  { %1432 = vmatpush.bf16.msra.mxu2 %v2704_v21  ;;  %1378 = vmatmul.bf16.vlgmr.msrb.gmra.mxu0 %v4251_v37  ;;  %v3133_v9 = vld [vmem:[#allocation5 + $0x490] sm:$0xf0]  ;;  %v3008_v12 = vor.u32 %v3822_v5, %v3005_v6  ;;  %v3818_v18 = vld [vmem:[#allocation5 + $0x364] sm:$0xf]  ;;  %v2803_v2 = vld [vmem:[#allocation5 + $0x1e8] sm:$0xf] }
  0x5a   :  { %1440 = vmatpush.bf16.msra.mxu0 %v2928_v31  ;;  %1392 = vmatmul.bf16.vlgmr.msrb.gmra.mxu1 %v4253_v42  ;;  %v3261_v14 = vld [vmem:[#allocation5 + $0x590] sm:$0xf0]  ;;  %v3136_v16 = vor.u32 %v3854_v7, %v3133_v9  ;;  %v3850_v20 = vld [vmem:[#allocation5 + $0x464] sm:$0xf]  ;;  %v3773_v4 = vld [vmem:[#allocation5 + $0x1f4] sm:$0xf0] }
  0x5b   :  { %1454 = vmatpush.bf16.msra.mxu1 %v3056_v32  ;;  %1420 = vmatmul.bf16.vlgmr.msrb.gmra.mxu3 %v4237_v55  ;;  %v2861_v17 = vld [vmem:[#allocation5 + $0x270] sm:$0xf0]  ;;  %v3264_v22 = vor.u32 %v3886_v13, %v3261_v14  ;;  %v3882_v25 = vld [vmem:[#allocation5 + $0x564] sm:$0xf]  ;;  %v2676_v13 = vor.u32 %v3741_v1, %v2675_v0  ;;  %v2931_v14 = vld [vmem:[#allocation5 + $0x2e8] sm:$0xf] }
  0x5c   :  { %1468 = vmatpush.bf16.msra.mxu3 %v3184_v36  ;;  %v2989_v19 = vld [vmem:[#allocation5 + $0x370] sm:$0xf0]  ;;  %v2864_v23 = vor.u32 %v3786_v15, %v2861_v17  ;;  %v3782_v27 = vld [vmem:[#allocation5 + $0x244] sm:$0xf]  ;;  %v3805_v15 = vld [vmem:[#allocation5 + $0x2f4] sm:$0xf0]  ;;  %v2804_v17 = vor.u32 %v3773_v4, %v2803_v2 }
  0x5d   :  { %1433 = vmatpush.bf16.msra.mxu2 %v2688_v41  ;;  %v3117_v21 = vld [vmem:[#allocation5 + $0x470] sm:$0xf0]  ;;  %v2992_v24 = vor.u32 %v3818_v18, %v2989_v19  ;;  %v3814_v30 = vld [vmem:[#allocation5 + $0x344] sm:$0xf]  ;;  %v3837_v19 = vld [vmem:[#allocation5 + $0x3f4] sm:$0xf0] }
  0x5e   :  { %1441 = vmatpush.bf16.msra.mxu0 %v2912_v46  ;;  %v3245_v26 = vld [vmem:[#allocation5 + $0x570] sm:$0xf0]  ;;  %v3120_v28 = vor.u32 %v3850_v20, %v3117_v21  ;;  %v3846_v32 = vld [vmem:[#allocation5 + $0x444] sm:$0xf]  ;;  %v2659_v20 = vld [vmem:[#allocation5 + $0xc8] sm:$0xf] }
  0x5f   :  { %1455 = vmatpush.bf16.msra.mxu1 %v3040_v47  ;;  %v2845_v29 = vld [vmem:[#allocation5 + $0x250] sm:$0xf0]  ;;  %v3248_v34 = vor.u32 %v3882_v25, %v3245_v26  ;;  %v3878_v38 = vld [vmem:[#allocation5 + $0x544] sm:$0xf]  ;;  %v3737_v21 = vld [vmem:[#allocation5 + $0xd4] sm:$0xf0]  ;;  %v2932_v25 = vor.u32 %v3805_v15, %v2931_v14 }
  0x60   :  { %1469 = vmatpush.bf16.msra.mxu3 %v3168_v52  ;;  %1434 = vmatmul.bf16.vlgmr.msra.gmra.mxu2 %v4243_v8  ;;  %v2973_v31 = vld [vmem:[#allocation5 + $0x350] sm:$0xf0]  ;;  %v2848_v35 = vor.u32 %v3782_v27, %v2845_v29  ;;  %v3778_v40 = vld [vmem:[#allocation5 + $0x224] sm:$0xf]  ;;  %v2660_v27 = vor.u32 %v3737_v21, %v2659_v20  ;;  %v3801_v29 = vld [vmem:[#allocation5 + $0x2d4] sm:$0xf0] }
  0x61   :  { %1482 = vmatpush.bf16.msrb.mxu2 %v3312_v45  ;;  %v3101_v33 = vld [vmem:[#allocation5 + $0x450] sm:$0xf0]  ;;  %v2976_v36 = vor.u32 %v3814_v30, %v2973_v31  ;;  %v3810_v44 = vld [vmem:[#allocation5 + $0x324] sm:$0xf]  ;;  %v3043_v30 = vld [vmem:[#allocation5 + $0x3c8] sm:$0xf] }
  0x62   :  { %1442 = vmatpush.bf16.msra.mxu0 %v2896_v62  ;;  %v3229_v39 = vld [vmem:[#allocation5 + $0x550] sm:$0xf0]  ;;  %v3104_v41 = vor.u32 %v3846_v32, %v3101_v33  ;;  %v3842_v46 = vld [vmem:[#allocation5 + $0x424] sm:$0xf]  ;;  %v3833_v32 = vld [vmem:[#allocation5 + $0x3d4] sm:$0xf0] }
  0x63   :  { %1456 = vmatpush.bf16.msra.mxu1 %v3024_v63  ;;  %v2829_v43 = vld [vmem:[#allocation5 + $0x230] sm:$0xf0]  ;;  %v3232_v48 = vor.u32 %v3878_v38, %v3229_v39  ;;  %v3874_v49 = vld [vmem:[#allocation5 + $0x524] sm:$0xf]  ;;  %v2643_v33 = vld [vmem:[#allocation5 + $0xa8] sm:$0xf]  ;;  %v3044_v39 = vor.u32 %v3833_v32, %v3043_v30 }
  0x64   :  { %1470 = vmatpush.bf16.msra.mxu3 %v3152_v3  ;;  %v2957_v45 = vld [vmem:[#allocation5 + $0x330] sm:$0xf0]  ;;  %v2832_v52 = vor.u32 %v3778_v40, %v2829_v43  ;;  %v3774_v56 = vld [vmem:[#allocation5 + $0x204] sm:$0xf]  ;;  %v3797_v43 = vld [vmem:[#allocation5 + $0x2b4] sm:$0xf0] }
  0x65   :  { %1483 = vmatpush.bf16.msrb.mxu2 %v3296_v61  ;;  %v3085_v47 = vld [vmem:[#allocation5 + $0x430] sm:$0xf0]  ;;  %v2960_v53 = vor.u32 %v3810_v44, %v2957_v45  ;;  %v3806_v58 = vld [vmem:[#allocation5 + $0x304] sm:$0xf]  ;;  %v3027_v44 = vld [vmem:[#allocation5 + $0x3a8] sm:$0xf] }
  0x66   :  { %1443 = vmatpush.bf16.msra.mxu0 %v2880_v11  ;;  %v3213_v51 = vld [vmem:[#allocation5 + $0x530] sm:$0xf0]  ;;  %v3088_v59 = vor.u32 %v3842_v46, %v3085_v47  ;;  %v3838_v62 = vld [vmem:[#allocation5 + $0x404] sm:$0xf]  ;;  %v3829_v46 = vld [vmem:[#allocation5 + $0x3b4] sm:$0xf0] }
  0x67   :  { %1457 = vmatpush.bf16.msra.mxu1 %v3008_v12  ;;  %v2813_v57 = vld [vmem:[#allocation5 + $0x210] sm:$0xf0]  ;;  %v3216_v3 = vor.u32 %v3874_v49, %v3213_v51  ;;  %v3902_v5 = vld [vmem:[#allocation5 + $0x604] sm:$0xf]  ;;  %v2627_v47 = vld [vmem:[#allocation5 + $0x88] sm:$0xf] }
  0x68   :  { %1471 = vmatpush.bf16.msra.mxu3 %v3136_v16  ;;  %v2941_v61 = vld [vmem:[#allocation5 + $0x310] sm:$0xf0]  ;;  %v2816_v7 = vor.u32 %v3774_v56, %v2813_v57  ;;  %v3059_v16 = vld [vmem:[#allocation5 + $0x3e8] sm:$0xf]  ;;  %v3761_v51 = vld [vmem:[#allocation5 + $0x194] sm:$0xf0]  ;;  %v3028_v57 = vor.u32 %v3829_v46, %v3027_v44 }
  0x69   :  { %1484 = vmatpush.bf16.msrb.mxu2 %v3280_v10  ;;  %v3069_v63 = vld [vmem:[#allocation5 + $0x410] sm:$0xf0]  ;;  %v2944_v9 = vor.u32 %v3806_v58, %v2941_v61  ;;  %v3870_v10 = vld [vmem:[#allocation5 + $0x504] sm:$0xf]  ;;  %v3060_v26 = vor.u32 %v3837_v19, %v3059_v16  ;;  %v2755_v49 = vld [vmem:[#allocation5 + $0x188] sm:$0xf] }
  0x6a   :  { %1444 = vmatpush.bf16.msra.mxu0 %v2864_v23  ;;  %v3325_v6 = vld [vmem:[#allocation5 + $0x610] sm:$0xf0]  ;;  %v3072_v12 = vor.u32 %v3838_v62, %v3069_v63  ;;  %v2787_v23 = vld [vmem:[#allocation5 + $0x1c8] sm:$0xf]  ;;  %v3793_v56 = vld [vmem:[#allocation5 + $0x294] sm:$0xf0]  ;;  %v2756_v62 = vor.u32 %v3761_v51, %v2755_v49 }
  0x6b   :  { %1458 = vmatpush.bf16.msra.mxu1 %v2992_v24  ;;  %v3197_v11 = vld [vmem:[#allocation5 + $0x510] sm:$0xf0]  ;;  %v3328_v18 = vor.u32 %v3902_v5, %v3325_v6  ;;  %v3769_v24 = vld [vmem:[#allocation5 + $0x1d4] sm:$0xf0]  ;;  %v2611_v63 = vld [vmem:[#allocation5 + $0x68] sm:$0xf] }
  0x6c   :  { %1472 = vmatpush.bf16.msra.mxu3 %v3120_v28  ;;  %v2915_v28 = vld [vmem:[#allocation5 + $0x2c8] sm:$0xf]  ;;  %v2788_v31 = vor.u32 %v3769_v24, %v2787_v23  ;;  %v3825_v61 = vld [vmem:[#allocation5 + $0x394] sm:$0xf0] }
  0x6d   :  { %1485 = vmatpush.bf16.msrb.mxu2 %v3264_v22  ;;  %v3200_v22 = vor.u32 %v3870_v10, %v3197_v11  ;;  %v2916_v38 = vor.u32 %v3801_v29, %v2915_v28  ;;  %v3725_v0 = vld [vmem:[#allocation5 + $0x74] sm:$0xf0]  ;;  %v2739_v1 = vld [vmem:[#allocation5 + $0x168] sm:$0xf] }
  0x6e   :  { %1445 = vmatpush.bf16.msra.mxu0 %v2848_v35  ;;  %v2771_v35 = vld [vmem:[#allocation5 + $0x1a8] sm:$0xf]  ;;  %v3757_v2 = vld [vmem:[#allocation5 + $0x174] sm:$0xf0]  ;;  %v2612_v5 = vor.u32 %v3725_v0, %v2611_v63 }
  0x6f   :  { %1459 = vmatpush.bf16.msra.mxu1 %v2976_v36  ;;  %v3765_v36 = vld [vmem:[#allocation5 + $0x1b4] sm:$0xf0]  ;;  %v2867_v6 = vld [vmem:[#allocation5 + $0x268] sm:$0xf]  ;;  %v2740_v10 = vor.u32 %v3757_v2, %v2739_v1 }
  0x70   :  { %1473 = vmatpush.bf16.msra.mxu3 %v3104_v41  ;;  %v2899_v41 = vld [vmem:[#allocation5 + $0x2a8] sm:$0xf]  ;;  %v2772_v45 = vor.u32 %v3765_v36, %v2771_v35  ;;  %v3821_v11 = vld [vmem:[#allocation5 + $0x374] sm:$0xf0] }
  0x71   :  { %1486 = vmatpush.bf16.msrb.mxu2 %v3248_v34  ;;  %v3733_v34 = vld [vmem:[#allocation5 + $0xb4] sm:$0xf0]  ;;  %v2723_v14 = vld [vmem:[#allocation5 + $0x148] sm:$0xf] }
  0x72   :  { %1446 = vmatpush.bf16.msra.mxu0 %v2832_v52  ;;  %v2644_v40 = vor.u32 %v3733_v34, %v2643_v33  ;;  %v2900_v52 = vor.u32 %v3797_v43, %v2899_v41  ;;  %v3753_v15 = vld [vmem:[#allocation5 + $0x154] sm:$0xf0]  ;;  %v2851_v19 = vld [vmem:[#allocation5 + $0x248] sm:$0xf] }
  0x73   :  { %1460 = vmatpush.bf16.msra.mxu1 %v2960_v53  ;;  %v2883_v53 = vld [vmem:[#allocation5 + $0x288] sm:$0xf]  ;;  %v3785_v20 = vld [vmem:[#allocation5 + $0x254] sm:$0xf0] }
  0x74   :  { %1474 = vmatpush.bf16.msra.mxu3 %v3088_v59  ;;  %v3011_v59 = vld [vmem:[#allocation5 + $0x388] sm:$0xf]  ;;  %v3817_v23 = vld [vmem:[#allocation5 + $0x354] sm:$0xf0]  ;;  %v2852_v28 = vor.u32 %v3785_v20, %v2851_v19 }
  0x75   :  { %1487 = vmatpush.bf16.msrb.mxu2 %v3232_v48  ;;  %v3729_v48 = vld [vmem:[#allocation5 + $0x94] sm:$0xf0]  ;;  %v3012_v4 = vor.u32 %v3825_v61, %v3011_v59  ;;  %v2979_v21 = vld [vmem:[#allocation5 + $0x348] sm:$0xf]  ;;  %v2677_v59 = vld [vmem:[#allocation5 + $0xf8] sm:$0xf0] }
  0x76   :  { %1447 = vmatpush.bf16.msra.mxu0 %v2816_v7  ;;  %v2628_v58 = vor.u32 %v3729_v48, %v2627_v47  ;;  %v3789_v7 = vld [vmem:[#allocation5 + $0x274] sm:$0xf0]  ;;  %v2579_v24 = vld [vmem:[#allocation5 + $0x28] sm:$0xf]  ;;  %v2980_v30 = vor.u32 %v3817_v23, %v2979_v21  ;;  %v2789_v23 = vld [vmem:[#allocation5 + $0x1d8] sm:$0xf0] }
  0x77   :  { %1461 = vmatpush.bf16.msra.mxu1 %v2944_v9  ;;  %v2995_v9 = vld [vmem:[#allocation5 + $0x368] sm:$0xf]  ;;  %v2868_v16 = vor.u32 %v3789_v7, %v2867_v6  ;;  %v3781_v32 = vld [vmem:[#allocation5 + $0x234] sm:$0xf0] }
  0x78   :  { %1475 = vmatpush.bf16.msra.mxu3 %v3072_v12  ;;  %v2595_v12 = vld [vmem:[#allocation5 + $0x48] sm:$0xf]  ;;  %v3813_v34 = vld [vmem:[#allocation5 + $0x334] sm:$0xf0] }
  0x79   :  { %1488 = vmatpush.bf16.msrb.mxu2 %v3216_v3  ;;  %1448 = vmatmul.bf16.vlgmr.msra.gmra.mxu0 %v4235_v54  ;;  %v2884_v3 = vor.u32 %v3793_v56, %v2883_v53  ;;  %v2835_v29 = vld [vmem:[#allocation5 + $0x228] sm:$0xf]  ;;  %v3869_v43 = vld [vmem:[#allocation5 + $0x4f4] sm:$0xf0] }
  0x7a   :  { %1503 = vmatpush.bf16.msrb.mxu0 %v3328_v18  ;;  %1462 = vmatmul.bf16.vlgmr.msra.gmra.mxu1 %v4239_v60  ;;  %v2963_v33 = vld [vmem:[#allocation5 + $0x328] sm:$0xf]  ;;  %v2836_v44 = vor.u32 %v3781_v32, %v2835_v29  ;;  %v3901_v46 = vld [vmem:[#allocation5 + $0x5f4] sm:$0xf0] }
  0x7b   :  { %1510 = vmatpush.bf16.msrb.mxu1 %v2676_v13  ;;  %1476 = vmatmul.bf16.vlgmr.msra.gmra.mxu3 %v4251_v37  ;;  %v3721_v13 = vld [vmem:[#allocation5 + $0x54] sm:$0xf0]  ;;  %v2563_v36 = vld [vmem:[#allocation5 + $0x8] sm:$0xf]  ;;  %v2964_v47 = vor.u32 %v3813_v34, %v2963_v33  ;;  %v3763_v34 = vld [vmem:[#allocation5 + $0x1ac] sm:$0xf] }
  0x7c   :  { %1524 = vmatpush.bf16.msrb.mxu3 %v2804_v17  ;;  %v2996_v17 = vor.u32 %v3821_v11, %v2995_v9  ;;  %v2596_v18 = vor.u32 %v3721_v13, %v2595_v12  ;;  %v3187_v41 = vld [vmem:[#allocation5 + $0x4e8] sm:$0xf]  ;;  %v3777_v51 = vld [vmem:[#allocation5 + $0x214] sm:$0xf0]  ;;  %v3771_v9 = vld [vmem:[#allocation5 + $0x1ec] sm:$0xf] }
  0x7d   :  { %1489 = vmatpush.bf16.msrb.mxu2 %v3200_v22  ;;  %v2724_v22 = vor.u32 %v3753_v15, %v2723_v14  ;;  %v2819_v49 = vld [vmem:[#allocation5 + $0x208] sm:$0xf]  ;;  %v3188_v56 = vor.u32 %v3869_v43, %v3187_v41  ;;  %v3865_v63 = vld [vmem:[#allocation5 + $0x4d4] sm:$0xf0]  ;;  %v3735_v11 = vld [vmem:[#allocation5 + $0xcc] sm:$0xf] }
  0x7e   :  { %1538 = vmatpush.bf16.msra.mxu0 %v2932_v25  ;;  %v3717_v25 = vld [vmem:[#allocation5 + $0x34] sm:$0xf0]  ;;  %v3299_v0 = vld [vmem:[#allocation5 + $0x5c8] sm:$0xf]  ;;  %v2820_v1 = vor.u32 %v3777_v51, %v2819_v49  ;;  %v2661_v14 = vld [vmem:[#allocation5 + $0xd8] sm:$0xf0] }
  0x7f   :  { %1511 = vmatpush.bf16.msrb.mxu1 %v2660_v27  ;;  %v3749_v27 = vld [vmem:[#allocation5 + $0x134] sm:$0xf0]  ;;  %v3155_v15 = vld [vmem:[#allocation5 + $0x4a8] sm:$0xf]  ;;  %v2664_v20 = vor.u32 %v3735_v11, %v2661_v14  ;;  %v2757_v49 = vld [vmem:[#allocation5 + $0x198] sm:$0xf0] }
  0x80   :  { %1525 = vmatpush.bf16.msrb.mxu3 %v2788_v31  ;;  %1490 = vmatmul.bf16.vlgmr.msrb.gmra.mxu2 %v4253_v42  ;;  %v2580_v31 = vor.u32 %v3717_v25, %v2579_v24  ;;  %v3897_v2 = vld [vmem:[#allocation5 + $0x5d4] sm:$0xf0]  ;;  %v3731_v24 = vld [vmem:[#allocation5 + $0xac] sm:$0xf]  ;;  %v3267_v29 = vld [vmem:[#allocation5 + $0x588] sm:$0xf] }
  0x81   :  { %1552 = vmatpush.bf16.msra.mxu2 %v3060_v26  ;;  %v2707_v26 = vld [vmem:[#allocation5 + $0x128] sm:$0xf]  ;;  %v3300_v12 = vor.u32 %v3897_v2, %v3299_v0  ;;  %v3853_v41 = vld [vmem:[#allocation5 + $0x474] sm:$0xf0]  ;;  %v3723_v51 = vld [vmem:[#allocation5 + $0x6c] sm:$0xf] }
  0x82   :  { %1539 = vmatpush.bf16.msra.mxu0 %v2916_v38  ;;  %v2708_v35 = vor.u32 %v3749_v27, %v2707_v26  ;;  %v3713_v38 = vld [vmem:[#allocation5 + $0x14] sm:$0xf0]  ;;  %v2645_v26 = vld [vmem:[#allocation5 + $0xb8] sm:$0xf0]  ;;  %v3139_v27 = vld [vmem:[#allocation5 + $0x488] sm:$0xf] }
  0x83   :  { %1512 = vmatpush.bf16.msrb.mxu1 %v2644_v40  ;;  %v3745_v40 = vld [vmem:[#allocation5 + $0x114] sm:$0xf0]  ;;  %v2564_v48 = vor.u32 %v3713_v38, %v2563_v36  ;;  %v2648_v32 = vor.u32 %v3731_v24, %v2645_v26  ;;  %v3727_v36 = vld [vmem:[#allocation5 + $0x8c] sm:$0xf]  ;;  %v3251_v43 = vld [vmem:[#allocation5 + $0x568] sm:$0xf] }
  0x84   :  { %1526 = vmatpush.bf16.msrb.mxu3 %v2772_v45  ;;  %v3315_v45 = vld [vmem:[#allocation5 + $0x5e8] sm:$0xf]  ;;  %v3755_v0 = vld [vmem:[#allocation5 + $0x16c] sm:$0xf]  ;;  %v2725_v14 = vld [vmem:[#allocation5 + $0x158] sm:$0xf0] }
  0x85   :  { %1553 = vmatpush.bf16.msra.mxu2 %v3044_v39  ;;  %v2691_v39 = vld [vmem:[#allocation5 + $0x108] sm:$0xf]  ;;  %v3316_v61 = vor.u32 %v3901_v46, %v3315_v45  ;;  %v3719_v2 = vld [vmem:[#allocation5 + $0x4c] sm:$0xf]  ;;  %v3061_v26 = vld [vmem:[#allocation5 + $0x3f8] sm:$0xf0] }
  0x86   :  { %1540 = vmatpush.bf16.msra.mxu0 %v2900_v52  ;;  %v2947_v52 = vld [vmem:[#allocation5 + $0x308] sm:$0xf]  ;;  %v2692_v53 = vor.u32 %v3745_v40, %v2691_v39  ;;  %v2629_v39 = vld [vmem:[#allocation5 + $0x98] sm:$0xf0]  ;;  %v3751_v11 = vld [vmem:[#allocation5 + $0x14c] sm:$0xf] }
  0x87   :  { %1513 = vmatpush.bf16.msrb.mxu1 %v2628_v58  ;;  %v3739_v58 = vld [vmem:[#allocation5 + $0xec] sm:$0xf]  ;;  %v3123_v40 = vld [vmem:[#allocation5 + $0x468] sm:$0xf]  ;;  %v2632_v46 = vor.u32 %v3727_v36, %v2629_v39  ;;  %v2728_v24 = vor.u32 %v3751_v11, %v2725_v14 }
  0x88   :  { %1527 = vmatpush.bf16.msrb.mxu3 %v2756_v62  ;;  %v3171_v62 = vld [vmem:[#allocation5 + $0x4c8] sm:$0xf]  ;;  %v2680_v6 = vor.u32 %v3739_v58, %v2677_v59  ;;  %v3881_v59 = vld [vmem:[#allocation5 + $0x554] sm:$0xf0]  ;;  %v3799_v39 = vld [vmem:[#allocation5 + $0x2cc] sm:$0xf] }
  0x89   :  { %1554 = vmatpush.bf16.msra.mxu2 %v3028_v57  ;;  %3338 = vmatmul.msk.bf16.vlgmr.msrb.gmra.mxu0 %vm1310_vm0, %v4247_v50  ;;  %v3809_v57 = vld [vmem:[#allocation5 + $0x314] sm:$0xf0]  ;;  %v3172_v7 = vor.u32 %v3865_v63, %v3171_v62  ;;  %v3235_v58 = vld [vmem:[#allocation5 + $0x548] sm:$0xf]  ;;  %v3823_v11 = vld [vmem:[#allocation5 + $0x38c] sm:$0xf] }
  0x8a   :  { %1541 = vmatpush.bf16.msra.mxu0 %v2884_v3  ;;  %v3331_v3 = vld [vmem:[#allocation5 + $0x608] sm:$0xf] }
  0x8b   :  { %1514 = vmatpush.bf16.msrb.mxu1 %v2612_v5  ;;  %v2948_v5 = vor.u32 %v3809_v57, %v2947_v52  ;;  %v3849_v57 = vld [vmem:[#allocation5 + $0x454] sm:$0xf0] }
  0x8c   :  { %1528 = vmatpush.bf16.msrb.mxu3 %v2740_v10  ;;  %v2805_v10 = vld [vmem:[#allocation5 + $0x1f8] sm:$0xf0] }
  0x8d   :  { %1555 = vmatpush.bf16.msra.mxu2 %v3012_v4  ;;  %v3905_v4 = vld [vmem:[#allocation5 + $0x614] sm:$0xf0]  ;;  %v2808_v19 = vor.u32 %v3771_v9, %v2805_v10 }
  0x8e   :  { %1542 = vmatpush.bf16.msra.mxu0 %v2868_v16  ;;  %v3332_v13 = vor.u32 %v3905_v4, %v3331_v3  ;;  %v3861_v16 = vld [vmem:[#allocation5 + $0x4b4] sm:$0xf0]  ;;  %v3236_v3 = vor.u32 %v3881_v59, %v3235_v58  ;;  %v2597_v4 = vld [vmem:[#allocation5 + $0x58] sm:$0xf0]  ;;  %v3795_v58 = vld [vmem:[#allocation5 + $0x2ac] sm:$0xf] }
  0x8f   :  { %1515 = vmatpush.bf16.msrb.mxu1 %v2596_v18  ;;  %v3893_v18 = vld [vmem:[#allocation5 + $0x5b4] sm:$0xf0]  ;;  %v3156_v21 = vor.u32 %v3861_v16, %v3155_v15  ;;  %v3715_v15 = vld [vmem:[#allocation5 + $0x2c] sm:$0xf]  ;;  %v2581_v16 = vld [vmem:[#allocation5 + $0x38] sm:$0xf0] }
  0x90   :  { %1529 = vmatpush.bf16.msrb.mxu3 %v2724_v22  ;;  %v3767_v22 = vld [vmem:[#allocation5 + $0x1cc] sm:$0xf]  ;;  %v3877_v9 = vld [vmem:[#allocation5 + $0x534] sm:$0xf0]  ;;  %v2901_v59 = vld [vmem:[#allocation5 + $0x2b8] sm:$0xf0] }
  0x91   :  { %1556 = vmatpush.bf16.msra.mxu2 %v2996_v17  ;;  %v3283_v17 = vld [vmem:[#allocation5 + $0x5a8] sm:$0xf] }
  0x92   :  { %1543 = vmatpush.bf16.msra.mxu0 %v2852_v28  ;;  %v3284_v25 = vor.u32 %v3893_v18, %v3283_v17  ;;  %v3857_v28 = vld [vmem:[#allocation5 + $0x494] sm:$0xf0]  ;;  %v3075_v18 = vld [vmem:[#allocation5 + $0x408] sm:$0xf] }
  0x93   :  { %1516 = vmatpush.bf16.msrb.mxu1 %v2580_v31  ;;  %v2792_v31 = vor.u32 %v3767_v22, %v2789_v23  ;;  %v3140_v33 = vor.u32 %v3857_v28, %v3139_v27  ;;  %v3803_v22 = vld [vmem:[#allocation5 + $0x2ec] sm:$0xf]  ;;  %v2933_v23 = vld [vmem:[#allocation5 + $0x2f8] sm:$0xf0]  ;;  %v2584_v27 = vor.u32 %v3715_v15, %v2581_v16 }
  0x94   :  { %1530 = vmatpush.bf16.msrb.mxu3 %v2708_v35  ;;  %v2773_v35 = vld [vmem:[#allocation5 + $0x1b8] sm:$0xf0]  ;;  %v3891_v16 = vld [vmem:[#allocation5 + $0x5ac] sm:$0xf] }
  0x95   :  { %1557 = vmatpush.bf16.msra.mxu2 %v2980_v30  ;;  %v3889_v30 = vld [vmem:[#allocation5 + $0x594] sm:$0xf0]  ;;  %v2776_v45 = vor.u32 %v3763_v34, %v2773_v35  ;;  %v2565_v34 = vld [vmem:[#allocation5 + $0x18] sm:$0xf0]  ;;  %v3867_v35 = vld [vmem:[#allocation5 + $0x4ec] sm:$0xf] }
  0x96   :  { %1544 = vmatpush.bf16.msra.mxu0 %v2836_v44  ;;  %v3268_v38 = vor.u32 %v3889_v30, %v3267_v29  ;;  %v3885_v44 = vld [vmem:[#allocation5 + $0x574] sm:$0xf0]  ;;  %v3747_v29 = vld [vmem:[#allocation5 + $0x12c] sm:$0xf]  ;;  %v2709_v30 = vld [vmem:[#allocation5 + $0x138] sm:$0xf0] }
  0x97   :  { %1517 = vmatpush.bf16.msrb.mxu1 %v2564_v48  ;;  %v3759_v48 = vld [vmem:[#allocation5 + $0x18c] sm:$0xf]  ;;  %v3252_v52 = vor.u32 %v3885_v44, %v3251_v43  ;;  %v3045_v44 = vld [vmem:[#allocation5 + $0x3d8] sm:$0xf0] }
  0x98   :  { %1531 = vmatpush.bf16.msrb.mxu3 %v2692_v53  ;;  %v2613_v53 = vld [vmem:[#allocation5 + $0x78] sm:$0xf0]  ;;  %v3831_v43 = vld [vmem:[#allocation5 + $0x3cc] sm:$0xf] }
  0x99   :  { %1558 = vmatpush.bf16.msra.mxu2 %v2964_v47  ;;  %v3124_v47 = vor.u32 %v3853_v41, %v3123_v40  ;;  %v2616_v62 = vor.u32 %v3723_v51, %v2613_v53  ;;  %v2917_v40 = vld [vmem:[#allocation5 + $0x2d8] sm:$0xf0]  ;;  %v2712_v41 = vor.u32 %v3747_v29, %v2709_v30  ;;  %v3899_v51 = vld [vmem:[#allocation5 + $0x5ec] sm:$0xf] }
  0x9a   :  { %1545 = vmatpush.bf16.msra.mxu0 %v2820_v1  ;;  %1518 = vmatmul.bf16.vlgmr.msrb.gmra.mxu1 %v4237_v55  ;;  %v2741_v1 = vld [vmem:[#allocation5 + $0x178] sm:$0xf0]  ;;  %v3863_v53 = vld [vmem:[#allocation5 + $0x4cc] sm:$0xf] }
  0x9b   :  { %1566 = vmatpush.bf16.msra.mxu1 %v3188_v56  ;;  %1532 = vmatmul.bf16.vlgmr.msrb.gmra.mxu3 %v4243_v8  ;;  %v3107_v56 = vld [vmem:[#allocation5 + $0x448] sm:$0xf]  ;;  %v2744_v10 = vor.u32 %v3755_v0, %v2741_v1  ;;  %v3851_v29 = vld [vmem:[#allocation5 + $0x46c] sm:$0xf] }
  0x9c   :  { %1580 = vmatpush.bf16.msra.mxu3 %v3316_v61  ;;  %v2760_v61 = vor.u32 %v3759_v48, %v2757_v49  ;;  %v3108_v63 = vor.u32 %v3849_v57, %v3107_v56  ;;  %v2920_v49 = vor.u32 %v3799_v39, %v2917_v40  ;;  %v3048_v56 = vor.u32 %v3831_v43, %v3045_v44  ;;  %v3173_v57 = vld [vmem:[#allocation5 + $0x4d8] sm:$0xf0]  ;;  %v3883_v39 = vld [vmem:[#allocation5 + $0x56c] sm:$0xf] }
  0x9d   :  { %1559 = vmatpush.bf16.msra.mxu2 %v2948_v5  ;;  %1546 = vmatmul.bf16.vlgmr.msra.gmra.mxu0 %v4235_v54  ;;  %v3091_v5 = vld [vmem:[#allocation5 + $0x428] sm:$0xf]  ;;  %v3176_v1 = vor.u32 %v3863_v53, %v3173_v57  ;;  %v3253_v40 = vld [vmem:[#allocation5 + $0x578] sm:$0xf0] }
  0x9e   :  { %1601 = vmatpush.bf16.msrb.mxu0 %v3332_v13  ;;  %v3109_v44 = vld [vmem:[#allocation5 + $0x458] sm:$0xf0] }
  0x9f   :  { %1567 = vmatpush.bf16.msra.mxu1 %v3172_v7  ;;  %v3219_v7 = vld [vmem:[#allocation5 + $0x528] sm:$0xf]  ;;  %v3237_v57 = vld [vmem:[#allocation5 + $0x558] sm:$0xf0] }
  0xa0   :  { %1581 = vmatpush.bf16.msra.mxu3 %v3300_v12  ;;  %1560 = vmatmul.bf16.vlgmr.msra.gmra.mxu2 %v4239_v60  ;;  %v2600_v12 = vor.u32 %v3719_v2, %v2597_v4  ;;  %v3220_v17 = vor.u32 %v3877_v9, %v3219_v7  ;;  %v2904_v2 = vor.u32 %v3795_v58, %v2901_v59  ;;  %v3301_v4 = vld [vmem:[#allocation5 + $0x5d8] sm:$0xf0]  ;;  %v3791_v9 = vld [vmem:[#allocation5 + $0x28c] sm:$0xf] }
  0xa1   :  { %1608 = vmatpush.bf16.msrb.mxu2 %v2680_v6  ;;  %v3845_v6 = vld [vmem:[#allocation5 + $0x434] sm:$0xf0]  ;;  %v3157_v7 = vld [vmem:[#allocation5 + $0x4b8] sm:$0xf0]  ;;  %v3843_v58 = vld [vmem:[#allocation5 + $0x42c] sm:$0xf] }
  0xa2   :  { %1622 = vmatpush.bf16.msra.mxu0 %v2808_v19  ;;  %v3092_v13 = vor.u32 %v3845_v6, %v3091_v5  ;;  %v3841_v19 = vld [vmem:[#allocation5 + $0x414] sm:$0xf0]  ;;  %v3859_v5 = vld [vmem:[#allocation5 + $0x4ac] sm:$0xf]  ;;  %v3093_v59 = vld [vmem:[#allocation5 + $0x438] sm:$0xf0] }
  0xa3   :  { %1568 = vmatpush.bf16.msra.mxu1 %v3156_v21  ;;  %v3873_v21 = vld [vmem:[#allocation5 + $0x514] sm:$0xf0]  ;;  %v3076_v28 = vor.u32 %v3841_v19, %v3075_v18  ;;  %v3160_v14 = vor.u32 %v3859_v5, %v3157_v7  ;;  %v3855_v18 = vld [vmem:[#allocation5 + $0x48c] sm:$0xf]  ;;  %v3333_v5 = vld [vmem:[#allocation5 + $0x618] sm:$0xf0] }
  0xa4   :  { %1582 = vmatpush.bf16.msra.mxu3 %v3284_v25  ;;  %v3835_v25 = vld [vmem:[#allocation5 + $0x3ec] sm:$0xf] }
  0xa5   :  { %1609 = vmatpush.bf16.msrb.mxu2 %v2664_v20  ;;  %v3203_v20 = vld [vmem:[#allocation5 + $0x508] sm:$0xf]  ;;  %v3064_v36 = vor.u32 %v3835_v25, %v3061_v26 }
  0xa6   :  { %1623 = vmatpush.bf16.msra.mxu0 %v2792_v31  ;;  %v3204_v31 = vor.u32 %v3873_v21, %v3203_v20  ;;  %v3141_v20 = vld [vmem:[#allocation5 + $0x498] sm:$0xf0]  ;;  %v3787_v21 = vld [vmem:[#allocation5 + $0x26c] sm:$0xf] }
  0xa7   :  { %1569 = vmatpush.bf16.msra.mxu1 %v3140_v33  ;;  %v3711_v33 = vld [vmem:[#allocation5 + $0xc] sm:$0xf]  ;;  %v3144_v25 = vor.u32 %v3855_v18, %v3141_v20  ;;  %v3077_v18 = vld [vmem:[#allocation5 + $0x418] sm:$0xf0] }
  0xa8   :  { %1583 = vmatpush.bf16.msra.mxu3 %v3268_v38  ;;  %v3189_v38 = vld [vmem:[#allocation5 + $0x4f8] sm:$0xf0] }
  0xa9   :  { %1610 = vmatpush.bf16.msrb.mxu2 %v2648_v32  ;;  %v2936_v32 = vor.u32 %v3803_v22, %v2933_v23  ;;  %v3192_v48 = vor.u32 %v3867_v35, %v3189_v38  ;;  %v2869_v22 = vld [vmem:[#allocation5 + $0x278] sm:$0xf0]  ;;  %v3819_v23 = vld [vmem:[#allocation5 + $0x36c] sm:$0xf] }
  0xaa   :  { %1624 = vmatpush.bf16.msra.mxu0 %v2776_v45  ;;  %v2568_v45 = vor.u32 %v3711_v33, %v2565_v34  ;;  %v2872_v26 = vor.u32 %v3787_v21, %v2869_v22  ;;  %v2853_v33 = vld [vmem:[#allocation5 + $0x258] sm:$0xf0]  ;;  %v3815_v34 = vld [vmem:[#allocation5 + $0x34c] sm:$0xf]  ;;  %v3463_v21 = vld [vmem:[#allocation7 + $0xf0] sm:$0xf] }
  0xab   :  { %1570 = vmatpush.bf16.msra.mxu1 %v3124_v47  ;;  %v2693_v47 = vld [vmem:[#allocation5 + $0x118] sm:$0xf0]  ;;  %v3937_v22 = vld [vmem:[#allocation7 + $0xf4] sm:$0xf0] }
  0xac   :  { %1584 = vmatpush.bf16.msra.mxu3 %v3252_v52  ;;  %v3317_v52 = vld [vmem:[#allocation5 + $0x5f8] sm:$0xf0] }
  0xad   :  { %1611 = vmatpush.bf16.msrb.mxu2 %v2632_v46  ;;  %3339 = vmatmul.msk.bf16.vlgmr.msrb.gmra.mxu0 %vm1310_vm0, %v4247_v50  ;;  %v3743_v46 = vld [vmem:[#allocation5 + $0x10c] sm:$0xf]  ;;  %v3320_v0 = vor.u32 %v3899_v51, %v3317_v52  ;;  %v2981_v35 = vld [vmem:[#allocation5 + $0x358] sm:$0xf0]  ;;  %v4278_v52 = vld [vmem:[%s4350_s2] sm:$0xf] }
  0xae   :  { %1625 = vmatpush.bf16.msra.mxu0 %v2760_v61  ;;  %v2696_v61 = vor.u32 %v3743_v46, %v2693_v47  ;;  %v2984_v43 = vor.u32 %v3815_v34, %v2981_v35  ;;  %v2837_v46 = vld [vmem:[#allocation5 + $0x238] sm:$0xf0]  ;;  %v3811_v47 = vld [vmem:[#allocation5 + $0x32c] sm:$0xf]  ;;  %v3383_v35 = vld [vmem:[#allocation7 + $0x50] sm:$0xf] }
  0xaf   :  { %1571 = vmatpush.bf16.msra.mxu1 %v3108_v63  ;;  %v3029_v63 = vld [vmem:[#allocation5 + $0x3b8] sm:$0xf0]  ;;  %v3879_v51 = vld [vmem:[#allocation5 + $0x54c] sm:$0xf] }
  0xb0   :  { %1585 = vmatpush.bf16.msra.mxu3 %v3236_v3  ;;  %v3895_v3 = vld [vmem:[#allocation5 + $0x5cc] sm:$0xf]  ;;  %v3240_v7 = vor.u32 %v3879_v51, %v3237_v57 }
  0xb1   :  { %1612 = vmatpush.bf16.msrb.mxu2 %v2616_v62  ;;  %v3827_v62 = vld [vmem:[#allocation5 + $0x3ac] sm:$0xf] }
  0xb2   :  { %1626 = vmatpush.bf16.msra.mxu0 %v2744_v10  ;;  %v3032_v6 = vor.u32 %v3827_v62, %v3029_v63  ;;  %v2885_v10 = vld [vmem:[#allocation5 + $0x298] sm:$0xf0]  ;;  %v3775_v63 = vld [vmem:[#allocation5 + $0x20c] sm:$0xf] }
  0xb3   :  { %1572 = vmatpush.bf16.msra.mxu1 %v3092_v13  ;;  %v3304_v13 = vor.u32 %v3895_v3, %v3301_v4  ;;  %v2888_v15 = vor.u32 %v3791_v9, %v2885_v10  ;;  %v2949_v3 = vld [vmem:[#allocation5 + $0x318] sm:$0xf0]  ;;  %v3903_v4 = vld [vmem:[#allocation5 + $0x60c] sm:$0xf]  ;;  %v3399_v9 = vld [vmem:[#allocation7 + $0x70] sm:$0xf] }
  0xb4   :  { %1586 = vmatpush.bf16.msra.mxu3 %v3220_v17  ;;  %v3285_v17 = vld [vmem:[#allocation5 + $0x5b8] sm:$0xf0]  ;;  %v3921_v10 = vld [vmem:[#allocation7 + $0x74] sm:$0xf0] }
  0xb5   :  { %1613 = vmatpush.bf16.msrb.mxu2 %v2600_v12  ;;  %v3013_v12 = vld [vmem:[#allocation5 + $0x398] sm:$0xf0]  ;;  %v3400_v20 = vor.u32 %v3921_v10, %v3399_v9 }
  0xb6   :  { %1627 = vmatpush.bf16.msra.mxu0 %v2728_v24  ;;  %v3016_v19 = vor.u32 %v3823_v11, %v3013_v12  ;;  %v2997_v24 = vld [vmem:[#allocation5 + $0x378] sm:$0xf0]  ;;  %v3096_v11 = vor.u32 %v3843_v58, %v3093_v59  ;;  %v3367_v58 = vld [vmem:[#allocation7 + $0x30] sm:$0xf]  ;;  %v3913_v59 = vld [vmem:[#allocation7 + $0x34] sm:$0xf0] }
  0xb7   :  { %1573 = vmatpush.bf16.msra.mxu1 %v3076_v28  ;;  %v3269_v28 = vld [vmem:[#allocation5 + $0x598] sm:$0xf0]  ;;  %v3000_v30 = vor.u32 %v3819_v23, %v2997_v24  ;;  %v3391_v24 = vld [vmem:[#allocation7 + $0x60] sm:$0xf] }
  0xb8   :  { %1587 = vmatpush.bf16.msra.mxu3 %v3204_v31  ;;  %v3125_v31 = vld [vmem:[#allocation5 + $0x478] sm:$0xf0] }
  0xb9   :  { %1614 = vmatpush.bf16.msrb.mxu2 %v2584_v27  ;;  %v3887_v27 = vld [vmem:[#allocation5 + $0x58c] sm:$0xf] }
  0xba   :  { %1628 = vmatpush.bf16.msra.mxu0 %v2712_v41  ;;  %1574 = vmatmul.bf16.vlgmr.msra.gmra.mxu1 %v4251_v37  ;;  %v3847_v41 = vld [vmem:[#allocation5 + $0x44c] sm:$0xf] }
  0xbb   :  { %1636 = vmatpush.bf16.msrb.mxu1 %v2936_v32  ;;  %1588 = vmatmul.bf16.vlgmr.msra.gmra.mxu3 %v4253_v42  ;;  %v3783_v32 = vld [vmem:[#allocation5 + $0x24c] sm:$0xf]  ;;  %v3112_v53 = vor.u32 %v3847_v41, %v3109_v44 }
  0xbc   :  { %1650 = vmatpush.bf16.msrb.mxu3 %v3064_v36  ;;  %v3128_v36 = vor.u32 %v3851_v29, %v3125_v31  ;;  %v2856_v38 = vor.u32 %v3783_v32, %v2853_v33  ;;  %v3464_v29 = vor.u32 %v3937_v22, %v3463_v21  ;;  %v3455_v31 = vld [vmem:[#allocation7 + $0xe0] sm:$0xf]  ;;  %v3935_v32 = vld [vmem:[#allocation7 + $0xe4] sm:$0xf0]  ;;  %v3415_v22 = vld [vmem:[#allocation7 + $0x90] sm:$0xf] }
  0xbd   :  { %1615 = vmatpush.bf16.msrb.mxu2 %v2568_v45  ;;  %v3779_v45 = vld [vmem:[#allocation5 + $0x22c] sm:$0xf]  ;;  %v3456_v41 = vor.u32 %v3935_v32, %v3455_v31  ;;  %v3407_v32 = vld [vmem:[#allocation7 + $0x80] sm:$0xf] }
  0xbe   :  { %1629 = vmatpush.bf16.msra.mxu0 %v2696_v61  ;;  %v1323_v61 = vpop.f32.mrf.mxu0 }
  0xbf   :  { %1637 = vmatpush.bf16.msrb.mxu1 %v2920_v49  ;;  %v3256_v49 = vor.u32 %v3883_v39, %v3253_v40 }
  0xc0   :  { %1651 = vmatpush.bf16.msrb.mxu3 %v3048_v56  ;;  %1616 = vmatmul.bf16.vlgmr.msrb.gmra.mxu2 %v4237_v55  ;;  %v3288_v55 = vor.u32 %v3891_v16, %v3285_v17  ;;  %v2840_v56 = vor.u32 %v3779_v45, %v2837_v46  ;;  %v3839_v17 = vld [vmem:[#allocation5 + $0x40c] sm:$0xf]  ;;  %v1365_v39 = vpop.f32.mrf.mxu3  ;;  %v3447_v45 = vld [vmem:[#allocation7 + $0xd0] sm:$0xf]  ;;  %v3933_v46 = vld [vmem:[#allocation7 + $0xd4] sm:$0xf0] }
  0xc1   :  { %1664 = vmatpush.bf16.msra.mxu2 %v3192_v48  ;;  %1630 = vmatmul.bf16.vlgmr.msra.gmra.mxu0 %v4243_v8  ;;  %v3272_v8 = vor.u32 %v3887_v27, %v3269_v28  ;;  %v2965_v48 = vld [vmem:[#allocation5 + $0x338] sm:$0xf0] }
  0xc2   :  { %1678 = vmatpush.bf16.msrb.mxu0 %v3320_v0  ;;  %v2968_v62 = vor.u32 %v3811_v47, %v2965_v48  ;;  %v2821_v0 = vld [vmem:[#allocation5 + $0x218] sm:$0xf0]  ;;  %v3915_v47 = vld [vmem:[#allocation7 + $0x44] sm:$0xf0] }
  0xc3   :  { %1638 = vmatpush.bf16.msrb.mxu1 %v2904_v2  ;;  %v1337_v2 = vpop.f32.mrf.mxu1  ;;  %v2824_v12 = vor.u32 %v3775_v63, %v2821_v0  ;;  %v3205_v27 = vld [vmem:[#allocation5 + $0x518] sm:$0xf0] }
  0xc4   :  { %1652 = vmatpush.bf16.msrb.mxu3 %v3032_v6  ;;  %v1351_v6 = vpop.f32.mrf.mxu2 }
  0xc5   :  { %1665 = vmatpush.bf16.msra.mxu2 %v3176_v1  ;;  %v3807_v1 = vld [vmem:[#allocation5 + $0x30c] sm:$0xf] }
  0xc6   :  { %1679 = vmatpush.bf16.msrb.mxu0 %v3304_v13  ;;  %v3875_v13 = vld [vmem:[#allocation5 + $0x52c] sm:$0xf]  ;;  %v2952_v16 = vor.u32 %v3807_v1, %v2949_v3  ;;  %v1325_v33 = vpop.f32.mrf.mxu0  ;;  %v3368_v1 = vor.u32 %v3913_v59, %v3367_v58  ;;  %v3929_v3 = vld [vmem:[#allocation7 + $0xb4] sm:$0xf0]  ;;  %v3914_v58 = vld [vmem:[#allocation7 + $0x44] sm:$0xf] }
  0xc7   :  { %1639 = vmatpush.bf16.msrb.mxu1 %v2888_v15  ;;  %v322_v15 = vperm.slane %v4278_v52, 0  ;;  %v3377_v59 = vld [vmem:[#allocation7 + $0x48] sm:$0xf0] }
  0xc8   :  { %1653 = vmatpush.bf16.msrb.mxu3 %v3016_v19  ;;  %v3336_v19 = vor.u32 %v3903_v4, %v3333_v5  ;;  %v1367_v4 = vpop.f32.mrf.mxu3 }
  0xc9   :  { %1666 = vmatpush.bf16.msra.mxu2 %v3160_v14  ;;  %v3221_v14 = vld [vmem:[#allocation5 + $0x538] sm:$0xf0]  ;;  %v1324_v28 = vadd.f32 %v1323_v61, %v322_v15 }
  0xca   :  { %1680 = vmatpush.bf16.msrb.mxu0 %v3288_v55  ;;  %v3224_v23 = vor.u32 %v3875_v13, %v3221_v14  ;;  %v3919_v55 = vld [vmem:[#allocation7 + $0x64] sm:$0xf0] }
  0xcb   :  { %1640 = vmatpush.bf16.msrb.mxu1 %v2872_v26  ;;  %v3871_v26 = vld [vmem:[#allocation5 + $0x50c] sm:$0xf] }
  0xcc   :  { %1654 = vmatpush.bf16.msrb.mxu3 %v3000_v30  ;;  %v3392_v30 = vor.u32 %v3919_v55, %v3391_v24  ;;  %v3208_v34 = vor.u32 %v3871_v26, %v3205_v27  ;;  %v1353_v40 = vpop.f32.mrf.mxu2  ;;  %v3907_v26 = vld [vmem:[#allocation7 + $0x4] sm:$0xf0] }
  0xcd   :  { %1667 = vmatpush.bf16.msra.mxu2 %v3144_v25  ;;  %v3080_v25 = vor.u32 %v3839_v17, %v3077_v18 }
  0xce   :  { %1681 = vmatpush.bf16.msrb.mxu0 %v3272_v8  ;;  %v3917_v8 = vld [vmem:[#allocation7 + $0x54] sm:$0xf0] }
  0xcf   :  { %1641 = vmatpush.bf16.msrb.mxu1 %v2856_v38  ;;  %v1338_v38 = vadd.f32 %v1337_v2, %v1324_v28  ;;  %v3384_v44 = vor.u32 %v3917_v8, %v3383_v35  ;;  %v3431_v2 = vld [vmem:[#allocation7 + $0xb0] sm:$0xf]  ;;  %v3920_v28 = vld [vmem:[#allocation7 + $0x74] sm:$0xf] }
  0xd0   :  { %1655 = vmatpush.bf16.msrb.mxu3 %v2984_v43  ;;  %v1326_v43 = vadd.f32 %v1325_v33, %v322_v15  ;;  %v3351_v15 = vld [vmem:[#allocation7 + $0x10] sm:$0xf]  ;;  %v3923_v33 = vld [vmem:[#allocation7 + $0x84] sm:$0xf0]  ;;  %v3936_v8 = vld [vmem:[#allocation7 + $0xf4] sm:$0xf] }
  0xd1   :  { %1668 = vmatpush.bf16.msra.mxu2 %v3128_v36  ;;  %v1339_v36 = vpop.f32.mrf.mxu1  ;;  %v1352_v48 = vadd.f32 %v1351_v6, %v1338_v38  ;;  %v3911_v6 = vld [vmem:[#allocation7 + $0x24] sm:$0xf0] }
  0xd2   :  { %1682 = vmatpush.bf16.msrb.mxu0 %v3256_v49  ;;  %v3448_v49 = vor.u32 %v3933_v46, %v3447_v45 }
  0xd3   :  { %1642 = vmatpush.bf16.msrb.mxu1 %v2840_v56  ;;  %v3931_v56 = vld [vmem:[#allocation7 + $0xc4] sm:$0xf0] }
  0xd4   :  { %1656 = vmatpush.bf16.msrb.mxu3 %v2968_v62  ;;  %v1366_v62 = vadd.f32 %v1365_v39, %v1352_v48  ;;  %v1407_v63 = vpop.f32.mrf.mxu2  ;;  %v3918_v39 = vld [vmem:[#allocation7 + $0x64] sm:$0xf]  ;;  %v3916_v48 = vld [vmem:[#allocation7 + $0x54] sm:$0xf] }
  0xd5   :  { %1669 = vmatpush.bf16.msra.mxu2 %v3112_v53  ;;  %v3439_v53 = vld [vmem:[#allocation7 + $0xc0] sm:$0xf] }
  0xd6   :  { %1683 = vmatpush.bf16.msrb.mxu0 %v3240_v7  ;;  %v1379_v57 = vpop.f32.mrf.mxu0  ;;  %v3432_v7 = vor.u32 %v3929_v3, %v3431_v2  ;;  %v3912_v2 = vld [vmem:[#allocation7 + $0x34] sm:$0xf]  ;;  %v3369_v3 = vld [vmem:[#allocation7 + $0x38] sm:$0xf0] }
  0xd7   :  { %1643 = vmatpush.bf16.msrb.mxu1 %v2824_v12  ;;  %v1380_v5 = vadd.f32 %v1379_v57, %v1366_v62  ;;  %v3927_v12 = vld [vmem:[#allocation7 + $0xa4] sm:$0xf0]  ;;  %v323_v57 = vperm.slane %v4278_v52, 1 }
  0xd8   :  { %1657 = vmatpush.bf16.msrb.mxu3 %v2952_v16  ;;  %v3909_v16 = vld [vmem:[#allocation7 + $0x14] sm:$0xf0] }
  0xd9   :  { %1670 = vmatpush.bf16.msra.mxu2 %v3096_v11  ;;  %v1393_v61 = vpop.f32.mrf.mxu1  ;;  %v3423_v11 = vld [vmem:[#allocation7 + $0xa0] sm:$0xf]  ;;  %v3352_v21 = vor.u32 %v3909_v16, %v3351_v15  ;;  %v3527_v15 = vld [vmem:[#allocation7 + $0x170] sm:$0xf]  ;;  %v3953_v16 = vld [vmem:[#allocation7 + $0x174] sm:$0xf0] }
  0xda   :  { %1684 = vmatpush.bf16.msrb.mxu0 %v3224_v23  ;;  %1644 = vmatmul.bf16.vlgmr.msrb.gmra.mxu1 %v4235_v54  ;;  %v3375_v54 = vld [vmem:[#allocation7 + $0x40] sm:$0xf]  ;;  %v1394_v13 = vadd.f32 %v1393_v61, %v1380_v5  ;;  %v3925_v23 = vld [vmem:[#allocation7 + $0x94] sm:$0xf0] }
  0xdb   :  { %1699 = vmatpush.bf16.msra.mxu1 %v3336_v19  ;;  %1658 = vmatmul.bf16.vlgmr.msrb.gmra.mxu3 %v4239_v60  ;;  %v1340_v60 = vadd.f32 %v1339_v36, %v1326_v43  ;;  %v3376_v51 = vor.u32 %v3915_v47, %v3375_v54  ;;  %v3424_v19 = vor.u32 %v3927_v12, %v3423_v11  ;;  %v3465_v36 = vld [vmem:[#allocation7 + $0xf8] sm:$0xf0]  ;;  %v3934_v54 = vld [vmem:[#allocation7 + $0xe4] sm:$0xf]  ;;  %v3457_v47 = vld [vmem:[#allocation7 + $0xe8] sm:$0xf0] }
  0xdc   :  { %2108 = vmatpush.bf16.msra.mxu3 %v3400_v20  ;;  %v1408_v24 = vadd.f32 %v1407_v63, %v1394_v13  ;;  %v1409_v55 = vpop.f32.mrf.mxu2  ;;  %v3408_v43 = vor.u32 %v3923_v33, %v3407_v32  ;;  %v3380_v63 = vor.u32 %v3914_v58, %v3377_v59  ;;  %v3906_v32 = vld [vmem:[#allocation7 + $0x4] sm:$0xf]  ;;  %v3924_v33 = vld [vmem:[#allocation7 + $0x94] sm:$0xf]  ;;  %v3495_v58 = vld [vmem:[#allocation7 + $0x130] sm:$0xf] }
  0xdd   :  { %1671 = vmatpush.bf16.msra.mxu2 %v3080_v25  ;;  %v1354_v0 = vadd.f32 %v1353_v40, %v1340_v60  ;;  %v3343_v25 = vld [vmem:[#allocation7] sm:$0xf]  ;;  %v3393_v40 = vld [vmem:[#allocation7 + $0x68] sm:$0xf0]  ;;  %v3460_v60 = vor.u32 %v3934_v54, %v3457_v47  ;;  %v3945_v59 = vld [vmem:[#allocation7 + $0x134] sm:$0xf0] }
  0xde   :  { %1685 = vmatpush.bf16.msrb.mxu0 %v3208_v34  ;;  %v1381_v14 = vpop.f32.mrf.mxu0  ;;  %v3344_v31 = vor.u32 %v3907_v26, %v3343_v25  ;;  %v1706_v34 = vmax.f32 %v1408_v24, 0.0  ;;  %v1421_v38 = vpop.f32.mrf.mxu3  ;;  %v3396_v46 = vor.u32 %v3918_v39, %v3393_v40  ;;  %v3353_v25 = vld [vmem:[#allocation7 + $0x18] sm:$0xf0]  ;;  %v3519_v26 = vld [vmem:[#allocation7 + $0x160] sm:$0xf] }
  0xdf   :  { %2122 = vmatpush.bf16.msrb.mxu1 %v3464_v29  ;;  %v1368_v9 = vadd.f32 %v1367_v4, %v1354_v0  ;;  %v3401_v29 = vld [vmem:[#allocation7 + $0x78] sm:$0xf0]  ;;  %v3441_v0 = vld [vmem:[#allocation7 + $0xc8] sm:$0xf0]  ;;  %v3949_v39 = vld [vmem:[#allocation7 + $0x154] sm:$0xf0] }
  0xe0   :  { %2109 = vmatpush.bf16.msra.mxu3 %v3392_v30  ;;  %1672 = vmatmul.bf16.vlgmr.msra.gmra.mxu2 %v4251_v37  ;;  %v3440_v37 = vor.u32 %v3931_v56, %v3439_v53  ;;  %v3404_v35 = vor.u32 %v3920_v28, %v3401_v29  ;;  %v3932_v53 = vld [vmem:[#allocation7 + $0xd4] sm:$0xf]  ;;  %v3449_v56 = vld [vmem:[#allocation7 + $0xd8] sm:$0xf0]  ;;  %v3409_v54 = vld [vmem:[#allocation7 + $0x88] sm:$0xf0] }
  0xe1   :  { %1686 = vmatmul.bf16.vlgmr.msrb.gmra.mxu0 %v4253_v42  ;;  %v3359_v42 = vld [vmem:[#allocation7 + $0x20] sm:$0xf]  ;;  %v1382_v17 = vadd.f32 %v1381_v14, %v1368_v9  ;;  %v1395_v18 = vpop.f32.mrf.mxu1  ;;  %v3452_v62 = vor.u32 %v3932_v53, %v3449_v56  ;;  %v3928_v9 = vld [vmem:[#allocation7 + $0xb4] sm:$0xf]  ;;  %v3361_v14 = vld [vmem:[#allocation7 + $0x28] sm:$0xf0] }
  0xe2   :  { %v3360_v10 = vor.u32 %v3911_v6, %v3359_v42  ;;  %v3372_v6 = vor.u32 %v3912_v2, %v3369_v3 }
  0xe3   :  { %2123 = vmatpush.bf16.msrb.mxu1 %v3456_v41  ;;  %v1396_v20 = vadd.f32 %v1395_v18, %v1382_v17  ;;  %v3528_v17 = vor.u32 %v3953_v16, %v3527_v15  ;;  %v3529_v16 = vld [vmem:[#allocation7 + $0x178] sm:$0xf0] }
  0xe4   :  { %2110 = vmatpush.bf16.msra.mxu3 %v3384_v44  ;;  %v3468_v44 = vor.u32 %v3936_v8, %v3465_v36  ;;  %v1435_v45 = vpop.f32.mrf.mxu2  ;;  %v3345_v36 = vld [vmem:[#allocation7 + $0x8] sm:$0xf0] }
  0xe5   :  { %v1410_v27 = vadd.f32 %v1409_v55, %v1396_v20  ;;  %v3908_v20 = vld [vmem:[#allocation7 + $0x14] sm:$0xf]  ;;  %2136 = vmatpush.bf16.msrb.mxu2 %v3528_v17 }
  0xe6   :  { %v1423_v61 = vpop.f32.mrf.mxu3 }
  0xe7   :  { %2124 = vmatpush.bf16.msrb.mxu1 %v3448_v49  ;;  %v1710_v30 = vmax.f32 %v1410_v27, 0.0  ;;  %v3385_v49 = vld [vmem:[#allocation7 + $0x58] sm:$0xf0]  ;;  %v1424_v12 = vadd.f32 %v1423_v61, %v323_v57  ;;  %v3951_v27 = vld [vmem:[#allocation7 + $0x164] sm:$0xf0]  ;;  %v3496_v61 = vor.u32 %v3945_v59, %v3495_v58 }
  0xe8   :  { %2111 = vmatpush.bf16.msra.mxu3 %v3376_v51  ;;  %v3388_v51 = vor.u32 %v3916_v48, %v3385_v49  ;;  %v3520_v29 = vor.u32 %v3951_v27, %v3519_v26  ;;  %v3503_v49 = vld [vmem:[#allocation7 + $0x140] sm:$0xf]  ;;  %v3513_v26 = vld [vmem:[#allocation7 + $0x158] sm:$0xf0] }
  0xe9   :  { %v4287_v41 = vpack.c.bf16 %v1710_v30, %v1706_v34  ;;  %v3417_v34 = vld [vmem:[#allocation7 + $0x98] sm:$0xf0] }
  0xea   :  { %3340 = vmatmul.msk.bf16.vlgmr.msra.gmra.mxu1 %vm1310_vm0, %v4247_v50  ;;  %v3416_v50 = vor.u32 %v3925_v23, %v3415_v22  ;;  %v3425_v22 = vld [vmem:[#allocation7 + $0xa8] sm:$0xf0]  ;;  %2137 = vmatpush.bf16.msrb.mxu2 %v3520_v29  ;;  %v3967_v29 = vld [vmem:[#allocation7 + $0x1e4] sm:$0xf0] }
  0xeb   :  { %2125 = vmatpush.bf16.msrb.mxu1 %v3440_v37  ;;  %v3930_v37 = vld [vmem:[#allocation7 + $0xc4] sm:$0xf] }
  0xec   :  { %2112 = vmatpush.bf16.msra.mxu3 %v3368_v1  ;;  %v1422_v1 = vadd.f32 %v1421_v38, %v323_v57  ;;  %v1437_v5 = vpop.f32.mrf.mxu2  ;;  %v3444_v42 = vor.u32 %v3930_v37, %v3441_v0  ;;  %v3511_v38 = vld [vmem:[#allocation7 + $0x150] sm:$0xf]  ;;  %v3487_v37 = vld [vmem:[#allocation7 + $0x120] sm:$0xf]  ;;  %v3943_v0 = vld [vmem:[#allocation7 + $0x124] sm:$0xf0] }
  0xed   :  { %v1438_v24 = vadd.f32 %v1437_v5, %v1424_v12  ;;  %v3488_v2 = vor.u32 %v3943_v0, %v3487_v37 }
  0xee   :  { %v1436_v11 = vadd.f32 %v1435_v45, %v1422_v1  ;;  %v3348_v45 = vor.u32 %v3906_v32, %v3345_v36 }
  0xef   :  { %2126 = vmatpush.bf16.msrb.mxu1 %v3432_v7  ;;  %v3910_v7 = vld [vmem:[#allocation7 + $0x24] sm:$0xf] }
  0xf0   :  { %2113 = vmatpush.bf16.msra.mxu3 %v3360_v10  ;;  %v3433_v10 = vld [vmem:[#allocation7 + $0xb8] sm:$0xf0] }
  0xf1   :  { %v3436_v18 = vor.u32 %v3928_v9, %v3433_v10  ;;  %v3479_v9 = vld [vmem:[#allocation7 + $0x110] sm:$0xf]  ;;  %v3941_v10 = vld [vmem:[#allocation7 + $0x114] sm:$0xf0] }
  0xf3   :  { %2127 = vmatpush.bf16.msrb.mxu1 %v3424_v19  ;;  %v3364_v19 = vor.u32 %v3910_v7, %v3361_v14  ;;  %v3939_v14 = vld [vmem:[#allocation7 + $0x104] sm:$0xf0] }
  0xf4   :  { %2114 = vmatpush.bf16.msra.mxu3 %v3352_v21  ;;  %v3926_v21 = vld [vmem:[#allocation7 + $0xa4] sm:$0xf] }
  0xf6   :  { %v1449_v4 = vpop.f32.mrf.mxu0 }
  0xf7   :  { %2128 = vmatpush.bf16.msrb.mxu1 %v3416_v50  ;;  %v1463_v13 = vpop.f32.mrf.mxu1  ;;  %v1450_v23 = vadd.f32 %v1449_v4, %v1436_v11  ;;  %v3428_v50 = vor.u32 %v3926_v21, %v3425_v22  ;;  %v3480_v11 = vor.u32 %v3941_v10, %v3479_v9  ;;  %v3591_v21 = vld [vmem:[#allocation7 + $0x1f0] sm:$0xf]  ;;  %v3969_v22 = vld [vmem:[#allocation7 + $0x1f4] sm:$0xf0] }
  0xf8   :  { %2115 = vmatpush.bf16.msra.mxu3 %v3344_v31  ;;  %v3356_v31 = vor.u32 %v3908_v20, %v3353_v25  ;;  %v3592_v25 = vor.u32 %v3969_v22, %v3591_v21  ;;  %v3543_v10 = vld [vmem:[#allocation7 + $0x190] sm:$0xf]  ;;  %v3968_v22 = vld [vmem:[#allocation7 + $0x1f4] sm:$0xf] }
  0xfa   :  { %2150 = vmatpush.bf16.msra.mxu0 %v3592_v25 }
  0xfb   :  { %2116 = vmatmul.bf16.vlgmr.msra.gmra.mxu3 %v4287_v41  ;;  %2129 = vmatpush.bf16.msrb.mxu1 %v3408_v43  ;;  %v3512_v43 = vor.u32 %v3949_v39, %v3511_v38  ;;  %v3944_v38 = vld [vmem:[#allocation7 + $0x134] sm:$0xf]  ;;  %v3497_v39 = vld [vmem:[#allocation7 + $0x138] sm:$0xf0] }
  0xfc   :  { %2164 = vmatpush.bf16.msrb.mxu3 %v3404_v35  ;;  %v1464_v35 = vadd.f32 %v1463_v13, %v1450_v23  ;;  %v3471_v13 = vld [vmem:[#allocation7 + $0x100] sm:$0xf]  ;;  %v3948_v23 = vld [vmem:[#allocation7 + $0x154] sm:$0xf] }
  0xfd   :  { %2138 = vmatpush.bf16.msrb.mxu2 %v3512_v43  ;;  %v3472_v15 = vor.u32 %v3939_v14, %v3471_v13  ;;  %v3516_v27 = vor.u32 %v3948_v23, %v3513_v26  ;;  %v3567_v43 = vld [vmem:[#allocation7 + $0x1c0] sm:$0xf]  ;;  %v3593_v23 = vld [vmem:[#allocation7 + $0x1f8] sm:$0xf0] }
  0xfe   :  { %v1477_v55 = vpop.f32.mrf.mxu3  ;;  %v1451_v28 = vpop.f32.mrf.mxu0  ;;  %v3596_v25 = vor.u32 %v3968_v22, %v3593_v23 }
  0xff   :  { %2178 = vmatpush.bf16.msra.mxu1 %v3468_v44  ;;  %v1452_v8 = vadd.f32 %v1451_v28, %v1438_v24  ;;  %v1465_v40 = vpop.f32.mrf.mxu1  ;;  %v3420_v44 = vor.u32 %v3924_v33, %v3417_v34  ;;  %v1478_v47 = vadd.f32 %v1477_v55, %v1464_v35  ;;  %v3583_v28 = vld [vmem:[#allocation7 + $0x1e0] sm:$0xf]  ;;  %v3575_v34 = vld [vmem:[#allocation7 + $0x1d0] sm:$0xf]  ;;  %v3965_v35 = vld [vmem:[#allocation7 + $0x1d4] sm:$0xf0] }
 0x100   :  { %2165 = vmatpush.bf16.msrb.mxu3 %v3396_v46  ;;  %v3922_v46 = vld [vmem:[#allocation7 + $0x84] sm:$0xf]  ;;  %v3576_v36 = vor.u32 %v3965_v35, %v3575_v34  ;;  %v3577_v34 = vld [vmem:[#allocation7 + $0x1d8] sm:$0xf0] }
 0x101   :  { %v1466_v48 = vadd.f32 %v1465_v40, %v1452_v8  ;;  %v3412_v57 = vor.u32 %v3922_v46, %v3409_v54  ;;  %v324_v8 = vperm.slane %v4278_v52, 2  ;;  %v3500_v40 = vor.u32 %v3944_v38, %v3497_v39 }
 0x103   :  { %2179 = vmatpush.bf16.msra.mxu1 %v3460_v60  ;;  %v1491_v30 = vpop.f32.mrf.mxu2  ;;  %v3947_v60 = vld [vmem:[#allocation7 + $0x144] sm:$0xf0] }
 0x104   :  { %2166 = vmatpush.bf16.msrb.mxu3 %v3388_v51  ;;  %v3504_v56 = vor.u32 %v3947_v60, %v3503_v49 }
 0x106   :  { %v1479_v51 = vpop.f32.mrf.mxu3  ;;  %v1505_v53 = vpop.f32.mrf.mxu0  ;;  %2139 = vmatpush.bf16.msrb.mxu2 %v3504_v56  ;;  %v3940_v56 = vld [vmem:[#allocation7 + $0x114] sm:$0xf] }
 0x107   :  { %2180 = vmatpush.bf16.msra.mxu1 %v3452_v62  ;;  %v1492_v62 = vadd.f32 %v1491_v30, %v1478_v47  ;;  %v3584_v30 = vor.u32 %v3967_v29, %v3583_v28  ;;  %v3966_v28 = vld [vmem:[#allocation7 + $0x1e4] sm:$0xf]  ;;  %v3585_v29 = vld [vmem:[#allocation7 + $0x1e8] sm:$0xf0] }
 0x108   :  { %2167 = vmatpush.bf16.msrb.mxu3 %v3380_v63  ;;  %v1480_v63 = vadd.f32 %v1479_v51, %v1466_v48  ;;  %v3489_v48 = vld [vmem:[#allocation7 + $0x128] sm:$0xf0]  ;;  %v3559_v51 = vld [vmem:[#allocation7 + $0x1b0] sm:$0xf] }
 0x109   :  { %v1506_v3 = vadd.f32 %v1505_v53, %v1492_v62  ;;  %2151 = vmatpush.bf16.msra.mxu0 %v3584_v30  ;;  %v3961_v53 = vld [vmem:[#allocation7 + $0x1b4] sm:$0xf0] }
 0x10a   :  { %2140 = vmatpush.bf16.msrb.mxu2 %v3496_v61  ;;  %v3560_v59 = vor.u32 %v3961_v53, %v3559_v51  ;;  %v3481_v61 = vld [vmem:[#allocation7 + $0x118] sm:$0xf0]  ;;  %v3958_v53 = vld [vmem:[#allocation7 + $0x1a4] sm:$0xf] }
 0x10b   :  { %2181 = vmatpush.bf16.msra.mxu1 %v3444_v42  ;;  %v1493_v1 = vpop.f32.mrf.mxu2  ;;  %v3484_v37 = vor.u32 %v3940_v56, %v3481_v61  ;;  %v3553_v56 = vld [vmem:[#allocation7 + $0x1a8] sm:$0xf0]  ;;  %v3545_v61 = vld [vmem:[#allocation7 + $0x198] sm:$0xf0] }
 0x10c   :  { %2168 = vmatpush.bf16.msrb.mxu3 %v3372_v6  ;;  %v1494_v4 = vadd.f32 %v1493_v1, %v1480_v63  ;;  %v1707_v6 = vmax.f32 %v1506_v3, 0.0  ;;  %v3959_v3 = vld [vmem:[#allocation7 + $0x1a4] sm:$0xf0] }
 0x10d   :  { %2152 = vmatpush.bf16.msra.mxu0 %v3576_v36 }
 0x10e   :  { %v1507_v5 = vpop.f32.mrf.mxu0  ;;  %2141 = vmatpush.bf16.msrb.mxu2 %v3488_v2  ;;  %v3551_v2 = vld [vmem:[#allocation7 + $0x1a0] sm:$0xf] }
 0x10f   :  { %2182 = vmatpush.bf16.msra.mxu1 %v3436_v18  ;;  %v1508_v42 = vadd.f32 %v1507_v5, %v1494_v4  ;;  %v3950_v18 = vld [vmem:[#allocation7 + $0x164] sm:$0xf]  ;;  %v3552_v5 = vor.u32 %v3959_v3, %v3551_v2  ;;  %v3537_v3 = vld [vmem:[#allocation7 + $0x188] sm:$0xf0] }
 0x110   :  { %2169 = vmatpush.bf16.msrb.mxu3 %v3364_v19  ;;  %v3521_v19 = vld [vmem:[#allocation7 + $0x168] sm:$0xf0]  ;;  %v3938_v4 = vld [vmem:[#allocation7 + $0x104] sm:$0xf] }
 0x111   :  { %v1711_v7 = vmax.f32 %v1508_v42, 0.0  ;;  %v3524_v20 = vor.u32 %v3950_v18, %v3521_v19  ;;  %v3473_v42 = vld [vmem:[#allocation7 + $0x108] sm:$0xf0]  ;;  %v3955_v18 = vld [vmem:[#allocation7 + $0x184] sm:$0xf0] }
 0x112   :  { %2142 = vmatpush.bf16.msrb.mxu2 %v3480_v11  ;;  %v3476_v9 = vor.u32 %v3938_v4, %v3473_v42  ;;  %v3957_v11 = vld [vmem:[#allocation7 + $0x194] sm:$0xf0] }
 0x113   :  { %2183 = vmatpush.bf16.msra.mxu1 %v3428_v50  ;;  %v1715_v12 = vpack.c.bf16 %v1711_v7, %v1707_v6  ;;  %v3946_v50 = vld [vmem:[#allocation7 + $0x144] sm:$0xf]  ;;  %v3544_v13 = vor.u32 %v3957_v11, %v3543_v10 }
 0x114   :  { %2170 = vmatpush.bf16.msrb.mxu3 %v3356_v31  ;;  %v3505_v31 = vld [vmem:[#allocation7 + $0x148] sm:$0xf0] }
 0x115   :  { %2130 = vmatmul.bf16.vlgmr.msrb.gmra.mxu1 %v1715_v12  ;;  %v3508_v32 = vor.u32 %v3946_v50, %v3505_v31  ;;  %v3588_v31 = vor.u32 %v3966_v28, %v3585_v29  ;;  %v3985_v28 = vld [vmem:[#allocation8 + $0x78] sm:$0xff]  ;;  %v3972_v29 = vld [vmem:[#allocation8 + $0x10] sm:$0xff] }
 0x116   :  { %2143 = vmatpush.bf16.msrb.mxu2 %v3472_v15 }
 0x117   :  { %2184 = vmatpush.bf16.msra.mxu1 %v3420_v44  ;;  %v1519_v24 = vpop.f32.mrf.mxu1  ;;  %v3963_v44 = vld [vmem:[#allocation7 + $0x1c4] sm:$0xf0] }
 0x118   :  { %2171 = vmatpush.bf16.msrb.mxu3 %v3348_v45  ;;  %v3942_v45 = vld [vmem:[#allocation7 + $0x124] sm:$0xf]  ;;  %v3568_v47 = vor.u32 %v3963_v44, %v3567_v43  ;;  %v1520_v60 = vadd.f32 %v1519_v24, %v324_v8  ;;  %v3569_v44 = vld [vmem:[#allocation7 + $0x1c8] sm:$0xf0] }
 0x119   :  { %v3492_v49 = vor.u32 %v3942_v45, %v3489_v48  ;;  %v3962_v43 = vld [vmem:[#allocation7 + $0x1c4] sm:$0xf] }
 0x11a   :  { %v1547_v55 = vpop.f32.mrf.mxu0  ;;  %2153 = vmatpush.bf16.msra.mxu0 %v3568_v47  ;;  %v3572_v45 = vor.u32 %v3962_v43, %v3569_v44  ;;  %v325_v47 = vperm.slane %v4278_v52, 3  ;;  %v3954_v52 = vld [vmem:[#allocation7 + $0x184] sm:$0xf] }
 0x11b   :  { %2172 = vmatmul.bf16.vlgmr.msrb.gmra.mxu3 %v4287_v41  ;;  %2185 = vmatpush.bf16.msra.mxu1 %v3412_v57  ;;  %v3952_v41 = vld [vmem:[#allocation7 + $0x174] sm:$0xf]  ;;  %v3978_v43 = vld [vmem:[#allocation8 + $0x40] sm:$0xff] }
 0x11c   :  { %v3532_v17 = vor.u32 %v3952_v41, %v3529_v16 }
 0x11e   :  { %2192 = vmatpush.bf16.msra.mxu2 %v3532_v17  ;;  %v1533_v33 = vpop.f32.mrf.mxu3  ;;  %2154 = vmatpush.bf16.msra.mxu0 %v3560_v59  ;;  %v3535_v17 = vld [vmem:[#allocation7 + $0x180] sm:$0xf]  ;;  %v3956_v59 = vld [vmem:[#allocation7 + $0x194] sm:$0xf] }
 0x11f   :  { %v1521_v46 = vpop.f32.mrf.mxu1  ;;  %v1534_v62 = vadd.f32 %v1533_v33, %v1520_v60  ;;  %v3536_v21 = vor.u32 %v3955_v18, %v3535_v17  ;;  %v3964_v33 = vld [vmem:[#allocation7 + $0x1d4] sm:$0xf]  ;;  %2372 = vmatpush.bf16.msrb.mxu1 %v3985_v28 }
 0x120   :  { %v1522_v63 = vadd.f32 %v1521_v46, %v324_v8  ;;  %v3580_v36 = vor.u32 %v3964_v33, %v3577_v34  ;;  %v3960_v46 = vld [vmem:[#allocation7 + $0x1b4] sm:$0xf]  ;;  %v3982_v33 = vld [vmem:[#allocation8 + $0x60] sm:$0xff]  ;;  %v3981_v34 = vld [vmem:[#allocation8 + $0x58] sm:$0xff] }
 0x121   :  { %v1548_v6 = vadd.f32 %v1547_v55, %v1534_v62  ;;  %v3548_v62 = vor.u32 %v3956_v59, %v3545_v61 }
 0x122   :  { %2193 = vmatpush.bf16.msra.mxu2 %v3524_v20  ;;  %v1549_v54 = vpop.f32.mrf.mxu0  ;;  %2155 = vmatpush.bf16.msra.mxu0 %v3552_v5  ;;  %v3540_v5 = vor.u32 %v3954_v52, %v3537_v3 }
 0x123   :  { %v1561_v57 = vpop.f32.mrf.mxu2 }
 0x124   :  { %v1562_v14 = vadd.f32 %v1561_v57, %v1548_v6 }
 0x125   :  { %2186 = vmatmul.bf16.vlgmr.msra.gmra.mxu1 %v1715_v12 }
 0x126   :  { %2194 = vmatpush.bf16.msra.mxu2 %v3516_v27  ;;  %v1535_v58 = vpop.f32.mrf.mxu3  ;;  %2156 = vmatpush.bf16.msra.mxu0 %v3544_v13 }
 0x127   :  { %v1536_v7 = vadd.f32 %v1535_v58, %v1522_v63  ;;  %v3556_v58 = vor.u32 %v3958_v53, %v3553_v56 }
 0x129   :  { %v1550_v15 = vadd.f32 %v1549_v54, %v1536_v7  ;;  %v3561_v54 = vld [vmem:[#allocation7 + $0x1b8] sm:$0xf0] }
 0x12a   :  { %2195 = vmatpush.bf16.msra.mxu2 %v3508_v32  ;;  %v1603_v1 = vpop.f32.mrf.mxu0  ;;  %2157 = vmatpush.bf16.msra.mxu0 %v3536_v21  ;;  %v3564_v48 = vor.u32 %v3960_v46, %v3561_v54  ;;  %v3993_v54 = vld [vmem:[%s4355_s7 + $0x38] sm:$0xff] }
 0x12b   :  { %v1563_v41 = vpop.f32.mrf.mxu2 }
 0x12c   :  { %v1564_v24 = vadd.f32 %v1563_v41, %v1550_v15 }
 0x12e   :  { %2196 = vmatpush.bf16.msra.mxu2 %v3500_v40  ;;  %2206 = vmatpush.bf16.msrb.mxu0 %v3596_v25  ;;  %v3975_v25 = vld [vmem:[#allocation8 + $0x28] sm:$0xff] }
 0x132   :  { %2197 = vmatpush.bf16.msra.mxu2 %v3492_v49  ;;  %v1605_v20 = vpop.f32.mrf.mxu0  ;;  %2207 = vmatpush.bf16.msrb.mxu0 %v3588_v31  ;;  %v3983_v31 = vld [vmem:[#allocation8 + $0x68] sm:$0xff] }
 0x136   :  { %2198 = vmatpush.bf16.msra.mxu2 %v3484_v37  ;;  %2208 = vmatpush.bf16.msrb.mxu0 %v3580_v36 }
 0x137   :  { %v1575_v0 = vpop.f32.mrf.mxu1 }
 0x138   :  { %v1576_v16 = vadd.f32 %v1575_v0, %v1562_v14 }
 0x13a   :  { %2199 = vmatpush.bf16.msra.mxu2 %v3476_v9  ;;  %2209 = vmatpush.bf16.msrb.mxu0 %v3572_v45 }
 0x13e   :  { %v1589_v12 = vpop.f32.mrf.mxu3  ;;  %v1631_v39 = vpop.f32.mrf.mxu0  ;;  %2210 = vmatpush.bf16.msrb.mxu0 %v3564_v48 }
 0x13f   :  { %v1577_v19 = vpop.f32.mrf.mxu1  ;;  %v1590_v55 = vadd.f32 %v1589_v12, %v1576_v16 }
 0x140   :  { %v1578_v26 = vadd.f32 %v1577_v19, %v1564_v24  ;;  %v3977_v24 = vld [vmem:[#allocation8 + $0x38] sm:$0xff] }
 0x141   :  { %v1604_v50 = vadd.f32 %v1603_v1, %v1590_v55  ;;  %2358 = vmatpush.bf16.msra.mxu3 %v3977_v24  ;;  %v3976_v55 = vld [vmem:[#allocation8 + $0x30] sm:$0xff] }
 0x142   :  { %2211 = vmatpush.bf16.msrb.mxu0 %v3556_v58  ;;  %v3986_v24 = vld [vmem:[%s4355_s7] sm:$0xff] }
 0x143   :  { %v1708_v35 = vmax.f32 %v1604_v50, 0.0  ;;  %v1617_v38 = vpop.f32.mrf.mxu2  ;;  %v3984_v50 = vld [vmem:[#allocation8 + $0x70] sm:$0xff] }
 0x144   :  { %v1618_v57 = vadd.f32 %v1617_v38, %v325_v47  ;;  %2373 = vmatpush.bf16.msrb.mxu1 %v3984_v50 }
 0x145   :  { %2359 = vmatpush.bf16.msra.mxu3 %v3976_v55  ;;  %v3997_v55 = vld [vmem:[%s4357_s9 + $0x18] sm:$0xff] }
 0x146   :  { %v1591_v27 = vpop.f32.mrf.mxu3  ;;  %v1633_v51 = vpop.f32.mrf.mxu0  ;;  %v1632_v63 = vadd.f32 %v1631_v39, %v1618_v57  ;;  %2212 = vmatpush.bf16.msrb.mxu0 %v3548_v62  ;;  %v3979_v39 = vld [vmem:[#allocation8 + $0x48] sm:$0xff] }
 0x147   :  { %v1592_v30 = vadd.f32 %v1591_v27, %v1578_v26  ;;  %v3974_v26 = vld [vmem:[#allocation8 + $0x20] sm:$0xff]  ;;  %v3973_v27 = vld [vmem:[#allocation8 + $0x18] sm:$0xff] }
 0x148   :  { %2374 = vmatpush.bf16.msrb.mxu1 %v3983_v31 }
 0x149   :  { %v1606_v32 = vadd.f32 %v1605_v20, %v1592_v30  ;;  %2360 = vmatpush.bf16.msra.mxu3 %v3975_v25  ;;  %v3971_v30 = vld [vmem:[#allocation8 + $0x8] sm:$0xff] }
 0x14a   :  { %2213 = vmatpush.bf16.msrb.mxu0 %v3540_v5 }
 0x14b   :  { %v1712_v8 = vmax.f32 %v1606_v32, 0.0  ;;  %v1619_v60 = vpop.f32.mrf.mxu2  ;;  %v3970_v32 = vld [vmem:[#allocation8] sm:$0xff] }
 0x14c   :  { %v1620_v0 = vadd.f32 %v1619_v60, %v325_v47  ;;  %2375 = vmatpush.bf16.msrb.mxu1 %v3982_v33  ;;  %v3992_v60 = vld [vmem:[%s4355_s7 + $0x30] sm:$0xff] }
 0x14d   :  { %v1716_v40 = vpack.c.bf16 %v1712_v8, %v1708_v35  ;;  %2361 = vmatpush.bf16.msra.mxu3 %v3974_v26  ;;  %v3980_v35 = vld [vmem:[#allocation8 + $0x50] sm:$0xff] }
 0x14e   :  { %v1634_v42 = vadd.f32 %v1633_v51, %v1620_v0 }
 0x14f   :  { %2144 = vmatmul.bf16.vlgmr.msrb.gmra.mxu2 %v1716_v40 }
 0x150   :  { %2376 = vmatpush.bf16.msrb.mxu1 %v3981_v34  ;;  %2457 = vmatpush.bf16.msrb.mxu2 %v3993_v54 }
 0x151   :  { %2362 = vmatpush.bf16.msra.mxu3 %v3973_v27  ;;  %v4016_v27 = vld [vmem:[%s4354_s6] ss:$0 sm:$0xff] }
 0x154   :  { %2377 = vmatpush.bf16.msrb.mxu1 %v3980_v35  ;;  %2458 = vmatpush.bf16.msrb.mxu2 %v3992_v60 }
 0x155   :  { %2363 = vmatpush.bf16.msra.mxu3 %v3972_v29 }
 0x157   :  { %v1645_v49 = vpop.f32.mrf.mxu1 }
 0x158   :  { %v1646_v4 = vadd.f32 %v1645_v49, %v1632_v63  ;;  %2378 = vmatpush.bf16.msrb.mxu1 %v3979_v39 }
 0x159   :  { %2364 = vmatpush.bf16.msra.mxu3 %v3971_v30 }
 0x15c   :  { %2379 = vmatpush.bf16.msrb.mxu1 %v3978_v43 }
 0x15d   :  { %2365 = vmatpush.bf16.msra.mxu3 %v3970_v32 }
 0x15e   :  { %v1659_v37 = vpop.f32.mrf.mxu3  ;;  %v1687_v6 = vpop.f32.mrf.mxu0 }
 0x15f   :  { %v1647_v1 = vpop.f32.mrf.mxu1  ;;  %2200 = vmatmul.bf16.vlgmr.msra.gmra.mxu2 %v1716_v40  ;;  %v1660_v7 = vadd.f32 %v1659_v37, %v1646_v4  ;;  %v1782_v40 = vld [vmem:[%s4352_s4] sm:$0x3] }
 0x160   :  { %v1648_v9 = vadd.f32 %v1647_v1, %v1634_v42  ;;  %v1784_v44 = vperm.slane %v1782_v40, 0  ;;  %v1785_v52 = vperm.slane %v1782_v40, 1  ;;  %v4017_v40 = vld [vmem:[%s4356_s8] ss:$0 sm:$0xff]  ;;  %s2538_s8 = sshll.u32 %s4359_s11, 4  ;;  %s2539_s8 = int_to_ptr.hbm [resolvable:$true] %s2538_s8 }
 0x163   :  { %v1673_v2 = vpop.f32.mrf.mxu2 }
 0x164   :  { %v1674_v13 = vadd.f32 %v1673_v2, %v1660_v7 }
 0x166   :  { %v1661_v10 = vpop.f32.mrf.mxu3  ;;  %v1688_v41 = vadd.f32 %v1687_v6, %v1674_v13  ;;  %v1689_v16 = vpop.f32.mrf.mxu0 }
 0x167   :  { %v1662_v11 = vadd.f32 %v1661_v10, %v1648_v9  ;;  %v1701_v12 = vpop.f32.mrf.mxu1 }
 0x168   :  { %v1702_v17 = vadd.f32 %v1701_v12, %v1688_v41 }
 0x16a   :  { %v1709_v21 = vmax.f32 %v1702_v17, 0.0 }
 0x16b   :  { %v1675_v14 = vpop.f32.mrf.mxu2 }
 0x16c   :  { %v1676_v15 = vadd.f32 %v1675_v14, %v1662_v11 }
 0x16e   :  { %v1690_v18 = vadd.f32 %v1689_v16, %v1676_v15 }
 0x16f   :  { %v1703_v19 = vpop.f32.mrf.mxu1 }
 0x170   :  { %v1704_v20 = vadd.f32 %v1703_v19, %v1690_v18  ;;  %v3991_v19 = vld [vmem:[%s4355_s7 + $0x28] sm:$0xff] }
 0x171   :  { %2459 = vmatpush.bf16.msrb.mxu2 %v3991_v19 }
 0x172   :  { %v1713_v22 = vmax.f32 %v1704_v20, 0.0  ;;  %v3990_v20 = vld [vmem:[%s4355_s7 + $0x20] sm:$0xff] }
 0x174   :  { %v1717_v23 = vpack.c.bf16 %v1713_v22, %v1709_v21  ;;  %v3989_v21 = vld [vmem:[%s4355_s7 + $0x18] sm:$0xff]  ;;  %v3988_v22 = vld [vmem:[%s4355_s7 + $0x10] sm:$0xff] }
 0x175   :  { %2460 = vmatpush.bf16.msrb.mxu2 %v3990_v20 }
 0x176   :  { %2158 = vmatmul.bf16.vlgmr.msra.gmra.mxu0 %v1717_v23 }
 0x177   :  { %2518 = vmatpush.bf16.msra.mxu0 %v3997_v55 }
 0x179   :  { %2461 = vmatpush.bf16.msrb.mxu2 %v3989_v21 }
 0x17d   :  { %2462 = vmatpush.bf16.msrb.mxu2 %v3988_v22 }
 0x17e   :  { %v2117_v8 = vpop.f32.mrf.mxu3 }
 0x17f   :  { %v2118_v49 = vadd.f32 %v2117_v8, %v1784_v44  ;;  %v3996_v8 = vld [vmem:[%s4357_s9 + $0x10] sm:$0xff] }
 0x180   :  { %2519 = vmatpush.bf16.msra.mxu0 %v3996_v8 }
 0x186   :  { %2214 = vmatmul.bf16.vlgmr.msrb.gmra.mxu0 %v1717_v23  ;;  %v2119_v45 = vpop.f32.mrf.mxu3  ;;  %v3987_v23 = vld [vmem:[%s4355_s7 + $0x8] sm:$0xff] }
 0x187   :  { %v2120_v51 = vadd.f32 %v2119_v45, %v1784_v44  ;;  %2463 = vmatpush.bf16.msrb.mxu2 %v3987_v23 }
 0x18b   :  { %2464 = vmatpush.bf16.msrb.mxu2 %v3986_v24 }
 0x192   :  { %v2131_v36 = vpop.f32.mrf.mxu1 }
 0x193   :  { %v2132_v53 = vadd.f32 %v2131_v36, %v2118_v49  ;;  %v3995_v36 = vld [vmem:[%s4357_s9 + $0x8] sm:$0xff]  ;;  %v4018_v49 = vld [vmem:[%s4358_s10] ss:$0 sm:$0xff] }
 0x194   :  { %2520 = vmatpush.bf16.msra.mxu0 %v3995_v36 }
 0x19a   :  { %v2133_v46 = vpop.f32.mrf.mxu1 }
 0x19b   :  { %v2134_v56 = vadd.f32 %v2133_v46, %v2120_v51 }
 0x19e   :  { %v2173_v58 = vpop.f32.mrf.mxu3 }
 0x19f   :  { %v2174_v42 = vadd.f32 %v2173_v58, %v1785_v52 }
 0x1a2   :  { %v2187_v62 = vpop.f32.mrf.mxu1 }
 0x1a3   :  { %v2188_v9 = vadd.f32 %v2187_v62, %v2174_v42 }
 0x1a6   :  { %v2175_v4 = vpop.f32.mrf.mxu3 }
 0x1a7   :  { %v2176_v7 = vadd.f32 %v2175_v4, %v1785_v52 }
 0x1aa   :  { %v2189_v6 = vpop.f32.mrf.mxu1 }
 0x1ab   :  { %v2190_v11 = vadd.f32 %v2189_v6, %v2176_v7 }
 0x1d2   :  { %v2145_v38 = vpop.f32.mrf.mxu2 }
 0x1d3   :  { %v2146_v57 = vadd.f32 %v2145_v38, %v2132_v53  ;;  %v3994_v38 = vld [vmem:[%s4357_s9] sm:$0xff]  ;;  %s4159_s9 = smov [#allocation10]  }
 0x1d4   :  { %2521 = vmatpush.bf16.msra.mxu0 %v3994_v38  ;;  %s2536_s29 = sshll.u32 %s4159_s9, 4  ;;  %s2537_s29 = int_to_ptr.vmem [resolvable:$true] %s2536_s29 }
 0x1da   :  { %v2147_v47 = vpop.f32.mrf.mxu2 }
 0x1db   :  { %v2148_v59 = vadd.f32 %v2147_v47, %v2134_v56 }
 0x1e2   :  { %v2201_v0 = vpop.f32.mrf.mxu2 }
 0x1e3   :  { %v2202_v12 = vadd.f32 %v2201_v0, %v2188_v9 }
 0x1ea   :  { %v2203_v10 = vpop.f32.mrf.mxu2 }
 0x1eb   :  { %v2204_v13 = vadd.f32 %v2203_v10, %v2190_v11 }
 0x1f3   :  { %v2159_v48 = vpop.f32.mrf.mxu0 }
 0x1f4   :  { %v2160_v61 = vadd.f32 %v2159_v48, %v2146_v57 }
 0x1f6   :  { %v2220_v1 = vmax.f32 %v2160_v61, 0.0 }
 0x1fb   :  { %v2161_v63 = vpop.f32.mrf.mxu0 }
 0x1fc   :  { %v2162_v37 = vadd.f32 %v2161_v63, %v2148_v59 }
 0x1fe   :  { %v2222_v2 = vmax.f32 %v2162_v37, 0.0 }
 0x200   :  { %v2224_v3 = vpack.c.bf16 %v2222_v2, %v2220_v1 }
 0x202   :  { %2366 = vmatmul.bf16.vlgmr.msra.gmra.mxu3 %v2224_v3 }
 0x203   :  { %v2215_v5 = vpop.f32.mrf.mxu0 }
 0x204   :  { %v2216_v14 = vadd.f32 %v2215_v5, %v2202_v12 }
 0x206   :  { %v2221_v16 = vmax.f32 %v2216_v14, 0.0 }
 0x20b   :  { %v2217_v15 = vpop.f32.mrf.mxu0 }
 0x20c   :  { %v2218_v41 = vadd.f32 %v2217_v15, %v2204_v13 }
 0x20e   :  { %v2223_v17 = vmax.f32 %v2218_v41, 0.0 }
 0x210   :  { %v2225_v18 = vpack.c.bf16 %v2223_v17, %v2221_v16 }
 0x212   :  { %2380 = vmatmul.bf16.vlgmr.msrb.gmra.mxu1 %v2225_v18 }
 0x285   :  { %v2367_v25 = vpop.f32.mrf.mxu3 }
 0x286   :  { %v2368_v29 = vadd.f32 %v4016_v27, %v2367_v25 }
 0x28d   :  { %v2369_v28 = vpop.f32.mrf.mxu3 }
 0x28e   :  { %v2370_v50 = vadd.f32 %v4016_v27, %v2369_v28 }
 0x28f   :  { %v2381_v26 = vpop.f32.mrf.mxu1 }
 0x290   :  { %v2382_v30 = vadd.f32 %v2381_v26, %v2368_v29 }
 0x292   :  { %v2386_v33 = vmax.f32 %v2382_v30, 0.0 }
 0x297   :  { %v2383_v31 = vpop.f32.mrf.mxu1 }
 0x298   :  { %v2384_v32 = vadd.f32 %v2383_v31, %v2370_v50 }
 0x29a   :  { %v2387_v34 = vmax.f32 %v2384_v32, 0.0 }
 0x29c   :  { %v2388_v35 = vpack.c.bf16 %v2387_v34, %v2386_v33 }
 0x29e   :  { %2465 = vmatmul.bf16.vlgmr.msrb.gmra.mxu2 %v2388_v35 }
 0x321   :  { %v2466_v39 = vpop.f32.mrf.mxu2 }
 0x322   :  { %v2467_v43 = vadd.f32 %v4017_v40, %v2466_v39 }
 0x324   :  { %v2471_v46 = vmax.f32 %v2467_v43, 0.0 }
 0x329   :  { %v2468_v44 = vpop.f32.mrf.mxu2 }
 0x32a   :  { %v2469_v45 = vadd.f32 %v4017_v40, %v2468_v44 }
 0x32c   :  { %v2472_v54 = vmax.f32 %v2469_v45, 0.0 }
 0x32e   :  { %v2473_v47 = vpack.c.bf16 %v2472_v54, %v2471_v46 }
 0x330   :  { %3709 = vmatmul.msk.bf16.vlgmr.msra.gmra.mxu0 %vm2510_vm1, %v2473_v47 }
 0x3ad   :  { %v2523_v48 = vpop.f32.mrf.mxu0 }
 0x3ae   :  { %v2524_v51 = vadd.f32 %v4018_v49, %v2523_v48 }
 0x3b5   :  { %v2525_v60 = vpop.f32.mrf.mxu0 }
 0x3b6   :  { %v2526_v53 = vadd.f32 %v4018_v49, %v2525_v60 }
 0x3b8   :  { %v4001_v56 = vpack.c.bf16 %v2526_v53, %v2524_v51 }
 0x3ba   :  { %4002 = vst [vmem:[#allocation10] sm:$0xff] %v4001_v56  }
 0x3bb   :  { %2544 = dma.vmem_to_hbm [thread:$0]  %s2537_s29, 128, %s2539_s8, [#allocation4], %s4157_s22, %s4157_s22, %s4158_s23  }
 0x3bc   :  { %4145 = dma.done.wait [#allocation4], 128  }
 0x3bd   :  { %4146 = vsyncadd [#allocation4], 4294967168 }
 0x3be   :  { %2549 = vsyncpa [#allocation3], 1 }
 0x3bf   :  { %2550 = vsyncpa [#allocation6], 1 }
 0x3c0   :  { %2551 = vsyncpa [#allocation9], 1 }
 0x3c1   :  { %2552 = vsyncpa [#allocation4], 1 }

</bundles_post_ra>
